<compile_context>
chip_gen: v7x
topology: tpu7x:2x2x1
jax: 0.10.0
libtpu: 0.0.40
codegen_flags: <defaults>
</compile_context>

<pallas_src>
import numpy as np
import jax
import jax.numpy as jnp
from jax import lax
from jax.experimental import pallas as pl
from jax.experimental.pallas import tpu as pltpu

LANE = 128      # lane width (last dim)
SUBLANE = 8     # sublane width (second-minor dim, f32)


def _round_up(n, m):
    return ((n + m - 1) // m) * m


def _device_plan():
    """Per-generation VMEM budget + whether bf16 gate nonlinearities pay off."""
    try:
        kind = jax.devices()[0].device_kind.lower()
    except Exception:
        kind = ""
    if "v7" in kind:                       # 64 MiB physical VMEM per TC
        return (56 << 20), True
    if "v6" in kind:                       # 128 MiB physical
        return (100 << 20), True
    if "v5" in kind or "v4" in kind:       # no bf16 VPU/EUP -> keep f32 gates
        return (100 << 20), False
    return (64 << 20), False               # conservative default


def _plan_time_chunk(T, Bp, Dp, Hp, Op, n_layers, vmem_budget):
    """Largest time-chunk that fits the VMEM budget (weights single-buffered)."""
    # Single-buffered bf16 weight scratch resident in VMEM.
    w_bytes = Hp * Op * 2
    for l in range(n_layers):
        din = Dp if l == 0 else Hp
        w_bytes += (din + Hp) * 4 * Hp * 2
    fixed = w_bytes
    fixed += 2 * (n_layers * 4 * Hp * 4 + Op * 4)     # double-buffered biases
    fixed += 2 * Bp * Op * 4                          # output block
    fixed += n_layers * Bp * Hp * (2 + 4)             # h (bf16) + c (f32) state
    fixed += 2 << 20                                  # slack for internal scratch
    # Per-time-step VMEM: streamed bf16 x chunk (double-buffered) + f32 gx
    # scratch + bf16 inter-layer sequence scratch.
    per_t = 2 * Bp * Dp * 2 + Bp * 4 * Hp * 4
    if n_layers > 1:
        per_t += Bp * Hp * 2
    avail = vmem_budget - fixed
    if avail < per_t:
        # TODO(synk): fall back to per-layer (unfused) pallas_calls when the
        # fused weight stack exceeds the per-generation VMEM budget.
        raise ValueError("fused LSTM kernel does not fit the VMEM budget")
    tt_cap = avail // per_t
    return int(max(1, min(T, tt_cap, 512)))


# ----------------------------------------------------------------------------
# Fused kernel
# ----------------------------------------------------------------------------
def _make_fused_kernel(n_layers, Hp, Tt, T_real, Tp, use_bf16_gates, unroll):
    need_mask = (Tp != T_real)

    def kernel(*refs):
        i = 0
        x_ref = refs[i]; i += 1
        b_refs = refs[i:i + n_layers]; i += n_layers
        bfc_ref = refs[i]; i += 1
        wih_hbm = refs[i:i + n_layers]; i += n_layers
        whh_hbm = refs[i:i + n_layers]; i += n_layers
        wfc_hbm = refs[i]; i += 1
        out_ref = refs[i]; i += 1
        wih_v = refs[i:i + n_layers]; i += n_layers
        whh_v = refs[i:i + n_layers]; i += n_layers
        wfc_v = refs[i]; i += 1
        gx_scr = refs[i]; i += 1
        seq_scr = None
        if n_layers > 1:
            seq_scr = refs[i]; i += 1
        h_scr = refs[i:i + n_layers]; i += n_layers
        c_scr = refs[i:i + n_layers]; i += n_layers
        wsem = refs[i]; i += 1

        Bp = x_ref.shape[1]
        step_idx = pl.program_id(0)

        # Grid step 0: copy all weights HBM->VMEM once (single-buffered) and
        # zero the carried h/c state (matches torch.zeros initial state).
        @pl.when(step_idx == 0)
        def _init():
            copies = []
            s = 0
            for l in range(n_layers):
                copies.append(pltpu.make_async_copy(wih_hbm[l], wih_v[l], wsem.at[s])); s += 1
                copies.append(pltpu.make_async_copy(whh_hbm[l], whh_v[l], wsem.at[s])); s += 1
            copies.append(pltpu.make_async_copy(wfc_hbm, wfc_v, wsem.at[s]))
            for cp in copies:
                cp.start()
            for cp in copies:
                cp.wait()
            for l in range(n_layers):
                h_scr[l][...] = jnp.zeros_like(h_scr[l])
                c_scr[l][...] = jnp.zeros_like(c_scr[l])

        chunk_t0 = step_idx * Tt

        cur = x_ref  # (Tt, Bp, Dp) bf16; becomes the bf16 seq scratch for l>0
        for l in range(n_layers):
            din = cur.shape[-1]
            # Hoisted input projection + bias: one big MXU matmul per chunk.
            x_flat = cur[...].reshape(Tt * Bp, din)
            gx = jnp.dot(x_flat, wih_v[l][...], preferred_element_type=jnp.float32)
            gx_scr[...] = (gx + b_refs[l][...]).reshape(Tt, Bp, 4 * Hp)

            write_seq = l < n_layers - 1

            def step(t, carry, l=l, write_seq=write_seq):
                h_prev = h_scr[l][...]          # bf16: no per-step cast needed
                c_prev = c_scr[l][...]          # f32
                # Only this (Bp,Hp)@(Hp,4Hp) matmul sits on the serial path.
                gates = gx_scr[t] + jnp.dot(h_prev, whh_v[l][...],
                                            preferred_element_type=jnp.float32)
                g = gates.astype(jnp.bfloat16) if use_bf16_gates else gates
                # Gate order follows PyTorch: [i, f, g, o]; Hp-multiple slices
                # are whole lane tiles.
                i_g = jax.nn.sigmoid(g[:, 0 * Hp:1 * Hp])
                f_g = jax.nn.sigmoid(g[:, 1 * Hp:2 * Hp])
                g_g = jnp.tanh(g[:, 2 * Hp:3 * Hp])
                o_g = jax.nn.sigmoid(g[:, 3 * Hp:4 * Hp])
                c_new = f_g * c_prev + i_g * g_g          # f32 accumulation
                t_c = (jnp.tanh(c_new.astype(jnp.bfloat16)) if use_bf16_gates
                       else jnp.tanh(c_new))
                h_new = (o_g * t_c).astype(jnp.bfloat16)
                if need_mask:
                    valid = (chunk_t0 + t) < T_real       # padded time steps
                    c_new = jnp.where(valid, c_new, c_prev)
                    h_new = jnp.where(valid, h_new, h_prev)
                c_scr[l][...] = c_new
                h_scr[l][...] = h_new
                if write_seq:
                    seq_scr[t] = h_new
                return carry

            lax.fori_loop(0, Tt, step, 0, unroll=unroll)
            if write_seq:
                cur = seq_scr

        # Fused FC head on the last layer's final hidden state.
        @pl.when(step_idx == pl.num_programs(0) - 1)
        def _fc():
            out_ref[...] = (
                jnp.dot(h_scr[n_layers - 1][...], wfc_v[...],
                        preferred_element_type=jnp.float32)
                + bfc_ref[...]
            ).astype(out_ref.dtype)

    return kernel


def _run_fused(x_pad, lstm_prepped, fc_prepped, Tt, T_real, Hp, Op,
               vmem_limit, use_bf16_gates, unroll):
    Tp, Bp, Dp = x_pad.shape
    n_layers = len(lstm_prepped)
    wfc_p, bfc_p = fc_prepped

    kernel = _make_fused_kernel(n_layers, Hp, Tt, T_real, Tp,
                                use_bf16_gates, unroll)

    in_specs = [pl.BlockSpec((Tt, Bp, Dp), lambda t: (t, 0, 0))]           # streamed x
    in_specs += [pl.BlockSpec((1, 4 * Hp), lambda t: (0, 0))
                 for _ in range(n_layers)]                                  # biases
    in_specs += [pl.BlockSpec((1, Op), lambda t: (0, 0))]                   # fc bias
    # Weight matrices stay in HBM (pl.ANY) and are DMA'd once into
    # single-buffered VMEM scratch at grid step 0.
    in_specs += [pl.BlockSpec(memory_space=pl.ANY)
                 for _ in range(2 * n_layers + 1)]

    scratch = []
    for l in range(n_layers):
        din = Dp if l == 0 else Hp
        scratch.append(pltpu.VMEM((din, 4 * Hp), jnp.bfloat16))             # wih
    scratch += [pltpu.VMEM((Hp, 4 * Hp), jnp.bfloat16) for _ in range(n_layers)]  # whh
    scratch.append(pltpu.VMEM((Hp, Op), jnp.bfloat16))                      # wfc
    scratch.append(pltpu.VMEM((Tt, Bp, 4 * Hp), jnp.float32))               # gx
    if n_layers > 1:
        scratch.append(pltpu.VMEM((Tt, Bp, Hp), jnp.bfloat16))              # seq
    scratch += [pltpu.VMEM((Bp, Hp), jnp.bfloat16) for _ in range(n_layers)]  # h
    scratch += [pltpu.VMEM((Bp, Hp), jnp.float32) for _ in range(n_layers)]   # c
    scratch.append(pltpu.SemaphoreType.DMA((2 * n_layers + 1,)))            # weight DMAs

    args = [x_pad]
    args += [p[2] for p in lstm_prepped]     # biases
    args += [bfc_p]
    args += [p[0] for p in lstm_prepped]     # wih (HBM)
    args += [p[1] for p in lstm_prepped]     # whh (HBM)
    args += [wfc_p]

    return pl.pallas_call(
        kernel,
        out_shape=jax.ShapeDtypeStruct((Bp, Op), jnp.float32),
        grid=(Tp // Tt,),
        in_specs=in_specs,
        out_specs=pl.BlockSpec((Bp, Op), lambda t: (0, 0)),
        scratch_shapes=scratch,
        compiler_params=pltpu.CompilerParams(
            dimension_semantics=("arbitrary",),
            vmem_limit_bytes=int(vmem_limit)),
    )(*args)


# ----------------------------------------------------------------------------
# One-time weight preparation (pad to lane-dense gate blocks; bf16 matmul weights)
# ----------------------------------------------------------------------------
def _prep_lstm_weights(w_ih, w_hh, b_ih, b_hh, H, Hp, Din, Dinp):
    """Torch layout w_ih:(4H,Din), w_hh:(4H,H). Gate g lands at cols [g*Hp, g*Hp+H)."""
    w_ih = np.asarray(w_ih); w_hh = np.asarray(w_hh)
    bias = np.asarray(b_ih) + np.asarray(b_hh)
    wih_p = np.zeros((Dinp, 4 * Hp), np.float32)
    whh_p = np.zeros((Hp, 4 * Hp), np.float32)
    b_p = np.zeros((1, 4 * Hp), np.float32)
    for g in range(4):
        wih_p[:Din, g * Hp:g * Hp + H] = w_ih[g * H:(g + 1) * H, :].T
        whh_p[:H, g * Hp:g * Hp + H] = w_hh[g * H:(g + 1) * H, :].T
        b_p[0, g * Hp:g * Hp + H] = bias[g * H:(g + 1) * H]
    return (jnp.asarray(wih_p, dtype=jnp.bfloat16),
            jnp.asarray(whh_p, dtype=jnp.bfloat16),
            jnp.asarray(b_p))


def _prep_fc_weights(fc_w, fc_b, H, Hp, O, Op):
    """Torch layout fc_w:(O,H)."""
    fc_w = np.asarray(fc_w); fc_b = np.asarray(fc_b)
    w_p = np.zeros((Hp, Op), np.float32); w_p[:H, :O] = fc_w.T
    b_p = np.zeros((1, Op), np.float32);  b_p[0, :O] = fc_b
    return jnp.asarray(w_p, dtype=jnp.bfloat16), jnp.asarray(b_p)


def prepare_params(lstm_params, fc_params, input_dim):
    """Call ONCE per model; returns padded/transposed device weights."""
    H = lstm_params[0][1].shape[1]
    O = fc_params[0].shape[0]
    Dp = _round_up(input_dim, LANE)
    Hp = _round_up(H, LANE)
    Op = _round_up(O, LANE)
    prepped = []
    for li, (w_ih, w_hh, b_ih, b_hh) in enumerate(lstm_params):
        in_d = input_dim if li == 0 else H
        in_dp = Dp if li == 0 else Hp
        prepped.append(_prep_lstm_weights(w_ih, w_hh, b_ih, b_hh, H, Hp, in_d, in_dp))
    fc_prepped = _prep_fc_weights(fc_params[0], fc_params[1], H, Hp, O, Op)
    meta = dict(D=input_dim, H=H, O=O, Dp=Dp, Hp=Hp, Op=Op)
    return prepped, fc_prepped, meta


# ----------------------------------------------------------------------------
# Forward pass (matches the PyTorch module: fc(lstm(x)[:, -1, :]))
# ----------------------------------------------------------------------------
def lstm_forward(x, prepared):
    """x: (B, T, D) batch_first. Returns (B, output_dim)."""
    lstm_prepped, fc_prepped, meta = prepared
    B, T, D = x.shape
    assert D == meta["D"]
    Bp = _round_up(B, SUBLANE)
    Dp, Hp, Op = meta["Dp"], meta["Hp"], meta["Op"]
    n_layers = len(lstm_prepped)

    vmem_budget, use_bf16_gates = _device_plan()
    Tt = _plan_time_chunk(T, Bp, Dp, Hp, Op, n_layers, vmem_budget)
    Tp = _round_up(T, Tt)
    unroll = min(Tt, 8) if Hp <= 128 else min(Tt, 2)

    # Time-major, zero-pad T/B/D. Padded weight rows/cols & biases are zero so
    # real lanes are unaffected; padded time steps are masked inside the kernel.
    x_t = jnp.transpose(x, (1, 0, 2))
    x_t = jnp.pad(x_t, ((0, Tp - T), (0, Bp - B), (0, Dp - D))).astype(jnp.bfloat16)

    out_p = _run_fused(x_t, lstm_prepped, fc_prepped, Tt, T, Hp, Op,
                       vmem_budget, use_bf16_gates, unroll)
    return out_p[:B, :meta["O"]]


# ----------------------------------------------------------------------------
# Deterministic parameter init (same shapes as nn.LSTM / nn.Linear)
# ----------------------------------------------------------------------------
def init_params(key, input_dim, hidden_dim, num_layers, output_dim):
    bound = 1.0 / np.sqrt(hidden_dim)
    lstm_params = []
    for layer in range(num_layers):
        in_d = input_dim if layer == 0 else hidden_dim
        key, k0, k1, k2, k3 = jax.random.split(key, 5)
        w_ih = jax.random.uniform(k0, (4 * hidden_dim, in_d), jnp.float32, -bound, bound)
        w_hh = jax.random.uniform(k1, (4 * hidden_dim, hidden_dim), jnp.float32, -bound, bound)
        b_ih = jax.random.uniform(k2, (4 * hidden_dim,), jnp.float32, -bound, bound)
        b_hh = jax.random.uniform(k3, (4 * hidden_dim,), jnp.float32, -bound, bound)
        lstm_params.append((w_ih, w_hh, b_ih, b_hh))
    key, k0, k1 = jax.random.split(key, 3)
    fc_w = jax.random.uniform(k0, (output_dim, hidden_dim), jnp.float32, -bound, bound)
    fc_b = jax.random.uniform(k1, (output_dim,), jnp.float32, -bound, bound)
    return lstm_params, (fc_w, fc_b)


# ----------------------------------------------------------------------------
# Pure-JAX f32 reference (mirrors torch.nn.LSTM semantics)
# ----------------------------------------------------------------------------
def lstm_forward_ref(x, lstm_params, fc_params):
    B = x.shape[0]
    seq = x
    for (w_ih, w_hh, b_ih, b_hh) in lstm_params:
        H = w_hh.shape[1]
        h = jnp.zeros((B, H), jnp.float32)
        c = jnp.zeros((B, H), jnp.float32)
        outs = []
        for t in range(seq.shape[1]):
            gates = seq[:, t, :] @ w_ih.T + h @ w_hh.T + b_ih + b_hh
            i_g = jax.nn.sigmoid(gates[:, 0 * H:1 * H])
            f_g = jax.nn.sigmoid(gates[:, 1 * H:2 * H])
            g_g = jnp.tanh(gates[:, 2 * H:3 * H])
            o_g = jax.nn.sigmoid(gates[:, 3 * H:4 * H])
            c = f_g * c + i_g * g_g
            h = o_g * jnp.tanh(c)
            outs.append(h)
        seq = jnp.stack(outs, axis=1)
    fc_w, fc_b = fc_params
    return seq[:, -1, :] @ fc_w.T + fc_b


if __name__ == "__main__":
    batch, seq_len = 2, 8
    input_dim, hidden_dim, num_layers, output_dim = 4, 32, 2, 3

    key = jax.random.PRNGKey(0)
    key, kx, kp = jax.random.split(key, 3)
    x = jax.random.normal(kx, (batch, seq_len, input_dim), jnp.float32)
    lstm_params, fc_params = init_params(kp, input_dim, hidden_dim, num_layers, output_dim)

    prepared = prepare_params(lstm_params, fc_params, input_dim)   # once per model

    out = jax.block_until_ready(lstm_forward(x, prepared))
    ref = jax.block_until_ready(lstm_forward_ref(x, lstm_params, fc_params))

    assert out.shape == (batch, output_dim), out.shape
    # bf16 matmuls / bf16 h state (and bf16 gate math on v6e/v7x) vs f32 reference.
    np.testing.assert_allclose(np.asarray(out), np.asarray(ref), rtol=3e-2, atol=3e-2)
    print("KERNEL_OK")
</pallas_src>

<mosaic_0001>
module attributes {stable_mosaic.version = 11 : i64} {
  func.func @kernel(%arg0: i32, %arg1: memref<8x8x128xbf16, #tpu.memory_space<vmem>>, %arg2: memref<1x512xf32, #tpu.memory_space<vmem>>, %arg3: memref<1x512xf32, #tpu.memory_space<vmem>>, %arg4: memref<1x128xf32, #tpu.memory_space<vmem>>, %arg5: memref<128x512xbf16, #tpu.memory_space<any>>, %arg6: memref<128x512xbf16, #tpu.memory_space<any>>, %arg7: memref<128x512xbf16, #tpu.memory_space<any>>, %arg8: memref<128x512xbf16, #tpu.memory_space<any>>, %arg9: memref<128x128xbf16, #tpu.memory_space<any>>, %arg10: memref<8x128xf32, #tpu.memory_space<vmem>>, %arg11: memref<128x512xbf16, #tpu.memory_space<vmem>>, %arg12: memref<128x512xbf16, #tpu.memory_space<vmem>>, %arg13: memref<128x512xbf16, #tpu.memory_space<vmem>>, %arg14: memref<128x512xbf16, #tpu.memory_space<vmem>>, %arg15: memref<128x128xbf16, #tpu.memory_space<vmem>>, %arg16: memref<8x8x512xf32, #tpu.memory_space<vmem>>, %arg17: memref<8x8x128xbf16, #tpu.memory_space<vmem>>, %arg18: memref<8x128xbf16, #tpu.memory_space<vmem>>, %arg19: memref<8x128xbf16, #tpu.memory_space<vmem>>, %arg20: memref<8x128xf32, #tpu.memory_space<vmem>>, %arg21: memref<8x128xf32, #tpu.memory_space<vmem>>, %arg22: memref<5x!tpu.dma_semaphore, #tpu.memory_space<semaphore_mem>>) attributes {dimension_semantics = [#tpu.dimension_semantics<arbitrary>], iteration_bounds = array<i64: 1>, scalar_prefetch = 0 : i64, scratch_operands = 12 : i64, tpu.core_type = #tpu.core_type<tc>, window_params = [{transform_indices = @transform_0, window_bounds = array<i64: 8, 8, 128>}, {pipeline_mode = #tpu.pipeline_mode<synchronous>, transform_indices = @transform_1, window_bounds = array<i64: 1, 512>}, {pipeline_mode = #tpu.pipeline_mode<synchronous>, transform_indices = @transform_2, window_bounds = array<i64: 1, 512>}, {pipeline_mode = #tpu.pipeline_mode<synchronous>, transform_indices = @transform_3, window_bounds = array<i64: 1, 128>}, {}, {}, {}, {}, {}, {pipeline_mode = #tpu.pipeline_mode<synchronous>, transform_indices = @transform_9, window_bounds = array<i64: 8, 128>}]} {
    %c0_i32 = arith.constant 0 : i32
    %0 = arith.cmpi eq, %arg0, %c0_i32 : i32
    %1 = arith.extui %0 : i1 to i32
    %c0_i32_0 = arith.constant 0 : i32
    %2 = arith.cmpi ne, %1, %c0_i32_0 : i32
    scf.if %2 {
      %c0_i32_305 = arith.constant 0 : i32
      %632 = tpu.memref_slice %arg22[%c0_i32_305] : memref<5x!tpu.dma_semaphore, #tpu.memory_space<semaphore_mem>> -> memref<1x!tpu.dma_semaphore, #tpu.memory_space<semaphore_mem>>
      %633 = tpu.memref_squeeze %632 : memref<1x!tpu.dma_semaphore, #tpu.memory_space<semaphore_mem>> -> memref<!tpu.dma_semaphore, #tpu.memory_space<semaphore_mem>>
      tpu.enqueue_dma source(%arg5 : memref<128x512xbf16, #tpu.memory_space<any>>) target(%arg11 : memref<128x512xbf16, #tpu.memory_space<vmem>>) target_semaphore(%633 : memref<!tpu.dma_semaphore, #tpu.memory_space<semaphore_mem>>)
      %c1_i32_306 = arith.constant 1 : i32
      %634 = tpu.memref_slice %arg22[%c1_i32_306] : memref<5x!tpu.dma_semaphore, #tpu.memory_space<semaphore_mem>> -> memref<1x!tpu.dma_semaphore, #tpu.memory_space<semaphore_mem>>
      %635 = tpu.memref_squeeze %634 : memref<1x!tpu.dma_semaphore, #tpu.memory_space<semaphore_mem>> -> memref<!tpu.dma_semaphore, #tpu.memory_space<semaphore_mem>>
      tpu.enqueue_dma source(%arg7 : memref<128x512xbf16, #tpu.memory_space<any>>) target(%arg13 : memref<128x512xbf16, #tpu.memory_space<vmem>>) target_semaphore(%635 : memref<!tpu.dma_semaphore, #tpu.memory_space<semaphore_mem>>)
      %c2_i32_307 = arith.constant 2 : i32
      %636 = tpu.memref_slice %arg22[%c2_i32_307] : memref<5x!tpu.dma_semaphore, #tpu.memory_space<semaphore_mem>> -> memref<1x!tpu.dma_semaphore, #tpu.memory_space<semaphore_mem>>
      %637 = tpu.memref_squeeze %636 : memref<1x!tpu.dma_semaphore, #tpu.memory_space<semaphore_mem>> -> memref<!tpu.dma_semaphore, #tpu.memory_space<semaphore_mem>>
      tpu.enqueue_dma source(%arg6 : memref<128x512xbf16, #tpu.memory_space<any>>) target(%arg12 : memref<128x512xbf16, #tpu.memory_space<vmem>>) target_semaphore(%637 : memref<!tpu.dma_semaphore, #tpu.memory_space<semaphore_mem>>)
      %c3_i32_308 = arith.constant 3 : i32
      %638 = tpu.memref_slice %arg22[%c3_i32_308] : memref<5x!tpu.dma_semaphore, #tpu.memory_space<semaphore_mem>> -> memref<1x!tpu.dma_semaphore, #tpu.memory_space<semaphore_mem>>
      %639 = tpu.memref_squeeze %638 : memref<1x!tpu.dma_semaphore, #tpu.memory_space<semaphore_mem>> -> memref<!tpu.dma_semaphore, #tpu.memory_space<semaphore_mem>>
      tpu.enqueue_dma source(%arg8 : memref<128x512xbf16, #tpu.memory_space<any>>) target(%arg14 : memref<128x512xbf16, #tpu.memory_space<vmem>>) target_semaphore(%639 : memref<!tpu.dma_semaphore, #tpu.memory_space<semaphore_mem>>)
      %c4_i32_309 = arith.constant 4 : i32
      %640 = tpu.memref_slice %arg22[%c4_i32_309] : memref<5x!tpu.dma_semaphore, #tpu.memory_space<semaphore_mem>> -> memref<1x!tpu.dma_semaphore, #tpu.memory_space<semaphore_mem>>
      %641 = tpu.memref_squeeze %640 : memref<1x!tpu.dma_semaphore, #tpu.memory_space<semaphore_mem>> -> memref<!tpu.dma_semaphore, #tpu.memory_space<semaphore_mem>>
      tpu.enqueue_dma source(%arg9 : memref<128x128xbf16, #tpu.memory_space<any>>) target(%arg15 : memref<128x128xbf16, #tpu.memory_space<vmem>>) target_semaphore(%641 : memref<!tpu.dma_semaphore, #tpu.memory_space<semaphore_mem>>)
      %c0_i32_310 = arith.constant 0 : i32
      %642 = tpu.memref_slice %arg22[%c0_i32_310] : memref<5x!tpu.dma_semaphore, #tpu.memory_space<semaphore_mem>> -> memref<1x!tpu.dma_semaphore, #tpu.memory_space<semaphore_mem>>
      %643 = tpu.memref_squeeze %642 : memref<1x!tpu.dma_semaphore, #tpu.memory_space<semaphore_mem>> -> memref<!tpu.dma_semaphore, #tpu.memory_space<semaphore_mem>>
      tpu.wait_dma2 semaphore(%643 : memref<!tpu.dma_semaphore, #tpu.memory_space<semaphore_mem>>) src(%arg5 : memref<128x512xbf16, #tpu.memory_space<any>>) dst(%arg11 : memref<128x512xbf16, #tpu.memory_space<vmem>>)
      %c1_i32_311 = arith.constant 1 : i32
      %644 = tpu.memref_slice %arg22[%c1_i32_311] : memref<5x!tpu.dma_semaphore, #tpu.memory_space<semaphore_mem>> -> memref<1x!tpu.dma_semaphore, #tpu.memory_space<semaphore_mem>>
      %645 = tpu.memref_squeeze %644 : memref<1x!tpu.dma_semaphore, #tpu.memory_space<semaphore_mem>> -> memref<!tpu.dma_semaphore, #tpu.memory_space<semaphore_mem>>
      tpu.wait_dma2 semaphore(%645 : memref<!tpu.dma_semaphore, #tpu.memory_space<semaphore_mem>>) src(%arg7 : memref<128x512xbf16, #tpu.memory_space<any>>) dst(%arg13 : memref<128x512xbf16, #tpu.memory_space<vmem>>)
      %c2_i32_312 = arith.constant 2 : i32
      %646 = tpu.memref_slice %arg22[%c2_i32_312] : memref<5x!tpu.dma_semaphore, #tpu.memory_space<semaphore_mem>> -> memref<1x!tpu.dma_semaphore, #tpu.memory_space<semaphore_mem>>
      %647 = tpu.memref_squeeze %646 : memref<1x!tpu.dma_semaphore, #tpu.memory_space<semaphore_mem>> -> memref<!tpu.dma_semaphore, #tpu.memory_space<semaphore_mem>>
      tpu.wait_dma2 semaphore(%647 : memref<!tpu.dma_semaphore, #tpu.memory_space<semaphore_mem>>) src(%arg6 : memref<128x512xbf16, #tpu.memory_space<any>>) dst(%arg12 : memref<128x512xbf16, #tpu.memory_space<vmem>>)
      %c3_i32_313 = arith.constant 3 : i32
      %648 = tpu.memref_slice %arg22[%c3_i32_313] : memref<5x!tpu.dma_semaphore, #tpu.memory_space<semaphore_mem>> -> memref<1x!tpu.dma_semaphore, #tpu.memory_space<semaphore_mem>>
      %649 = tpu.memref_squeeze %648 : memref<1x!tpu.dma_semaphore, #tpu.memory_space<semaphore_mem>> -> memref<!tpu.dma_semaphore, #tpu.memory_space<semaphore_mem>>
      tpu.wait_dma2 semaphore(%649 : memref<!tpu.dma_semaphore, #tpu.memory_space<semaphore_mem>>) src(%arg8 : memref<128x512xbf16, #tpu.memory_space<any>>) dst(%arg14 : memref<128x512xbf16, #tpu.memory_space<vmem>>)
      %c4_i32_314 = arith.constant 4 : i32
      %650 = tpu.memref_slice %arg22[%c4_i32_314] : memref<5x!tpu.dma_semaphore, #tpu.memory_space<semaphore_mem>> -> memref<1x!tpu.dma_semaphore, #tpu.memory_space<semaphore_mem>>
      %651 = tpu.memref_squeeze %650 : memref<1x!tpu.dma_semaphore, #tpu.memory_space<semaphore_mem>> -> memref<!tpu.dma_semaphore, #tpu.memory_space<semaphore_mem>>
      tpu.wait_dma2 semaphore(%651 : memref<!tpu.dma_semaphore, #tpu.memory_space<semaphore_mem>>) src(%arg9 : memref<128x128xbf16, #tpu.memory_space<any>>) dst(%arg15 : memref<128x128xbf16, #tpu.memory_space<vmem>>)
      %cst_315 = arith.constant 0.000000e+00 : bf16
      %652 = vector.broadcast %cst_315 : bf16 to vector<8x128xbf16>
      %c0_316 = arith.constant 0 : index
      %c0_317 = arith.constant 0 : index
      %653 = vector.load %arg18[%c0_316, %c0_317] : memref<8x128xbf16, #tpu.memory_space<vmem>>, vector<8x128xbf16>
      tpu.vector_store %arg18[%c0_316, %c0_317], %652 {strides = array<i32>} : memref<8x128xbf16, #tpu.memory_space<vmem>>, vector<8x128xbf16>,
      %cst_318 = arith.constant 0.000000e+00 : f32
      %654 = vector.broadcast %cst_318 : f32 to vector<8x128xf32>
      %c0_319 = arith.constant 0 : index
      %c0_320 = arith.constant 0 : index
      %655 = vector.load %arg20[%c0_319, %c0_320] : memref<8x128xf32, #tpu.memory_space<vmem>>, vector<8x128xf32>
      tpu.vector_store %arg20[%c0_319, %c0_320], %654 {strides = array<i32>} : memref<8x128xf32, #tpu.memory_space<vmem>>, vector<8x128xf32>,
      %cst_321 = arith.constant 0.000000e+00 : bf16
      %656 = vector.broadcast %cst_321 : bf16 to vector<8x128xbf16>
      %c0_322 = arith.constant 0 : index
      %c0_323 = arith.constant 0 : index
      %657 = vector.load %arg19[%c0_322, %c0_323] : memref<8x128xbf16, #tpu.memory_space<vmem>>, vector<8x128xbf16>
      tpu.vector_store %arg19[%c0_322, %c0_323], %656 {strides = array<i32>} : memref<8x128xbf16, #tpu.memory_space<vmem>>, vector<8x128xbf16>,
      %cst_324 = arith.constant 0.000000e+00 : f32
      %658 = vector.broadcast %cst_324 : f32 to vector<8x128xf32>
      %c0_325 = arith.constant 0 : index
      %c0_326 = arith.constant 0 : index
      %659 = vector.load %arg21[%c0_325, %c0_326] : memref<8x128xf32, #tpu.memory_space<vmem>>, vector<8x128xf32>
      tpu.vector_store %arg21[%c0_325, %c0_326], %658 {strides = array<i32>} : memref<8x128xf32, #tpu.memory_space<vmem>>, vector<8x128xf32>,
    } else {
    }
    %c0 = arith.constant 0 : index
    %c0_1 = arith.constant 0 : index
    %c0_2 = arith.constant 0 : index
    %3 = vector.load %arg1[%c0, %c0_1, %c0_2] : memref<8x8x128xbf16, #tpu.memory_space<vmem>>, vector<8x8x128xbf16>
    %4 = vector.shape_cast %3 : vector<8x8x128xbf16> to vector<64x128xbf16>
    %c0_3 = arith.constant 0 : index
    %c0_4 = arith.constant 0 : index
    %5 = vector.load %arg11[%c0_3, %c0_4] : memref<128x512xbf16, #tpu.memory_space<vmem>>, vector<128x512xbf16>
    %cst = arith.constant dense<0.000000e+00> : vector<64x512xf32>
    %6 = tpu.matmul %4, %5, %cst {dimension_numbers = #tpu.dot_dimension_numbers<[1], [0], [0], [1], [0, 0, 1, 1], [], []>} : vector<64x128xbf16>, vector<128x512xbf16>, vector<64x512xf32> -> vector<64x512xf32>
    %c0_5 = arith.constant 0 : index
    %c0_6 = arith.constant 0 : index
    %7 = vector.load %arg2[%c0_5, %c0_6] : memref<1x512xf32, #tpu.memory_space<vmem>>, vector<1x512xf32>
    %8 = vector.broadcast %7 : vector<1x512xf32> to vector<64x512xf32>
    %9 = arith.addf %6, %8 : vector<64x512xf32>
    %10 = vector.shape_cast %9 : vector<64x512xf32> to vector<8x8x512xf32>
    %c0_7 = arith.constant 0 : index
    %c0_8 = arith.constant 0 : index
    %c0_9 = arith.constant 0 : index
    %11 = vector.load %arg16[%c0_7, %c0_8, %c0_9] : memref<8x8x512xf32, #tpu.memory_space<vmem>>, vector<8x8x512xf32>
    tpu.vector_store %arg16[%c0_7, %c0_8, %c0_9], %10 {strides = array<i32>} : memref<8x8x512xf32, #tpu.memory_space<vmem>>, vector<8x8x512xf32>,
    %c0_i32_10 = arith.constant 0 : i32
    %c0_11 = arith.constant 0 : index
    %c0_12 = arith.constant 0 : index
    %12 = vector.load %arg18[%c0_11, %c0_12] : memref<8x128xbf16, #tpu.memory_space<vmem>>, vector<8x128xbf16>
    %c0_13 = arith.constant 0 : index
    %c0_14 = arith.constant 0 : index
    %13 = vector.load %arg20[%c0_13, %c0_14] : memref<8x128xf32, #tpu.memory_space<vmem>>, vector<8x128xf32>
    %14 = arith.index_cast %c0_i32_10 : i32 to index
    %c0_15 = arith.constant 0 : index
    %c0_16 = arith.constant 0 : index
    %15 = vector.load %arg16[%14, %c0_15, %c0_16] : memref<8x8x512xf32, #tpu.memory_space<vmem>>, vector<1x8x512xf32>
    %16 = vector.shape_cast %15 : vector<1x8x512xf32> to vector<8x512xf32>
    %c0_17 = arith.constant 0 : index
    %c0_18 = arith.constant 0 : index
    %17 = vector.load %arg13[%c0_17, %c0_18] : memref<128x512xbf16, #tpu.memory_space<vmem>>, vector<128x512xbf16>
    %cst_19 = arith.constant dense<0.000000e+00> : vector<8x512xf32>
    %18 = tpu.matmul %12, %17, %cst_19 {dimension_numbers = #tpu.dot_dimension_numbers<[1], [0], [0], [1], [0, 0, 1, 1], [], []>} : vector<8x128xbf16>, vector<128x512xbf16>, vector<8x512xf32> -> vector<8x512xf32>
    %19 = arith.addf %16, %18 : vector<8x512xf32>
    %20 = vector.extract_strided_slice %19 {offsets = [0, 0], sizes = [8, 128], strides = [1, 1]} : vector<8x512xf32> to vector<8x128xf32>
    %21 = arith.negf %20 : vector<8x128xf32>
    %22 = math.exp %21 : vector<8x128xf32>
    %cst_20 = arith.constant 1.000000e+00 : f32
    %23 = vector.broadcast %cst_20 : f32 to vector<8x128xf32>
    %24 = arith.addf %23, %22 : vector<8x128xf32>
    %25 = arith.divf %23, %24 : vector<8x128xf32>
    %26 = vector.extract_strided_slice %19 {offsets = [0, 128], sizes = [8, 128], strides = [1, 1]} : vector<8x512xf32> to vector<8x128xf32>
    %27 = arith.negf %26 : vector<8x128xf32>
    %28 = math.exp %27 : vector<8x128xf32>
    %cst_21 = arith.constant 1.000000e+00 : f32
    %29 = vector.broadcast %cst_21 : f32 to vector<8x128xf32>
    %30 = arith.addf %29, %28 : vector<8x128xf32>
    %31 = arith.divf %29, %30 : vector<8x128xf32>
    %32 = vector.extract_strided_slice %19 {offsets = [0, 256], sizes = [8, 128], strides = [1, 1]} : vector<8x512xf32> to vector<8x128xf32>
    %33 = math.tanh %32 : vector<8x128xf32>
    %34 = vector.extract_strided_slice %19 {offsets = [0, 384], sizes = [8, 128], strides = [1, 1]} : vector<8x512xf32> to vector<8x128xf32>
    %35 = arith.negf %34 : vector<8x128xf32>
    %36 = math.exp %35 : vector<8x128xf32>
    %cst_22 = arith.constant 1.000000e+00 : f32
    %37 = vector.broadcast %cst_22 : f32 to vector<8x128xf32>
    %38 = arith.addf %37, %36 : vector<8x128xf32>
    %39 = arith.divf %37, %38 : vector<8x128xf32>
    %40 = arith.mulf %31, %13 : vector<8x128xf32>
    %41 = arith.mulf %25, %33 : vector<8x128xf32>
    %42 = arith.addf %40, %41 : vector<8x128xf32>
    %43 = math.tanh %42 : vector<8x128xf32>
    %44 = arith.mulf %39, %43 : vector<8x128xf32>
    %45 = arith.truncf %44 : vector<8x128xf32> to vector<8x128xbf16>
    %c0_23 = arith.constant 0 : index
    %c0_24 = arith.constant 0 : index
    %46 = vector.load %arg20[%c0_23, %c0_24] : memref<8x128xf32, #tpu.memory_space<vmem>>, vector<8x128xf32>
    tpu.vector_store %arg20[%c0_23, %c0_24], %42 {strides = array<i32>} : memref<8x128xf32, #tpu.memory_space<vmem>>, vector<8x128xf32>,
    %c0_25 = arith.constant 0 : index
    %c0_26 = arith.constant 0 : index
    %47 = vector.load %arg18[%c0_25, %c0_26] : memref<8x128xbf16, #tpu.memory_space<vmem>>, vector<8x128xbf16>
    tpu.vector_store %arg18[%c0_25, %c0_26], %45 {strides = array<i32>} : memref<8x128xbf16, #tpu.memory_space<vmem>>, vector<8x128xbf16>,
    %48 = arith.index_cast %c0_i32_10 : i32 to index
    %c0_27 = arith.constant 0 : index
    %c0_28 = arith.constant 0 : index
    %49 = vector.load %arg17[%48, %c0_27, %c0_28] : memref<8x8x128xbf16, #tpu.memory_space<vmem>>, vector<1x8x128xbf16>
    %50 = vector.shape_cast %49 : vector<1x8x128xbf16> to vector<8x128xbf16>
    %51 = vector.shape_cast %45 : vector<8x128xbf16> to vector<1x8x128xbf16>
    tpu.vector_store %arg17[%48, %c0_27, %c0_28], %51 {strides = array<i32>} : memref<8x8x128xbf16, #tpu.memory_space<vmem>>, vector<1x8x128xbf16>,
    %c1_i32 = arith.constant 1 : i32
    %c0_29 = arith.constant 0 : index
    %c0_30 = arith.constant 0 : index
    %52 = vector.load %arg18[%c0_29, %c0_30] : memref<8x128xbf16, #tpu.memory_space<vmem>>, vector<8x128xbf16>
    %c0_31 = arith.constant 0 : index
    %c0_32 = arith.constant 0 : index
    %53 = vector.load %arg20[%c0_31, %c0_32] : memref<8x128xf32, #tpu.memory_space<vmem>>, vector<8x128xf32>
    %54 = arith.index_cast %c1_i32 : i32 to index
    %c0_33 = arith.constant 0 : index
    %c0_34 = arith.constant 0 : index
    %55 = vector.load %arg16[%54, %c0_33, %c0_34] : memref<8x8x512xf32, #tpu.memory_space<vmem>>, vector<1x8x512xf32>
    %56 = vector.shape_cast %55 : vector<1x8x512xf32> to vector<8x512xf32>
    %c0_35 = arith.constant 0 : index
    %c0_36 = arith.constant 0 : index
    %57 = vector.load %arg13[%c0_35, %c0_36] : memref<128x512xbf16, #tpu.memory_space<vmem>>, vector<128x512xbf16>
    %cst_37 = arith.constant dense<0.000000e+00> : vector<8x512xf32>
    %58 = tpu.matmul %52, %57, %cst_37 {dimension_numbers = #tpu.dot_dimension_numbers<[1], [0], [0], [1], [0, 0, 1, 1], [], []>} : vector<8x128xbf16>, vector<128x512xbf16>, vector<8x512xf32> -> vector<8x512xf32>
    %59 = arith.addf %56, %58 : vector<8x512xf32>
    %60 = vector.extract_strided_slice %59 {offsets = [0, 0], sizes = [8, 128], strides = [1, 1]} : vector<8x512xf32> to vector<8x128xf32>
    %61 = arith.negf %60 : vector<8x128xf32>
    %62 = math.exp %61 : vector<8x128xf32>
    %cst_38 = arith.constant 1.000000e+00 : f32
    %63 = vector.broadcast %cst_38 : f32 to vector<8x128xf32>
    %64 = arith.addf %63, %62 : vector<8x128xf32>
    %65 = arith.divf %63, %64 : vector<8x128xf32>
    %66 = vector.extract_strided_slice %59 {offsets = [0, 128], sizes = [8, 128], strides = [1, 1]} : vector<8x512xf32> to vector<8x128xf32>
    %67 = arith.negf %66 : vector<8x128xf32>
    %68 = math.exp %67 : vector<8x128xf32>
    %cst_39 = arith.constant 1.000000e+00 : f32
    %69 = vector.broadcast %cst_39 : f32 to vector<8x128xf32>
    %70 = arith.addf %69, %68 : vector<8x128xf32>
    %71 = arith.divf %69, %70 : vector<8x128xf32>
    %72 = vector.extract_strided_slice %59 {offsets = [0, 256], sizes = [8, 128], strides = [1, 1]} : vector<8x512xf32> to vector<8x128xf32>
    %73 = math.tanh %72 : vector<8x128xf32>
    %74 = vector.extract_strided_slice %59 {offsets = [0, 384], sizes = [8, 128], strides = [1, 1]} : vector<8x512xf32> to vector<8x128xf32>
    %75 = arith.negf %74 : vector<8x128xf32>
    %76 = math.exp %75 : vector<8x128xf32>
    %cst_40 = arith.constant 1.000000e+00 : f32
    %77 = vector.broadcast %cst_40 : f32 to vector<8x128xf32>
    %78 = arith.addf %77, %76 : vector<8x128xf32>
    %79 = arith.divf %77, %78 : vector<8x128xf32>
    %80 = arith.mulf %71, %53 : vector<8x128xf32>
    %81 = arith.mulf %65, %73 : vector<8x128xf32>
    %82 = arith.addf %80, %81 : vector<8x128xf32>
    %83 = math.tanh %82 : vector<8x128xf32>
    %84 = arith.mulf %79, %83 : vector<8x128xf32>
    %85 = arith.truncf %84 : vector<8x128xf32> to vector<8x128xbf16>
    %c0_41 = arith.constant 0 : index
    %c0_42 = arith.constant 0 : index
    %86 = vector.load %arg20[%c0_41, %c0_42] : memref<8x128xf32, #tpu.memory_space<vmem>>, vector<8x128xf32>
    tpu.vector_store %arg20[%c0_41, %c0_42], %82 {strides = array<i32>} : memref<8x128xf32, #tpu.memory_space<vmem>>, vector<8x128xf32>,
    %c0_43 = arith.constant 0 : index
    %c0_44 = arith.constant 0 : index
    %87 = vector.load %arg18[%c0_43, %c0_44] : memref<8x128xbf16, #tpu.memory_space<vmem>>, vector<8x128xbf16>
    tpu.vector_store %arg18[%c0_43, %c0_44], %85 {strides = array<i32>} : memref<8x128xbf16, #tpu.memory_space<vmem>>, vector<8x128xbf16>,
    %88 = arith.index_cast %c1_i32 : i32 to index
    %c0_45 = arith.constant 0 : index
    %c0_46 = arith.constant 0 : index
    %89 = vector.load %arg17[%88, %c0_45, %c0_46] : memref<8x8x128xbf16, #tpu.memory_space<vmem>>, vector<1x8x128xbf16>
    %90 = vector.shape_cast %89 : vector<1x8x128xbf16> to vector<8x128xbf16>
    %91 = vector.shape_cast %85 : vector<8x128xbf16> to vector<1x8x128xbf16>
    tpu.vector_store %arg17[%88, %c0_45, %c0_46], %91 {strides = array<i32>} : memref<8x8x128xbf16, #tpu.memory_space<vmem>>, vector<1x8x128xbf16>,
    %c2_i32 = arith.constant 2 : i32
    %c0_47 = arith.constant 0 : index
    %c0_48 = arith.constant 0 : index
    %92 = vector.load %arg18[%c0_47, %c0_48] : memref<8x128xbf16, #tpu.memory_space<vmem>>, vector<8x128xbf16>
    %c0_49 = arith.constant 0 : index
    %c0_50 = arith.constant 0 : index
    %93 = vector.load %arg20[%c0_49, %c0_50] : memref<8x128xf32, #tpu.memory_space<vmem>>, vector<8x128xf32>
    %94 = arith.index_cast %c2_i32 : i32 to index
    %c0_51 = arith.constant 0 : index
    %c0_52 = arith.constant 0 : index
    %95 = vector.load %arg16[%94, %c0_51, %c0_52] : memref<8x8x512xf32, #tpu.memory_space<vmem>>, vector<1x8x512xf32>
    %96 = vector.shape_cast %95 : vector<1x8x512xf32> to vector<8x512xf32>
    %c0_53 = arith.constant 0 : index
    %c0_54 = arith.constant 0 : index
    %97 = vector.load %arg13[%c0_53, %c0_54] : memref<128x512xbf16, #tpu.memory_space<vmem>>, vector<128x512xbf16>
    %cst_55 = arith.constant dense<0.000000e+00> : vector<8x512xf32>
    %98 = tpu.matmul %92, %97, %cst_55 {dimension_numbers = #tpu.dot_dimension_numbers<[1], [0], [0], [1], [0, 0, 1, 1], [], []>} : vector<8x128xbf16>, vector<128x512xbf16>, vector<8x512xf32> -> vector<8x512xf32>
    %99 = arith.addf %96, %98 : vector<8x512xf32>
    %100 = vector.extract_strided_slice %99 {offsets = [0, 0], sizes = [8, 128], strides = [1, 1]} : vector<8x512xf32> to vector<8x128xf32>
    %101 = arith.negf %100 : vector<8x128xf32>
    %102 = math.exp %101 : vector<8x128xf32>
    %cst_56 = arith.constant 1.000000e+00 : f32
    %103 = vector.broadcast %cst_56 : f32 to vector<8x128xf32>
    %104 = arith.addf %103, %102 : vector<8x128xf32>
    %105 = arith.divf %103, %104 : vector<8x128xf32>
    %106 = vector.extract_strided_slice %99 {offsets = [0, 128], sizes = [8, 128], strides = [1, 1]} : vector<8x512xf32> to vector<8x128xf32>
    %107 = arith.negf %106 : vector<8x128xf32>
    %108 = math.exp %107 : vector<8x128xf32>
    %cst_57 = arith.constant 1.000000e+00 : f32
    %109 = vector.broadcast %cst_57 : f32 to vector<8x128xf32>
    %110 = arith.addf %109, %108 : vector<8x128xf32>
    %111 = arith.divf %109, %110 : vector<8x128xf32>
    %112 = vector.extract_strided_slice %99 {offsets = [0, 256], sizes = [8, 128], strides = [1, 1]} : vector<8x512xf32> to vector<8x128xf32>
    %113 = math.tanh %112 : vector<8x128xf32>
    %114 = vector.extract_strided_slice %99 {offsets = [0, 384], sizes = [8, 128], strides = [1, 1]} : vector<8x512xf32> to vector<8x128xf32>
    %115 = arith.negf %114 : vector<8x128xf32>
    %116 = math.exp %115 : vector<8x128xf32>
    %cst_58 = arith.constant 1.000000e+00 : f32
    %117 = vector.broadcast %cst_58 : f32 to vector<8x128xf32>
    %118 = arith.addf %117, %116 : vector<8x128xf32>
    %119 = arith.divf %117, %118 : vector<8x128xf32>
    %120 = arith.mulf %111, %93 : vector<8x128xf32>
    %121 = arith.mulf %105, %113 : vector<8x128xf32>
    %122 = arith.addf %120, %121 : vector<8x128xf32>
    %123 = math.tanh %122 : vector<8x128xf32>
    %124 = arith.mulf %119, %123 : vector<8x128xf32>
    %125 = arith.truncf %124 : vector<8x128xf32> to vector<8x128xbf16>
    %c0_59 = arith.constant 0 : index
    %c0_60 = arith.constant 0 : index
    %126 = vector.load %arg20[%c0_59, %c0_60] : memref<8x128xf32, #tpu.memory_space<vmem>>, vector<8x128xf32>
    tpu.vector_store %arg20[%c0_59, %c0_60], %122 {strides = array<i32>} : memref<8x128xf32, #tpu.memory_space<vmem>>, vector<8x128xf32>,
    %c0_61 = arith.constant 0 : index
    %c0_62 = arith.constant 0 : index
    %127 = vector.load %arg18[%c0_61, %c0_62] : memref<8x128xbf16, #tpu.memory_space<vmem>>, vector<8x128xbf16>
    tpu.vector_store %arg18[%c0_61, %c0_62], %125 {strides = array<i32>} : memref<8x128xbf16, #tpu.memory_space<vmem>>, vector<8x128xbf16>,
    %128 = arith.index_cast %c2_i32 : i32 to index
    %c0_63 = arith.constant 0 : index
    %c0_64 = arith.constant 0 : index
    %129 = vector.load %arg17[%128, %c0_63, %c0_64] : memref<8x8x128xbf16, #tpu.memory_space<vmem>>, vector<1x8x128xbf16>
    %130 = vector.shape_cast %129 : vector<1x8x128xbf16> to vector<8x128xbf16>
    %131 = vector.shape_cast %125 : vector<8x128xbf16> to vector<1x8x128xbf16>
    tpu.vector_store %arg17[%128, %c0_63, %c0_64], %131 {strides = array<i32>} : memref<8x8x128xbf16, #tpu.memory_space<vmem>>, vector<1x8x128xbf16>,
    %c3_i32 = arith.constant 3 : i32
    %c0_65 = arith.constant 0 : index
    %c0_66 = arith.constant 0 : index
    %132 = vector.load %arg18[%c0_65, %c0_66] : memref<8x128xbf16, #tpu.memory_space<vmem>>, vector<8x128xbf16>
    %c0_67 = arith.constant 0 : index
    %c0_68 = arith.constant 0 : index
    %133 = vector.load %arg20[%c0_67, %c0_68] : memref<8x128xf32, #tpu.memory_space<vmem>>, vector<8x128xf32>
    %134 = arith.index_cast %c3_i32 : i32 to index
    %c0_69 = arith.constant 0 : index
    %c0_70 = arith.constant 0 : index
    %135 = vector.load %arg16[%134, %c0_69, %c0_70] : memref<8x8x512xf32, #tpu.memory_space<vmem>>, vector<1x8x512xf32>
    %136 = vector.shape_cast %135 : vector<1x8x512xf32> to vector<8x512xf32>
    %c0_71 = arith.constant 0 : index
    %c0_72 = arith.constant 0 : index
    %137 = vector.load %arg13[%c0_71, %c0_72] : memref<128x512xbf16, #tpu.memory_space<vmem>>, vector<128x512xbf16>
    %cst_73 = arith.constant dense<0.000000e+00> : vector<8x512xf32>
    %138 = tpu.matmul %132, %137, %cst_73 {dimension_numbers = #tpu.dot_dimension_numbers<[1], [0], [0], [1], [0, 0, 1, 1], [], []>} : vector<8x128xbf16>, vector<128x512xbf16>, vector<8x512xf32> -> vector<8x512xf32>
    %139 = arith.addf %136, %138 : vector<8x512xf32>
    %140 = vector.extract_strided_slice %139 {offsets = [0, 0], sizes = [8, 128], strides = [1, 1]} : vector<8x512xf32> to vector<8x128xf32>
    %141 = arith.negf %140 : vector<8x128xf32>
    %142 = math.exp %141 : vector<8x128xf32>
    %cst_74 = arith.constant 1.000000e+00 : f32
    %143 = vector.broadcast %cst_74 : f32 to vector<8x128xf32>
    %144 = arith.addf %143, %142 : vector<8x128xf32>
    %145 = arith.divf %143, %144 : vector<8x128xf32>
    %146 = vector.extract_strided_slice %139 {offsets = [0, 128], sizes = [8, 128], strides = [1, 1]} : vector<8x512xf32> to vector<8x128xf32>
    %147 = arith.negf %146 : vector<8x128xf32>
    %148 = math.exp %147 : vector<8x128xf32>
    %cst_75 = arith.constant 1.000000e+00 : f32
    %149 = vector.broadcast %cst_75 : f32 to vector<8x128xf32>
    %150 = arith.addf %149, %148 : vector<8x128xf32>
    %151 = arith.divf %149, %150 : vector<8x128xf32>
    %152 = vector.extract_strided_slice %139 {offsets = [0, 256], sizes = [8, 128], strides = [1, 1]} : vector<8x512xf32> to vector<8x128xf32>
    %153 = math.tanh %152 : vector<8x128xf32>
    %154 = vector.extract_strided_slice %139 {offsets = [0, 384], sizes = [8, 128], strides = [1, 1]} : vector<8x512xf32> to vector<8x128xf32>
    %155 = arith.negf %154 : vector<8x128xf32>
    %156 = math.exp %155 : vector<8x128xf32>
    %cst_76 = arith.constant 1.000000e+00 : f32
    %157 = vector.broadcast %cst_76 : f32 to vector<8x128xf32>
    %158 = arith.addf %157, %156 : vector<8x128xf32>
    %159 = arith.divf %157, %158 : vector<8x128xf32>
    %160 = arith.mulf %151, %133 : vector<8x128xf32>
    %161 = arith.mulf %145, %153 : vector<8x128xf32>
    %162 = arith.addf %160, %161 : vector<8x128xf32>
    %163 = math.tanh %162 : vector<8x128xf32>
    %164 = arith.mulf %159, %163 : vector<8x128xf32>
    %165 = arith.truncf %164 : vector<8x128xf32> to vector<8x128xbf16>
    %c0_77 = arith.constant 0 : index
    %c0_78 = arith.constant 0 : index
    %166 = vector.load %arg20[%c0_77, %c0_78] : memref<8x128xf32, #tpu.memory_space<vmem>>, vector<8x128xf32>
    tpu.vector_store %arg20[%c0_77, %c0_78], %162 {strides = array<i32>} : memref<8x128xf32, #tpu.memory_space<vmem>>, vector<8x128xf32>,
    %c0_79 = arith.constant 0 : index
    %c0_80 = arith.constant 0 : index
    %167 = vector.load %arg18[%c0_79, %c0_80] : memref<8x128xbf16, #tpu.memory_space<vmem>>, vector<8x128xbf16>
    tpu.vector_store %arg18[%c0_79, %c0_80], %165 {strides = array<i32>} : memref<8x128xbf16, #tpu.memory_space<vmem>>, vector<8x128xbf16>,
    %168 = arith.index_cast %c3_i32 : i32 to index
    %c0_81 = arith.constant 0 : index
    %c0_82 = arith.constant 0 : index
    %169 = vector.load %arg17[%168, %c0_81, %c0_82] : memref<8x8x128xbf16, #tpu.memory_space<vmem>>, vector<1x8x128xbf16>
    %170 = vector.shape_cast %169 : vector<1x8x128xbf16> to vector<8x128xbf16>
    %171 = vector.shape_cast %165 : vector<8x128xbf16> to vector<1x8x128xbf16>
    tpu.vector_store %arg17[%168, %c0_81, %c0_82], %171 {strides = array<i32>} : memref<8x8x128xbf16, #tpu.memory_space<vmem>>, vector<1x8x128xbf16>,
    %c4_i32 = arith.constant 4 : i32
    %c0_83 = arith.constant 0 : index
    %c0_84 = arith.constant 0 : index
    %172 = vector.load %arg18[%c0_83, %c0_84] : memref<8x128xbf16, #tpu.memory_space<vmem>>, vector<8x128xbf16>
    %c0_85 = arith.constant 0 : index
    %c0_86 = arith.constant 0 : index
    %173 = vector.load %arg20[%c0_85, %c0_86] : memref<8x128xf32, #tpu.memory_space<vmem>>, vector<8x128xf32>
    %174 = arith.index_cast %c4_i32 : i32 to index
    %c0_87 = arith.constant 0 : index
    %c0_88 = arith.constant 0 : index
    %175 = vector.load %arg16[%174, %c0_87, %c0_88] : memref<8x8x512xf32, #tpu.memory_space<vmem>>, vector<1x8x512xf32>
    %176 = vector.shape_cast %175 : vector<1x8x512xf32> to vector<8x512xf32>
    %c0_89 = arith.constant 0 : index
    %c0_90 = arith.constant 0 : index
    %177 = vector.load %arg13[%c0_89, %c0_90] : memref<128x512xbf16, #tpu.memory_space<vmem>>, vector<128x512xbf16>
    %cst_91 = arith.constant dense<0.000000e+00> : vector<8x512xf32>
    %178 = tpu.matmul %172, %177, %cst_91 {dimension_numbers = #tpu.dot_dimension_numbers<[1], [0], [0], [1], [0, 0, 1, 1], [], []>} : vector<8x128xbf16>, vector<128x512xbf16>, vector<8x512xf32> -> vector<8x512xf32>
    %179 = arith.addf %176, %178 : vector<8x512xf32>
    %180 = vector.extract_strided_slice %179 {offsets = [0, 0], sizes = [8, 128], strides = [1, 1]} : vector<8x512xf32> to vector<8x128xf32>
    %181 = arith.negf %180 : vector<8x128xf32>
    %182 = math.exp %181 : vector<8x128xf32>
    %cst_92 = arith.constant 1.000000e+00 : f32
    %183 = vector.broadcast %cst_92 : f32 to vector<8x128xf32>
    %184 = arith.addf %183, %182 : vector<8x128xf32>
    %185 = arith.divf %183, %184 : vector<8x128xf32>
    %186 = vector.extract_strided_slice %179 {offsets = [0, 128], sizes = [8, 128], strides = [1, 1]} : vector<8x512xf32> to vector<8x128xf32>
    %187 = arith.negf %186 : vector<8x128xf32>
    %188 = math.exp %187 : vector<8x128xf32>
    %cst_93 = arith.constant 1.000000e+00 : f32
    %189 = vector.broadcast %cst_93 : f32 to vector<8x128xf32>
    %190 = arith.addf %189, %188 : vector<8x128xf32>
    %191 = arith.divf %189, %190 : vector<8x128xf32>
    %192 = vector.extract_strided_slice %179 {offsets = [0, 256], sizes = [8, 128], strides = [1, 1]} : vector<8x512xf32> to vector<8x128xf32>
    %193 = math.tanh %192 : vector<8x128xf32>
    %194 = vector.extract_strided_slice %179 {offsets = [0, 384], sizes = [8, 128], strides = [1, 1]} : vector<8x512xf32> to vector<8x128xf32>
    %195 = arith.negf %194 : vector<8x128xf32>
    %196 = math.exp %195 : vector<8x128xf32>
    %cst_94 = arith.constant 1.000000e+00 : f32
    %197 = vector.broadcast %cst_94 : f32 to vector<8x128xf32>
    %198 = arith.addf %197, %196 : vector<8x128xf32>
    %199 = arith.divf %197, %198 : vector<8x128xf32>
    %200 = arith.mulf %191, %173 : vector<8x128xf32>
    %201 = arith.mulf %185, %193 : vector<8x128xf32>
    %202 = arith.addf %200, %201 : vector<8x128xf32>
    %203 = math.tanh %202 : vector<8x128xf32>
    %204 = arith.mulf %199, %203 : vector<8x128xf32>
    %205 = arith.truncf %204 : vector<8x128xf32> to vector<8x128xbf16>
    %c0_95 = arith.constant 0 : index
    %c0_96 = arith.constant 0 : index
    %206 = vector.load %arg20[%c0_95, %c0_96] : memref<8x128xf32, #tpu.memory_space<vmem>>, vector<8x128xf32>
    tpu.vector_store %arg20[%c0_95, %c0_96], %202 {strides = array<i32>} : memref<8x128xf32, #tpu.memory_space<vmem>>, vector<8x128xf32>,
    %c0_97 = arith.constant 0 : index
    %c0_98 = arith.constant 0 : index
    %207 = vector.load %arg18[%c0_97, %c0_98] : memref<8x128xbf16, #tpu.memory_space<vmem>>, vector<8x128xbf16>
    tpu.vector_store %arg18[%c0_97, %c0_98], %205 {strides = array<i32>} : memref<8x128xbf16, #tpu.memory_space<vmem>>, vector<8x128xbf16>,
    %208 = arith.index_cast %c4_i32 : i32 to index
    %c0_99 = arith.constant 0 : index
    %c0_100 = arith.constant 0 : index
    %209 = vector.load %arg17[%208, %c0_99, %c0_100] : memref<8x8x128xbf16, #tpu.memory_space<vmem>>, vector<1x8x128xbf16>
    %210 = vector.shape_cast %209 : vector<1x8x128xbf16> to vector<8x128xbf16>
    %211 = vector.shape_cast %205 : vector<8x128xbf16> to vector<1x8x128xbf16>
    tpu.vector_store %arg17[%208, %c0_99, %c0_100], %211 {strides = array<i32>} : memref<8x8x128xbf16, #tpu.memory_space<vmem>>, vector<1x8x128xbf16>,
    %c5_i32 = arith.constant 5 : i32
    %c0_101 = arith.constant 0 : index
    %c0_102 = arith.constant 0 : index
    %212 = vector.load %arg18[%c0_101, %c0_102] : memref<8x128xbf16, #tpu.memory_space<vmem>>, vector<8x128xbf16>
    %c0_103 = arith.constant 0 : index
    %c0_104 = arith.constant 0 : index
    %213 = vector.load %arg20[%c0_103, %c0_104] : memref<8x128xf32, #tpu.memory_space<vmem>>, vector<8x128xf32>
    %214 = arith.index_cast %c5_i32 : i32 to index
    %c0_105 = arith.constant 0 : index
    %c0_106 = arith.constant 0 : index
    %215 = vector.load %arg16[%214, %c0_105, %c0_106] : memref<8x8x512xf32, #tpu.memory_space<vmem>>, vector<1x8x512xf32>
    %216 = vector.shape_cast %215 : vector<1x8x512xf32> to vector<8x512xf32>
    %c0_107 = arith.constant 0 : index
    %c0_108 = arith.constant 0 : index
    %217 = vector.load %arg13[%c0_107, %c0_108] : memref<128x512xbf16, #tpu.memory_space<vmem>>, vector<128x512xbf16>
    %cst_109 = arith.constant dense<0.000000e+00> : vector<8x512xf32>
    %218 = tpu.matmul %212, %217, %cst_109 {dimension_numbers = #tpu.dot_dimension_numbers<[1], [0], [0], [1], [0, 0, 1, 1], [], []>} : vector<8x128xbf16>, vector<128x512xbf16>, vector<8x512xf32> -> vector<8x512xf32>
    %219 = arith.addf %216, %218 : vector<8x512xf32>
    %220 = vector.extract_strided_slice %219 {offsets = [0, 0], sizes = [8, 128], strides = [1, 1]} : vector<8x512xf32> to vector<8x128xf32>
    %221 = arith.negf %220 : vector<8x128xf32>
    %222 = math.exp %221 : vector<8x128xf32>
    %cst_110 = arith.constant 1.000000e+00 : f32
    %223 = vector.broadcast %cst_110 : f32 to vector<8x128xf32>
    %224 = arith.addf %223, %222 : vector<8x128xf32>
    %225 = arith.divf %223, %224 : vector<8x128xf32>
    %226 = vector.extract_strided_slice %219 {offsets = [0, 128], sizes = [8, 128], strides = [1, 1]} : vector<8x512xf32> to vector<8x128xf32>
    %227 = arith.negf %226 : vector<8x128xf32>
    %228 = math.exp %227 : vector<8x128xf32>
    %cst_111 = arith.constant 1.000000e+00 : f32
    %229 = vector.broadcast %cst_111 : f32 to vector<8x128xf32>
    %230 = arith.addf %229, %228 : vector<8x128xf32>
    %231 = arith.divf %229, %230 : vector<8x128xf32>
    %232 = vector.extract_strided_slice %219 {offsets = [0, 256], sizes = [8, 128], strides = [1, 1]} : vector<8x512xf32> to vector<8x128xf32>
    %233 = math.tanh %232 : vector<8x128xf32>
    %234 = vector.extract_strided_slice %219 {offsets = [0, 384], sizes = [8, 128], strides = [1, 1]} : vector<8x512xf32> to vector<8x128xf32>
    %235 = arith.negf %234 : vector<8x128xf32>
    %236 = math.exp %235 : vector<8x128xf32>
    %cst_112 = arith.constant 1.000000e+00 : f32
    %237 = vector.broadcast %cst_112 : f32 to vector<8x128xf32>
    %238 = arith.addf %237, %236 : vector<8x128xf32>
    %239 = arith.divf %237, %238 : vector<8x128xf32>
    %240 = arith.mulf %231, %213 : vector<8x128xf32>
    %241 = arith.mulf %225, %233 : vector<8x128xf32>
    %242 = arith.addf %240, %241 : vector<8x128xf32>
    %243 = math.tanh %242 : vector<8x128xf32>
    %244 = arith.mulf %239, %243 : vector<8x128xf32>
    %245 = arith.truncf %244 : vector<8x128xf32> to vector<8x128xbf16>
    %c0_113 = arith.constant 0 : index
    %c0_114 = arith.constant 0 : index
    %246 = vector.load %arg20[%c0_113, %c0_114] : memref<8x128xf32, #tpu.memory_space<vmem>>, vector<8x128xf32>
    tpu.vector_store %arg20[%c0_113, %c0_114], %242 {strides = array<i32>} : memref<8x128xf32, #tpu.memory_space<vmem>>, vector<8x128xf32>,
    %c0_115 = arith.constant 0 : index
    %c0_116 = arith.constant 0 : index
    %247 = vector.load %arg18[%c0_115, %c0_116] : memref<8x128xbf16, #tpu.memory_space<vmem>>, vector<8x128xbf16>
    tpu.vector_store %arg18[%c0_115, %c0_116], %245 {strides = array<i32>} : memref<8x128xbf16, #tpu.memory_space<vmem>>, vector<8x128xbf16>,
    %248 = arith.index_cast %c5_i32 : i32 to index
    %c0_117 = arith.constant 0 : index
    %c0_118 = arith.constant 0 : index
    %249 = vector.load %arg17[%248, %c0_117, %c0_118] : memref<8x8x128xbf16, #tpu.memory_space<vmem>>, vector<1x8x128xbf16>
    %250 = vector.shape_cast %249 : vector<1x8x128xbf16> to vector<8x128xbf16>
    %251 = vector.shape_cast %245 : vector<8x128xbf16> to vector<1x8x128xbf16>
    tpu.vector_store %arg17[%248, %c0_117, %c0_118], %251 {strides = array<i32>} : memref<8x8x128xbf16, #tpu.memory_space<vmem>>, vector<1x8x128xbf16>,
    %c6_i32 = arith.constant 6 : i32
    %c0_119 = arith.constant 0 : index
    %c0_120 = arith.constant 0 : index
    %252 = vector.load %arg18[%c0_119, %c0_120] : memref<8x128xbf16, #tpu.memory_space<vmem>>, vector<8x128xbf16>
    %c0_121 = arith.constant 0 : index
    %c0_122 = arith.constant 0 : index
    %253 = vector.load %arg20[%c0_121, %c0_122] : memref<8x128xf32, #tpu.memory_space<vmem>>, vector<8x128xf32>
    %254 = arith.index_cast %c6_i32 : i32 to index
    %c0_123 = arith.constant 0 : index
    %c0_124 = arith.constant 0 : index
    %255 = vector.load %arg16[%254, %c0_123, %c0_124] : memref<8x8x512xf32, #tpu.memory_space<vmem>>, vector<1x8x512xf32>
    %256 = vector.shape_cast %255 : vector<1x8x512xf32> to vector<8x512xf32>
    %c0_125 = arith.constant 0 : index
    %c0_126 = arith.constant 0 : index
    %257 = vector.load %arg13[%c0_125, %c0_126] : memref<128x512xbf16, #tpu.memory_space<vmem>>, vector<128x512xbf16>
    %cst_127 = arith.constant dense<0.000000e+00> : vector<8x512xf32>
    %258 = tpu.matmul %252, %257, %cst_127 {dimension_numbers = #tpu.dot_dimension_numbers<[1], [0], [0], [1], [0, 0, 1, 1], [], []>} : vector<8x128xbf16>, vector<128x512xbf16>, vector<8x512xf32> -> vector<8x512xf32>
    %259 = arith.addf %256, %258 : vector<8x512xf32>
    %260 = vector.extract_strided_slice %259 {offsets = [0, 0], sizes = [8, 128], strides = [1, 1]} : vector<8x512xf32> to vector<8x128xf32>
    %261 = arith.negf %260 : vector<8x128xf32>
    %262 = math.exp %261 : vector<8x128xf32>
    %cst_128 = arith.constant 1.000000e+00 : f32
    %263 = vector.broadcast %cst_128 : f32 to vector<8x128xf32>
    %264 = arith.addf %263, %262 : vector<8x128xf32>
    %265 = arith.divf %263, %264 : vector<8x128xf32>
    %266 = vector.extract_strided_slice %259 {offsets = [0, 128], sizes = [8, 128], strides = [1, 1]} : vector<8x512xf32> to vector<8x128xf32>
    %267 = arith.negf %266 : vector<8x128xf32>
    %268 = math.exp %267 : vector<8x128xf32>
    %cst_129 = arith.constant 1.000000e+00 : f32
    %269 = vector.broadcast %cst_129 : f32 to vector<8x128xf32>
    %270 = arith.addf %269, %268 : vector<8x128xf32>
    %271 = arith.divf %269, %270 : vector<8x128xf32>
    %272 = vector.extract_strided_slice %259 {offsets = [0, 256], sizes = [8, 128], strides = [1, 1]} : vector<8x512xf32> to vector<8x128xf32>
    %273 = math.tanh %272 : vector<8x128xf32>
    %274 = vector.extract_strided_slice %259 {offsets = [0, 384], sizes = [8, 128], strides = [1, 1]} : vector<8x512xf32> to vector<8x128xf32>
    %275 = arith.negf %274 : vector<8x128xf32>
    %276 = math.exp %275 : vector<8x128xf32>
    %cst_130 = arith.constant 1.000000e+00 : f32
    %277 = vector.broadcast %cst_130 : f32 to vector<8x128xf32>
    %278 = arith.addf %277, %276 : vector<8x128xf32>
    %279 = arith.divf %277, %278 : vector<8x128xf32>
    %280 = arith.mulf %271, %253 : vector<8x128xf32>
    %281 = arith.mulf %265, %273 : vector<8x128xf32>
    %282 = arith.addf %280, %281 : vector<8x128xf32>
    %283 = math.tanh %282 : vector<8x128xf32>
    %284 = arith.mulf %279, %283 : vector<8x128xf32>
    %285 = arith.truncf %284 : vector<8x128xf32> to vector<8x128xbf16>
    %c0_131 = arith.constant 0 : index
    %c0_132 = arith.constant 0 : index
    %286 = vector.load %arg20[%c0_131, %c0_132] : memref<8x128xf32, #tpu.memory_space<vmem>>, vector<8x128xf32>
    tpu.vector_store %arg20[%c0_131, %c0_132], %282 {strides = array<i32>} : memref<8x128xf32, #tpu.memory_space<vmem>>, vector<8x128xf32>,
    %c0_133 = arith.constant 0 : index
    %c0_134 = arith.constant 0 : index
    %287 = vector.load %arg18[%c0_133, %c0_134] : memref<8x128xbf16, #tpu.memory_space<vmem>>, vector<8x128xbf16>
    tpu.vector_store %arg18[%c0_133, %c0_134], %285 {strides = array<i32>} : memref<8x128xbf16, #tpu.memory_space<vmem>>, vector<8x128xbf16>,
    %288 = arith.index_cast %c6_i32 : i32 to index
    %c0_135 = arith.constant 0 : index
    %c0_136 = arith.constant 0 : index
    %289 = vector.load %arg17[%288, %c0_135, %c0_136] : memref<8x8x128xbf16, #tpu.memory_space<vmem>>, vector<1x8x128xbf16>
    %290 = vector.shape_cast %289 : vector<1x8x128xbf16> to vector<8x128xbf16>
    %291 = vector.shape_cast %285 : vector<8x128xbf16> to vector<1x8x128xbf16>
    tpu.vector_store %arg17[%288, %c0_135, %c0_136], %291 {strides = array<i32>} : memref<8x8x128xbf16, #tpu.memory_space<vmem>>, vector<1x8x128xbf16>,
    %c7_i32 = arith.constant 7 : i32
    %c0_137 = arith.constant 0 : index
    %c0_138 = arith.constant 0 : index
    %292 = vector.load %arg18[%c0_137, %c0_138] : memref<8x128xbf16, #tpu.memory_space<vmem>>, vector<8x128xbf16>
    %c0_139 = arith.constant 0 : index
    %c0_140 = arith.constant 0 : index
    %293 = vector.load %arg20[%c0_139, %c0_140] : memref<8x128xf32, #tpu.memory_space<vmem>>, vector<8x128xf32>
    %294 = arith.index_cast %c7_i32 : i32 to index
    %c0_141 = arith.constant 0 : index
    %c0_142 = arith.constant 0 : index
    %295 = vector.load %arg16[%294, %c0_141, %c0_142] : memref<8x8x512xf32, #tpu.memory_space<vmem>>, vector<1x8x512xf32>
    %296 = vector.shape_cast %295 : vector<1x8x512xf32> to vector<8x512xf32>
    %c0_143 = arith.constant 0 : index
    %c0_144 = arith.constant 0 : index
    %297 = vector.load %arg13[%c0_143, %c0_144] : memref<128x512xbf16, #tpu.memory_space<vmem>>, vector<128x512xbf16>
    %cst_145 = arith.constant dense<0.000000e+00> : vector<8x512xf32>
    %298 = tpu.matmul %292, %297, %cst_145 {dimension_numbers = #tpu.dot_dimension_numbers<[1], [0], [0], [1], [0, 0, 1, 1], [], []>} : vector<8x128xbf16>, vector<128x512xbf16>, vector<8x512xf32> -> vector<8x512xf32>
    %299 = arith.addf %296, %298 : vector<8x512xf32>
    %300 = vector.extract_strided_slice %299 {offsets = [0, 0], sizes = [8, 128], strides = [1, 1]} : vector<8x512xf32> to vector<8x128xf32>
    %301 = arith.negf %300 : vector<8x128xf32>
    %302 = math.exp %301 : vector<8x128xf32>
    %cst_146 = arith.constant 1.000000e+00 : f32
    %303 = vector.broadcast %cst_146 : f32 to vector<8x128xf32>
    %304 = arith.addf %303, %302 : vector<8x128xf32>
    %305 = arith.divf %303, %304 : vector<8x128xf32>
    %306 = vector.extract_strided_slice %299 {offsets = [0, 128], sizes = [8, 128], strides = [1, 1]} : vector<8x512xf32> to vector<8x128xf32>
    %307 = arith.negf %306 : vector<8x128xf32>
    %308 = math.exp %307 : vector<8x128xf32>
    %cst_147 = arith.constant 1.000000e+00 : f32
    %309 = vector.broadcast %cst_147 : f32 to vector<8x128xf32>
    %310 = arith.addf %309, %308 : vector<8x128xf32>
    %311 = arith.divf %309, %310 : vector<8x128xf32>
    %312 = vector.extract_strided_slice %299 {offsets = [0, 256], sizes = [8, 128], strides = [1, 1]} : vector<8x512xf32> to vector<8x128xf32>
    %313 = math.tanh %312 : vector<8x128xf32>
    %314 = vector.extract_strided_slice %299 {offsets = [0, 384], sizes = [8, 128], strides = [1, 1]} : vector<8x512xf32> to vector<8x128xf32>
    %315 = arith.negf %314 : vector<8x128xf32>
    %316 = math.exp %315 : vector<8x128xf32>
    %cst_148 = arith.constant 1.000000e+00 : f32
    %317 = vector.broadcast %cst_148 : f32 to vector<8x128xf32>
    %318 = arith.addf %317, %316 : vector<8x128xf32>
    %319 = arith.divf %317, %318 : vector<8x128xf32>
    %320 = arith.mulf %311, %293 : vector<8x128xf32>
    %321 = arith.mulf %305, %313 : vector<8x128xf32>
    %322 = arith.addf %320, %321 : vector<8x128xf32>
    %323 = math.tanh %322 : vector<8x128xf32>
    %324 = arith.mulf %319, %323 : vector<8x128xf32>
    %325 = arith.truncf %324 : vector<8x128xf32> to vector<8x128xbf16>
    %c0_149 = arith.constant 0 : index
    %c0_150 = arith.constant 0 : index
    %326 = vector.load %arg20[%c0_149, %c0_150] : memref<8x128xf32, #tpu.memory_space<vmem>>, vector<8x128xf32>
    tpu.vector_store %arg20[%c0_149, %c0_150], %322 {strides = array<i32>} : memref<8x128xf32, #tpu.memory_space<vmem>>, vector<8x128xf32>,
    %c0_151 = arith.constant 0 : index
    %c0_152 = arith.constant 0 : index
    %327 = vector.load %arg18[%c0_151, %c0_152] : memref<8x128xbf16, #tpu.memory_space<vmem>>, vector<8x128xbf16>
    tpu.vector_store %arg18[%c0_151, %c0_152], %325 {strides = array<i32>} : memref<8x128xbf16, #tpu.memory_space<vmem>>, vector<8x128xbf16>,
    %328 = arith.index_cast %c7_i32 : i32 to index
    %c0_153 = arith.constant 0 : index
    %c0_154 = arith.constant 0 : index
    %329 = vector.load %arg17[%328, %c0_153, %c0_154] : memref<8x8x128xbf16, #tpu.memory_space<vmem>>, vector<1x8x128xbf16>
    %330 = vector.shape_cast %329 : vector<1x8x128xbf16> to vector<8x128xbf16>
    %331 = vector.shape_cast %325 : vector<8x128xbf16> to vector<1x8x128xbf16>
    tpu.vector_store %arg17[%328, %c0_153, %c0_154], %331 {strides = array<i32>} : memref<8x8x128xbf16, #tpu.memory_space<vmem>>, vector<1x8x128xbf16>,
    %c8_i32 = arith.constant 8 : i32
    %c0_155 = arith.constant 0 : index
    %c0_156 = arith.constant 0 : index
    %c0_157 = arith.constant 0 : index
    %332 = vector.load %arg17[%c0_155, %c0_156, %c0_157] : memref<8x8x128xbf16, #tpu.memory_space<vmem>>, vector<8x8x128xbf16>
    %333 = vector.shape_cast %332 : vector<8x8x128xbf16> to vector<64x128xbf16>
    %c0_158 = arith.constant 0 : index
    %c0_159 = arith.constant 0 : index
    %334 = vector.load %arg12[%c0_158, %c0_159] : memref<128x512xbf16, #tpu.memory_space<vmem>>, vector<128x512xbf16>
    %cst_160 = arith.constant dense<0.000000e+00> : vector<64x512xf32>
    %335 = tpu.matmul %333, %334, %cst_160 {dimension_numbers = #tpu.dot_dimension_numbers<[1], [0], [0], [1], [0, 0, 1, 1], [], []>} : vector<64x128xbf16>, vector<128x512xbf16>, vector<64x512xf32> -> vector<64x512xf32>
    %c0_161 = arith.constant 0 : index
    %c0_162 = arith.constant 0 : index
    %336 = vector.load %arg3[%c0_161, %c0_162] : memref<1x512xf32, #tpu.memory_space<vmem>>, vector<1x512xf32>
    %337 = vector.broadcast %336 : vector<1x512xf32> to vector<64x512xf32>
    %338 = arith.addf %335, %337 : vector<64x512xf32>
    %339 = vector.shape_cast %338 : vector<64x512xf32> to vector<8x8x512xf32>
    %c0_163 = arith.constant 0 : index
    %c0_164 = arith.constant 0 : index
    %c0_165 = arith.constant 0 : index
    %340 = vector.load %arg16[%c0_163, %c0_164, %c0_165] : memref<8x8x512xf32, #tpu.memory_space<vmem>>, vector<8x8x512xf32>
    tpu.vector_store %arg16[%c0_163, %c0_164, %c0_165], %339 {strides = array<i32>} : memref<8x8x512xf32, #tpu.memory_space<vmem>>, vector<8x8x512xf32>,
    %c0_i32_166 = arith.constant 0 : i32
    %c0_167 = arith.constant 0 : index
    %c0_168 = arith.constant 0 : index
    %341 = vector.load %arg19[%c0_167, %c0_168] : memref<8x128xbf16, #tpu.memory_space<vmem>>, vector<8x128xbf16>
    %c0_169 = arith.constant 0 : index
    %c0_170 = arith.constant 0 : index
    %342 = vector.load %arg21[%c0_169, %c0_170] : memref<8x128xf32, #tpu.memory_space<vmem>>, vector<8x128xf32>
    %343 = arith.index_cast %c0_i32_166 : i32 to index
    %c0_171 = arith.constant 0 : index
    %c0_172 = arith.constant 0 : index
    %344 = vector.load %arg16[%343, %c0_171, %c0_172] : memref<8x8x512xf32, #tpu.memory_space<vmem>>, vector<1x8x512xf32>
    %345 = vector.shape_cast %344 : vector<1x8x512xf32> to vector<8x512xf32>
    %c0_173 = arith.constant 0 : index
    %c0_174 = arith.constant 0 : index
    %346 = vector.load %arg14[%c0_173, %c0_174] : memref<128x512xbf16, #tpu.memory_space<vmem>>, vector<128x512xbf16>
    %cst_175 = arith.constant dense<0.000000e+00> : vector<8x512xf32>
    %347 = tpu.matmul %341, %346, %cst_175 {dimension_numbers = #tpu.dot_dimension_numbers<[1], [0], [0], [1], [0, 0, 1, 1], [], []>} : vector<8x128xbf16>, vector<128x512xbf16>, vector<8x512xf32> -> vector<8x512xf32>
    %348 = arith.addf %345, %347 : vector<8x512xf32>
    %349 = vector.extract_strided_slice %348 {offsets = [0, 0], sizes = [8, 128], strides = [1, 1]} : vector<8x512xf32> to vector<8x128xf32>
    %350 = arith.negf %349 : vector<8x128xf32>
    %351 = math.exp %350 : vector<8x128xf32>
    %cst_176 = arith.constant 1.000000e+00 : f32
    %352 = vector.broadcast %cst_176 : f32 to vector<8x128xf32>
    %353 = arith.addf %352, %351 : vector<8x128xf32>
    %354 = arith.divf %352, %353 : vector<8x128xf32>
    %355 = vector.extract_strided_slice %348 {offsets = [0, 128], sizes = [8, 128], strides = [1, 1]} : vector<8x512xf32> to vector<8x128xf32>
    %356 = arith.negf %355 : vector<8x128xf32>
    %357 = math.exp %356 : vector<8x128xf32>
    %cst_177 = arith.constant 1.000000e+00 : f32
    %358 = vector.broadcast %cst_177 : f32 to vector<8x128xf32>
    %359 = arith.addf %358, %357 : vector<8x128xf32>
    %360 = arith.divf %358, %359 : vector<8x128xf32>
    %361 = vector.extract_strided_slice %348 {offsets = [0, 256], sizes = [8, 128], strides = [1, 1]} : vector<8x512xf32> to vector<8x128xf32>
    %362 = math.tanh %361 : vector<8x128xf32>
    %363 = vector.extract_strided_slice %348 {offsets = [0, 384], sizes = [8, 128], strides = [1, 1]} : vector<8x512xf32> to vector<8x128xf32>
    %364 = arith.negf %363 : vector<8x128xf32>
    %365 = math.exp %364 : vector<8x128xf32>
    %cst_178 = arith.constant 1.000000e+00 : f32
    %366 = vector.broadcast %cst_178 : f32 to vector<8x128xf32>
    %367 = arith.addf %366, %365 : vector<8x128xf32>
    %368 = arith.divf %366, %367 : vector<8x128xf32>
    %369 = arith.mulf %360, %342 : vector<8x128xf32>
    %370 = arith.mulf %354, %362 : vector<8x128xf32>
    %371 = arith.addf %369, %370 : vector<8x128xf32>
    %372 = math.tanh %371 : vector<8x128xf32>
    %373 = arith.mulf %368, %372 : vector<8x128xf32>
    %374 = arith.truncf %373 : vector<8x128xf32> to vector<8x128xbf16>
    %c0_179 = arith.constant 0 : index
    %c0_180 = arith.constant 0 : index
    %375 = vector.load %arg21[%c0_179, %c0_180] : memref<8x128xf32, #tpu.memory_space<vmem>>, vector<8x128xf32>
    tpu.vector_store %arg21[%c0_179, %c0_180], %371 {strides = array<i32>} : memref<8x128xf32, #tpu.memory_space<vmem>>, vector<8x128xf32>,
    %c0_181 = arith.constant 0 : index
    %c0_182 = arith.constant 0 : index
    %376 = vector.load %arg19[%c0_181, %c0_182] : memref<8x128xbf16, #tpu.memory_space<vmem>>, vector<8x128xbf16>
    tpu.vector_store %arg19[%c0_181, %c0_182], %374 {strides = array<i32>} : memref<8x128xbf16, #tpu.memory_space<vmem>>, vector<8x128xbf16>,
    %c1_i32_183 = arith.constant 1 : i32
    %c0_184 = arith.constant 0 : index
    %c0_185 = arith.constant 0 : index
    %377 = vector.load %arg19[%c0_184, %c0_185] : memref<8x128xbf16, #tpu.memory_space<vmem>>, vector<8x128xbf16>
    %c0_186 = arith.constant 0 : index
    %c0_187 = arith.constant 0 : index
    %378 = vector.load %arg21[%c0_186, %c0_187] : memref<8x128xf32, #tpu.memory_space<vmem>>, vector<8x128xf32>
    %379 = arith.index_cast %c1_i32_183 : i32 to index
    %c0_188 = arith.constant 0 : index
    %c0_189 = arith.constant 0 : index
    %380 = vector.load %arg16[%379, %c0_188, %c0_189] : memref<8x8x512xf32, #tpu.memory_space<vmem>>, vector<1x8x512xf32>
    %381 = vector.shape_cast %380 : vector<1x8x512xf32> to vector<8x512xf32>
    %c0_190 = arith.constant 0 : index
    %c0_191 = arith.constant 0 : index
    %382 = vector.load %arg14[%c0_190, %c0_191] : memref<128x512xbf16, #tpu.memory_space<vmem>>, vector<128x512xbf16>
    %cst_192 = arith.constant dense<0.000000e+00> : vector<8x512xf32>
    %383 = tpu.matmul %377, %382, %cst_192 {dimension_numbers = #tpu.dot_dimension_numbers<[1], [0], [0], [1], [0, 0, 1, 1], [], []>} : vector<8x128xbf16>, vector<128x512xbf16>, vector<8x512xf32> -> vector<8x512xf32>
    %384 = arith.addf %381, %383 : vector<8x512xf32>
    %385 = vector.extract_strided_slice %384 {offsets = [0, 0], sizes = [8, 128], strides = [1, 1]} : vector<8x512xf32> to vector<8x128xf32>
    %386 = arith.negf %385 : vector<8x128xf32>
    %387 = math.exp %386 : vector<8x128xf32>
    %cst_193 = arith.constant 1.000000e+00 : f32
    %388 = vector.broadcast %cst_193 : f32 to vector<8x128xf32>
    %389 = arith.addf %388, %387 : vector<8x128xf32>
    %390 = arith.divf %388, %389 : vector<8x128xf32>
    %391 = vector.extract_strided_slice %384 {offsets = [0, 128], sizes = [8, 128], strides = [1, 1]} : vector<8x512xf32> to vector<8x128xf32>
    %392 = arith.negf %391 : vector<8x128xf32>
    %393 = math.exp %392 : vector<8x128xf32>
    %cst_194 = arith.constant 1.000000e+00 : f32
    %394 = vector.broadcast %cst_194 : f32 to vector<8x128xf32>
    %395 = arith.addf %394, %393 : vector<8x128xf32>
    %396 = arith.divf %394, %395 : vector<8x128xf32>
    %397 = vector.extract_strided_slice %384 {offsets = [0, 256], sizes = [8, 128], strides = [1, 1]} : vector<8x512xf32> to vector<8x128xf32>
    %398 = math.tanh %397 : vector<8x128xf32>
    %399 = vector.extract_strided_slice %384 {offsets = [0, 384], sizes = [8, 128], strides = [1, 1]} : vector<8x512xf32> to vector<8x128xf32>
    %400 = arith.negf %399 : vector<8x128xf32>
    %401 = math.exp %400 : vector<8x128xf32>
    %cst_195 = arith.constant 1.000000e+00 : f32
    %402 = vector.broadcast %cst_195 : f32 to vector<8x128xf32>
    %403 = arith.addf %402, %401 : vector<8x128xf32>
    %404 = arith.divf %402, %403 : vector<8x128xf32>
    %405 = arith.mulf %396, %378 : vector<8x128xf32>
    %406 = arith.mulf %390, %398 : vector<8x128xf32>
    %407 = arith.addf %405, %406 : vector<8x128xf32>
    %408 = math.tanh %407 : vector<8x128xf32>
    %409 = arith.mulf %404, %408 : vector<8x128xf32>
    %410 = arith.truncf %409 : vector<8x128xf32> to vector<8x128xbf16>
    %c0_196 = arith.constant 0 : index
    %c0_197 = arith.constant 0 : index
    %411 = vector.load %arg21[%c0_196, %c0_197] : memref<8x128xf32, #tpu.memory_space<vmem>>, vector<8x128xf32>
    tpu.vector_store %arg21[%c0_196, %c0_197], %407 {strides = array<i32>} : memref<8x128xf32, #tpu.memory_space<vmem>>, vector<8x128xf32>,
    %c0_198 = arith.constant 0 : index
    %c0_199 = arith.constant 0 : index
    %412 = vector.load %arg19[%c0_198, %c0_199] : memref<8x128xbf16, #tpu.memory_space<vmem>>, vector<8x128xbf16>
    tpu.vector_store %arg19[%c0_198, %c0_199], %410 {strides = array<i32>} : memref<8x128xbf16, #tpu.memory_space<vmem>>, vector<8x128xbf16>,
    %c2_i32_200 = arith.constant 2 : i32
    %c0_201 = arith.constant 0 : index
    %c0_202 = arith.constant 0 : index
    %413 = vector.load %arg19[%c0_201, %c0_202] : memref<8x128xbf16, #tpu.memory_space<vmem>>, vector<8x128xbf16>
    %c0_203 = arith.constant 0 : index
    %c0_204 = arith.constant 0 : index
    %414 = vector.load %arg21[%c0_203, %c0_204] : memref<8x128xf32, #tpu.memory_space<vmem>>, vector<8x128xf32>
    %415 = arith.index_cast %c2_i32_200 : i32 to index
    %c0_205 = arith.constant 0 : index
    %c0_206 = arith.constant 0 : index
    %416 = vector.load %arg16[%415, %c0_205, %c0_206] : memref<8x8x512xf32, #tpu.memory_space<vmem>>, vector<1x8x512xf32>
    %417 = vector.shape_cast %416 : vector<1x8x512xf32> to vector<8x512xf32>
    %c0_207 = arith.constant 0 : index
    %c0_208 = arith.constant 0 : index
    %418 = vector.load %arg14[%c0_207, %c0_208] : memref<128x512xbf16, #tpu.memory_space<vmem>>, vector<128x512xbf16>
    %cst_209 = arith.constant dense<0.000000e+00> : vector<8x512xf32>
    %419 = tpu.matmul %413, %418, %cst_209 {dimension_numbers = #tpu.dot_dimension_numbers<[1], [0], [0], [1], [0, 0, 1, 1], [], []>} : vector<8x128xbf16>, vector<128x512xbf16>, vector<8x512xf32> -> vector<8x512xf32>
    %420 = arith.addf %417, %419 : vector<8x512xf32>
    %421 = vector.extract_strided_slice %420 {offsets = [0, 0], sizes = [8, 128], strides = [1, 1]} : vector<8x512xf32> to vector<8x128xf32>
    %422 = arith.negf %421 : vector<8x128xf32>
    %423 = math.exp %422 : vector<8x128xf32>
    %cst_210 = arith.constant 1.000000e+00 : f32
    %424 = vector.broadcast %cst_210 : f32 to vector<8x128xf32>
    %425 = arith.addf %424, %423 : vector<8x128xf32>
    %426 = arith.divf %424, %425 : vector<8x128xf32>
    %427 = vector.extract_strided_slice %420 {offsets = [0, 128], sizes = [8, 128], strides = [1, 1]} : vector<8x512xf32> to vector<8x128xf32>
    %428 = arith.negf %427 : vector<8x128xf32>
    %429 = math.exp %428 : vector<8x128xf32>
    %cst_211 = arith.constant 1.000000e+00 : f32
    %430 = vector.broadcast %cst_211 : f32 to vector<8x128xf32>
    %431 = arith.addf %430, %429 : vector<8x128xf32>
    %432 = arith.divf %430, %431 : vector<8x128xf32>
    %433 = vector.extract_strided_slice %420 {offsets = [0, 256], sizes = [8, 128], strides = [1, 1]} : vector<8x512xf32> to vector<8x128xf32>
    %434 = math.tanh %433 : vector<8x128xf32>
    %435 = vector.extract_strided_slice %420 {offsets = [0, 384], sizes = [8, 128], strides = [1, 1]} : vector<8x512xf32> to vector<8x128xf32>
    %436 = arith.negf %435 : vector<8x128xf32>
    %437 = math.exp %436 : vector<8x128xf32>
    %cst_212 = arith.constant 1.000000e+00 : f32
    %438 = vector.broadcast %cst_212 : f32 to vector<8x128xf32>
    %439 = arith.addf %438, %437 : vector<8x128xf32>
    %440 = arith.divf %438, %439 : vector<8x128xf32>
    %441 = arith.mulf %432, %414 : vector<8x128xf32>
    %442 = arith.mulf %426, %434 : vector<8x128xf32>
    %443 = arith.addf %441, %442 : vector<8x128xf32>
    %444 = math.tanh %443 : vector<8x128xf32>
    %445 = arith.mulf %440, %444 : vector<8x128xf32>
    %446 = arith.truncf %445 : vector<8x128xf32> to vector<8x128xbf16>
    %c0_213 = arith.constant 0 : index
    %c0_214 = arith.constant 0 : index
    %447 = vector.load %arg21[%c0_213, %c0_214] : memref<8x128xf32, #tpu.memory_space<vmem>>, vector<8x128xf32>
    tpu.vector_store %arg21[%c0_213, %c0_214], %443 {strides = array<i32>} : memref<8x128xf32, #tpu.memory_space<vmem>>, vector<8x128xf32>,
    %c0_215 = arith.constant 0 : index
    %c0_216 = arith.constant 0 : index
    %448 = vector.load %arg19[%c0_215, %c0_216] : memref<8x128xbf16, #tpu.memory_space<vmem>>, vector<8x128xbf16>
    tpu.vector_store %arg19[%c0_215, %c0_216], %446 {strides = array<i32>} : memref<8x128xbf16, #tpu.memory_space<vmem>>, vector<8x128xbf16>,
    %c3_i32_217 = arith.constant 3 : i32
    %c0_218 = arith.constant 0 : index
    %c0_219 = arith.constant 0 : index
    %449 = vector.load %arg19[%c0_218, %c0_219] : memref<8x128xbf16, #tpu.memory_space<vmem>>, vector<8x128xbf16>
    %c0_220 = arith.constant 0 : index
    %c0_221 = arith.constant 0 : index
    %450 = vector.load %arg21[%c0_220, %c0_221] : memref<8x128xf32, #tpu.memory_space<vmem>>, vector<8x128xf32>
    %451 = arith.index_cast %c3_i32_217 : i32 to index
    %c0_222 = arith.constant 0 : index
    %c0_223 = arith.constant 0 : index
    %452 = vector.load %arg16[%451, %c0_222, %c0_223] : memref<8x8x512xf32, #tpu.memory_space<vmem>>, vector<1x8x512xf32>
    %453 = vector.shape_cast %452 : vector<1x8x512xf32> to vector<8x512xf32>
    %c0_224 = arith.constant 0 : index
    %c0_225 = arith.constant 0 : index
    %454 = vector.load %arg14[%c0_224, %c0_225] : memref<128x512xbf16, #tpu.memory_space<vmem>>, vector<128x512xbf16>
    %cst_226 = arith.constant dense<0.000000e+00> : vector<8x512xf32>
    %455 = tpu.matmul %449, %454, %cst_226 {dimension_numbers = #tpu.dot_dimension_numbers<[1], [0], [0], [1], [0, 0, 1, 1], [], []>} : vector<8x128xbf16>, vector<128x512xbf16>, vector<8x512xf32> -> vector<8x512xf32>
    %456 = arith.addf %453, %455 : vector<8x512xf32>
    %457 = vector.extract_strided_slice %456 {offsets = [0, 0], sizes = [8, 128], strides = [1, 1]} : vector<8x512xf32> to vector<8x128xf32>
    %458 = arith.negf %457 : vector<8x128xf32>
    %459 = math.exp %458 : vector<8x128xf32>
    %cst_227 = arith.constant 1.000000e+00 : f32
    %460 = vector.broadcast %cst_227 : f32 to vector<8x128xf32>
    %461 = arith.addf %460, %459 : vector<8x128xf32>
    %462 = arith.divf %460, %461 : vector<8x128xf32>
    %463 = vector.extract_strided_slice %456 {offsets = [0, 128], sizes = [8, 128], strides = [1, 1]} : vector<8x512xf32> to vector<8x128xf32>
    %464 = arith.negf %463 : vector<8x128xf32>
    %465 = math.exp %464 : vector<8x128xf32>
    %cst_228 = arith.constant 1.000000e+00 : f32
    %466 = vector.broadcast %cst_228 : f32 to vector<8x128xf32>
    %467 = arith.addf %466, %465 : vector<8x128xf32>
    %468 = arith.divf %466, %467 : vector<8x128xf32>
    %469 = vector.extract_strided_slice %456 {offsets = [0, 256], sizes = [8, 128], strides = [1, 1]} : vector<8x512xf32> to vector<8x128xf32>
    %470 = math.tanh %469 : vector<8x128xf32>
    %471 = vector.extract_strided_slice %456 {offsets = [0, 384], sizes = [8, 128], strides = [1, 1]} : vector<8x512xf32> to vector<8x128xf32>
    %472 = arith.negf %471 : vector<8x128xf32>
    %473 = math.exp %472 : vector<8x128xf32>
    %cst_229 = arith.constant 1.000000e+00 : f32
    %474 = vector.broadcast %cst_229 : f32 to vector<8x128xf32>
    %475 = arith.addf %474, %473 : vector<8x128xf32>
    %476 = arith.divf %474, %475 : vector<8x128xf32>
    %477 = arith.mulf %468, %450 : vector<8x128xf32>
    %478 = arith.mulf %462, %470 : vector<8x128xf32>
    %479 = arith.addf %477, %478 : vector<8x128xf32>
    %480 = math.tanh %479 : vector<8x128xf32>
    %481 = arith.mulf %476, %480 : vector<8x128xf32>
    %482 = arith.truncf %481 : vector<8x128xf32> to vector<8x128xbf16>
    %c0_230 = arith.constant 0 : index
    %c0_231 = arith.constant 0 : index
    %483 = vector.load %arg21[%c0_230, %c0_231] : memref<8x128xf32, #tpu.memory_space<vmem>>, vector<8x128xf32>
    tpu.vector_store %arg21[%c0_230, %c0_231], %479 {strides = array<i32>} : memref<8x128xf32, #tpu.memory_space<vmem>>, vector<8x128xf32>,
    %c0_232 = arith.constant 0 : index
    %c0_233 = arith.constant 0 : index
    %484 = vector.load %arg19[%c0_232, %c0_233] : memref<8x128xbf16, #tpu.memory_space<vmem>>, vector<8x128xbf16>
    tpu.vector_store %arg19[%c0_232, %c0_233], %482 {strides = array<i32>} : memref<8x128xbf16, #tpu.memory_space<vmem>>, vector<8x128xbf16>,
    %c4_i32_234 = arith.constant 4 : i32
    %c0_235 = arith.constant 0 : index
    %c0_236 = arith.constant 0 : index
    %485 = vector.load %arg19[%c0_235, %c0_236] : memref<8x128xbf16, #tpu.memory_space<vmem>>, vector<8x128xbf16>
    %c0_237 = arith.constant 0 : index
    %c0_238 = arith.constant 0 : index
    %486 = vector.load %arg21[%c0_237, %c0_238] : memref<8x128xf32, #tpu.memory_space<vmem>>, vector<8x128xf32>
    %487 = arith.index_cast %c4_i32_234 : i32 to index
    %c0_239 = arith.constant 0 : index
    %c0_240 = arith.constant 0 : index
    %488 = vector.load %arg16[%487, %c0_239, %c0_240] : memref<8x8x512xf32, #tpu.memory_space<vmem>>, vector<1x8x512xf32>
    %489 = vector.shape_cast %488 : vector<1x8x512xf32> to vector<8x512xf32>
    %c0_241 = arith.constant 0 : index
    %c0_242 = arith.constant 0 : index
    %490 = vector.load %arg14[%c0_241, %c0_242] : memref<128x512xbf16, #tpu.memory_space<vmem>>, vector<128x512xbf16>
    %cst_243 = arith.constant dense<0.000000e+00> : vector<8x512xf32>
    %491 = tpu.matmul %485, %490, %cst_243 {dimension_numbers = #tpu.dot_dimension_numbers<[1], [0], [0], [1], [0, 0, 1, 1], [], []>} : vector<8x128xbf16>, vector<128x512xbf16>, vector<8x512xf32> -> vector<8x512xf32>
    %492 = arith.addf %489, %491 : vector<8x512xf32>
    %493 = vector.extract_strided_slice %492 {offsets = [0, 0], sizes = [8, 128], strides = [1, 1]} : vector<8x512xf32> to vector<8x128xf32>
    %494 = arith.negf %493 : vector<8x128xf32>
    %495 = math.exp %494 : vector<8x128xf32>
    %cst_244 = arith.constant 1.000000e+00 : f32
    %496 = vector.broadcast %cst_244 : f32 to vector<8x128xf32>
    %497 = arith.addf %496, %495 : vector<8x128xf32>
    %498 = arith.divf %496, %497 : vector<8x128xf32>
    %499 = vector.extract_strided_slice %492 {offsets = [0, 128], sizes = [8, 128], strides = [1, 1]} : vector<8x512xf32> to vector<8x128xf32>
    %500 = arith.negf %499 : vector<8x128xf32>
    %501 = math.exp %500 : vector<8x128xf32>
    %cst_245 = arith.constant 1.000000e+00 : f32
    %502 = vector.broadcast %cst_245 : f32 to vector<8x128xf32>
    %503 = arith.addf %502, %501 : vector<8x128xf32>
    %504 = arith.divf %502, %503 : vector<8x128xf32>
    %505 = vector.extract_strided_slice %492 {offsets = [0, 256], sizes = [8, 128], strides = [1, 1]} : vector<8x512xf32> to vector<8x128xf32>
    %506 = math.tanh %505 : vector<8x128xf32>
    %507 = vector.extract_strided_slice %492 {offsets = [0, 384], sizes = [8, 128], strides = [1, 1]} : vector<8x512xf32> to vector<8x128xf32>
    %508 = arith.negf %507 : vector<8x128xf32>
    %509 = math.exp %508 : vector<8x128xf32>
    %cst_246 = arith.constant 1.000000e+00 : f32
    %510 = vector.broadcast %cst_246 : f32 to vector<8x128xf32>
    %511 = arith.addf %510, %509 : vector<8x128xf32>
    %512 = arith.divf %510, %511 : vector<8x128xf32>
    %513 = arith.mulf %504, %486 : vector<8x128xf32>
    %514 = arith.mulf %498, %506 : vector<8x128xf32>
    %515 = arith.addf %513, %514 : vector<8x128xf32>
    %516 = math.tanh %515 : vector<8x128xf32>
    %517 = arith.mulf %512, %516 : vector<8x128xf32>
    %518 = arith.truncf %517 : vector<8x128xf32> to vector<8x128xbf16>
    %c0_247 = arith.constant 0 : index
    %c0_248 = arith.constant 0 : index
    %519 = vector.load %arg21[%c0_247, %c0_248] : memref<8x128xf32, #tpu.memory_space<vmem>>, vector<8x128xf32>
    tpu.vector_store %arg21[%c0_247, %c0_248], %515 {strides = array<i32>} : memref<8x128xf32, #tpu.memory_space<vmem>>, vector<8x128xf32>,
    %c0_249 = arith.constant 0 : index
    %c0_250 = arith.constant 0 : index
    %520 = vector.load %arg19[%c0_249, %c0_250] : memref<8x128xbf16, #tpu.memory_space<vmem>>, vector<8x128xbf16>
    tpu.vector_store %arg19[%c0_249, %c0_250], %518 {strides = array<i32>} : memref<8x128xbf16, #tpu.memory_space<vmem>>, vector<8x128xbf16>,
    %c5_i32_251 = arith.constant 5 : i32
    %c0_252 = arith.constant 0 : index
    %c0_253 = arith.constant 0 : index
    %521 = vector.load %arg19[%c0_252, %c0_253] : memref<8x128xbf16, #tpu.memory_space<vmem>>, vector<8x128xbf16>
    %c0_254 = arith.constant 0 : index
    %c0_255 = arith.constant 0 : index
    %522 = vector.load %arg21[%c0_254, %c0_255] : memref<8x128xf32, #tpu.memory_space<vmem>>, vector<8x128xf32>
    %523 = arith.index_cast %c5_i32_251 : i32 to index
    %c0_256 = arith.constant 0 : index
    %c0_257 = arith.constant 0 : index
    %524 = vector.load %arg16[%523, %c0_256, %c0_257] : memref<8x8x512xf32, #tpu.memory_space<vmem>>, vector<1x8x512xf32>
    %525 = vector.shape_cast %524 : vector<1x8x512xf32> to vector<8x512xf32>
    %c0_258 = arith.constant 0 : index
    %c0_259 = arith.constant 0 : index
    %526 = vector.load %arg14[%c0_258, %c0_259] : memref<128x512xbf16, #tpu.memory_space<vmem>>, vector<128x512xbf16>
    %cst_260 = arith.constant dense<0.000000e+00> : vector<8x512xf32>
    %527 = tpu.matmul %521, %526, %cst_260 {dimension_numbers = #tpu.dot_dimension_numbers<[1], [0], [0], [1], [0, 0, 1, 1], [], []>} : vector<8x128xbf16>, vector<128x512xbf16>, vector<8x512xf32> -> vector<8x512xf32>
    %528 = arith.addf %525, %527 : vector<8x512xf32>
    %529 = vector.extract_strided_slice %528 {offsets = [0, 0], sizes = [8, 128], strides = [1, 1]} : vector<8x512xf32> to vector<8x128xf32>
    %530 = arith.negf %529 : vector<8x128xf32>
    %531 = math.exp %530 : vector<8x128xf32>
    %cst_261 = arith.constant 1.000000e+00 : f32
    %532 = vector.broadcast %cst_261 : f32 to vector<8x128xf32>
    %533 = arith.addf %532, %531 : vector<8x128xf32>
    %534 = arith.divf %532, %533 : vector<8x128xf32>
    %535 = vector.extract_strided_slice %528 {offsets = [0, 128], sizes = [8, 128], strides = [1, 1]} : vector<8x512xf32> to vector<8x128xf32>
    %536 = arith.negf %535 : vector<8x128xf32>
    %537 = math.exp %536 : vector<8x128xf32>
    %cst_262 = arith.constant 1.000000e+00 : f32
    %538 = vector.broadcast %cst_262 : f32 to vector<8x128xf32>
    %539 = arith.addf %538, %537 : vector<8x128xf32>
    %540 = arith.divf %538, %539 : vector<8x128xf32>
    %541 = vector.extract_strided_slice %528 {offsets = [0, 256], sizes = [8, 128], strides = [1, 1]} : vector<8x512xf32> to vector<8x128xf32>
    %542 = math.tanh %541 : vector<8x128xf32>
    %543 = vector.extract_strided_slice %528 {offsets = [0, 384], sizes = [8, 128], strides = [1, 1]} : vector<8x512xf32> to vector<8x128xf32>
    %544 = arith.negf %543 : vector<8x128xf32>
    %545 = math.exp %544 : vector<8x128xf32>
    %cst_263 = arith.constant 1.000000e+00 : f32
    %546 = vector.broadcast %cst_263 : f32 to vector<8x128xf32>
    %547 = arith.addf %546, %545 : vector<8x128xf32>
    %548 = arith.divf %546, %547 : vector<8x128xf32>
    %549 = arith.mulf %540, %522 : vector<8x128xf32>
    %550 = arith.mulf %534, %542 : vector<8x128xf32>
    %551 = arith.addf %549, %550 : vector<8x128xf32>
    %552 = math.tanh %551 : vector<8x128xf32>
    %553 = arith.mulf %548, %552 : vector<8x128xf32>
    %554 = arith.truncf %553 : vector<8x128xf32> to vector<8x128xbf16>
    %c0_264 = arith.constant 0 : index
    %c0_265 = arith.constant 0 : index
    %555 = vector.load %arg21[%c0_264, %c0_265] : memref<8x128xf32, #tpu.memory_space<vmem>>, vector<8x128xf32>
    tpu.vector_store %arg21[%c0_264, %c0_265], %551 {strides = array<i32>} : memref<8x128xf32, #tpu.memory_space<vmem>>, vector<8x128xf32>,
    %c0_266 = arith.constant 0 : index
    %c0_267 = arith.constant 0 : index
    %556 = vector.load %arg19[%c0_266, %c0_267] : memref<8x128xbf16, #tpu.memory_space<vmem>>, vector<8x128xbf16>
    tpu.vector_store %arg19[%c0_266, %c0_267], %554 {strides = array<i32>} : memref<8x128xbf16, #tpu.memory_space<vmem>>, vector<8x128xbf16>,
    %c6_i32_268 = arith.constant 6 : i32
    %c0_269 = arith.constant 0 : index
    %c0_270 = arith.constant 0 : index
    %557 = vector.load %arg19[%c0_269, %c0_270] : memref<8x128xbf16, #tpu.memory_space<vmem>>, vector<8x128xbf16>
    %c0_271 = arith.constant 0 : index
    %c0_272 = arith.constant 0 : index
    %558 = vector.load %arg21[%c0_271, %c0_272] : memref<8x128xf32, #tpu.memory_space<vmem>>, vector<8x128xf32>
    %559 = arith.index_cast %c6_i32_268 : i32 to index
    %c0_273 = arith.constant 0 : index
    %c0_274 = arith.constant 0 : index
    %560 = vector.load %arg16[%559, %c0_273, %c0_274] : memref<8x8x512xf32, #tpu.memory_space<vmem>>, vector<1x8x512xf32>
    %561 = vector.shape_cast %560 : vector<1x8x512xf32> to vector<8x512xf32>
    %c0_275 = arith.constant 0 : index
    %c0_276 = arith.constant 0 : index
    %562 = vector.load %arg14[%c0_275, %c0_276] : memref<128x512xbf16, #tpu.memory_space<vmem>>, vector<128x512xbf16>
    %cst_277 = arith.constant dense<0.000000e+00> : vector<8x512xf32>
    %563 = tpu.matmul %557, %562, %cst_277 {dimension_numbers = #tpu.dot_dimension_numbers<[1], [0], [0], [1], [0, 0, 1, 1], [], []>} : vector<8x128xbf16>, vector<128x512xbf16>, vector<8x512xf32> -> vector<8x512xf32>
    %564 = arith.addf %561, %563 : vector<8x512xf32>
    %565 = vector.extract_strided_slice %564 {offsets = [0, 0], sizes = [8, 128], strides = [1, 1]} : vector<8x512xf32> to vector<8x128xf32>
    %566 = arith.negf %565 : vector<8x128xf32>
    %567 = math.exp %566 : vector<8x128xf32>
    %cst_278 = arith.constant 1.000000e+00 : f32
    %568 = vector.broadcast %cst_278 : f32 to vector<8x128xf32>
    %569 = arith.addf %568, %567 : vector<8x128xf32>
    %570 = arith.divf %568, %569 : vector<8x128xf32>
    %571 = vector.extract_strided_slice %564 {offsets = [0, 128], sizes = [8, 128], strides = [1, 1]} : vector<8x512xf32> to vector<8x128xf32>
    %572 = arith.negf %571 : vector<8x128xf32>
    %573 = math.exp %572 : vector<8x128xf32>
    %cst_279 = arith.constant 1.000000e+00 : f32
    %574 = vector.broadcast %cst_279 : f32 to vector<8x128xf32>
    %575 = arith.addf %574, %573 : vector<8x128xf32>
    %576 = arith.divf %574, %575 : vector<8x128xf32>
    %577 = vector.extract_strided_slice %564 {offsets = [0, 256], sizes = [8, 128], strides = [1, 1]} : vector<8x512xf32> to vector<8x128xf32>
    %578 = math.tanh %577 : vector<8x128xf32>
    %579 = vector.extract_strided_slice %564 {offsets = [0, 384], sizes = [8, 128], strides = [1, 1]} : vector<8x512xf32> to vector<8x128xf32>
    %580 = arith.negf %579 : vector<8x128xf32>
    %581 = math.exp %580 : vector<8x128xf32>
    %cst_280 = arith.constant 1.000000e+00 : f32
    %582 = vector.broadcast %cst_280 : f32 to vector<8x128xf32>
    %583 = arith.addf %582, %581 : vector<8x128xf32>
    %584 = arith.divf %582, %583 : vector<8x128xf32>
    %585 = arith.mulf %576, %558 : vector<8x128xf32>
    %586 = arith.mulf %570, %578 : vector<8x128xf32>
    %587 = arith.addf %585, %586 : vector<8x128xf32>
    %588 = math.tanh %587 : vector<8x128xf32>
    %589 = arith.mulf %584, %588 : vector<8x128xf32>
    %590 = arith.truncf %589 : vector<8x128xf32> to vector<8x128xbf16>
    %c0_281 = arith.constant 0 : index
    %c0_282 = arith.constant 0 : index
    %591 = vector.load %arg21[%c0_281, %c0_282] : memref<8x128xf32, #tpu.memory_space<vmem>>, vector<8x128xf32>
    tpu.vector_store %arg21[%c0_281, %c0_282], %587 {strides = array<i32>} : memref<8x128xf32, #tpu.memory_space<vmem>>, vector<8x128xf32>,
    %c0_283 = arith.constant 0 : index
    %c0_284 = arith.constant 0 : index
    %592 = vector.load %arg19[%c0_283, %c0_284] : memref<8x128xbf16, #tpu.memory_space<vmem>>, vector<8x128xbf16>
    tpu.vector_store %arg19[%c0_283, %c0_284], %590 {strides = array<i32>} : memref<8x128xbf16, #tpu.memory_space<vmem>>, vector<8x128xbf16>,
    %c7_i32_285 = arith.constant 7 : i32
    %c0_286 = arith.constant 0 : index
    %c0_287 = arith.constant 0 : index
    %593 = vector.load %arg19[%c0_286, %c0_287] : memref<8x128xbf16, #tpu.memory_space<vmem>>, vector<8x128xbf16>
    %c0_288 = arith.constant 0 : index
    %c0_289 = arith.constant 0 : index
    %594 = vector.load %arg21[%c0_288, %c0_289] : memref<8x128xf32, #tpu.memory_space<vmem>>, vector<8x128xf32>
    %595 = arith.index_cast %c7_i32_285 : i32 to index
    %c0_290 = arith.constant 0 : index
    %c0_291 = arith.constant 0 : index
    %596 = vector.load %arg16[%595, %c0_290, %c0_291] : memref<8x8x512xf32, #tpu.memory_space<vmem>>, vector<1x8x512xf32>
    %597 = vector.shape_cast %596 : vector<1x8x512xf32> to vector<8x512xf32>
    %c0_292 = arith.constant 0 : index
    %c0_293 = arith.constant 0 : index
    %598 = vector.load %arg14[%c0_292, %c0_293] : memref<128x512xbf16, #tpu.memory_space<vmem>>, vector<128x512xbf16>
    %cst_294 = arith.constant dense<0.000000e+00> : vector<8x512xf32>
    %599 = tpu.matmul %593, %598, %cst_294 {dimension_numbers = #tpu.dot_dimension_numbers<[1], [0], [0], [1], [0, 0, 1, 1], [], []>} : vector<8x128xbf16>, vector<128x512xbf16>, vector<8x512xf32> -> vector<8x512xf32>
    %600 = arith.addf %597, %599 : vector<8x512xf32>
    %601 = vector.extract_strided_slice %600 {offsets = [0, 0], sizes = [8, 128], strides = [1, 1]} : vector<8x512xf32> to vector<8x128xf32>
    %602 = arith.negf %601 : vector<8x128xf32>
    %603 = math.exp %602 : vector<8x128xf32>
    %cst_295 = arith.constant 1.000000e+00 : f32
    %604 = vector.broadcast %cst_295 : f32 to vector<8x128xf32>
    %605 = arith.addf %604, %603 : vector<8x128xf32>
    %606 = arith.divf %604, %605 : vector<8x128xf32>
    %607 = vector.extract_strided_slice %600 {offsets = [0, 128], sizes = [8, 128], strides = [1, 1]} : vector<8x512xf32> to vector<8x128xf32>
    %608 = arith.negf %607 : vector<8x128xf32>
    %609 = math.exp %608 : vector<8x128xf32>
    %cst_296 = arith.constant 1.000000e+00 : f32
    %610 = vector.broadcast %cst_296 : f32 to vector<8x128xf32>
    %611 = arith.addf %610, %609 : vector<8x128xf32>
    %612 = arith.divf %610, %611 : vector<8x128xf32>
    %613 = vector.extract_strided_slice %600 {offsets = [0, 256], sizes = [8, 128], strides = [1, 1]} : vector<8x512xf32> to vector<8x128xf32>
    %614 = math.tanh %613 : vector<8x128xf32>
    %615 = vector.extract_strided_slice %600 {offsets = [0, 384], sizes = [8, 128], strides = [1, 1]} : vector<8x512xf32> to vector<8x128xf32>
    %616 = arith.negf %615 : vector<8x128xf32>
    %617 = math.exp %616 : vector<8x128xf32>
    %cst_297 = arith.constant 1.000000e+00 : f32
    %618 = vector.broadcast %cst_297 : f32 to vector<8x128xf32>
    %619 = arith.addf %618, %617 : vector<8x128xf32>
    %620 = arith.divf %618, %619 : vector<8x128xf32>
    %621 = arith.mulf %612, %594 : vector<8x128xf32>
    %622 = arith.mulf %606, %614 : vector<8x128xf32>
    %623 = arith.addf %621, %622 : vector<8x128xf32>
    %624 = math.tanh %623 : vector<8x128xf32>
    %625 = arith.mulf %620, %624 : vector<8x128xf32>
    %626 = arith.truncf %625 : vector<8x128xf32> to vector<8x128xbf16>
    %c0_298 = arith.constant 0 : index
    %c0_299 = arith.constant 0 : index
    %627 = vector.load %arg21[%c0_298, %c0_299] : memref<8x128xf32, #tpu.memory_space<vmem>>, vector<8x128xf32>
    tpu.vector_store %arg21[%c0_298, %c0_299], %623 {strides = array<i32>} : memref<8x128xf32, #tpu.memory_space<vmem>>, vector<8x128xf32>,
    %c0_300 = arith.constant 0 : index
    %c0_301 = arith.constant 0 : index
    %628 = vector.load %arg19[%c0_300, %c0_301] : memref<8x128xbf16, #tpu.memory_space<vmem>>, vector<8x128xbf16>
    tpu.vector_store %arg19[%c0_300, %c0_301], %626 {strides = array<i32>} : memref<8x128xbf16, #tpu.memory_space<vmem>>, vector<8x128xbf16>,
    %c8_i32_302 = arith.constant 8 : i32
    %c0_i32_303 = arith.constant 0 : i32
    %629 = arith.cmpi eq, %arg0, %c0_i32_303 : i32
    %630 = arith.extui %629 : i1 to i32
    %c0_i32_304 = arith.constant 0 : i32
    %631 = arith.cmpi ne, %630, %c0_i32_304 : i32
    scf.if %631 {
      %c0_305 = arith.constant 0 : index
      %c0_306 = arith.constant 0 : index
      %632 = vector.load %arg19[%c0_305, %c0_306] : memref<8x128xbf16, #tpu.memory_space<vmem>>, vector<8x128xbf16>
      %c0_307 = arith.constant 0 : index
      %c0_308 = arith.constant 0 : index
      %633 = vector.load %arg15[%c0_307, %c0_308] : memref<128x128xbf16, #tpu.memory_space<vmem>>, vector<128x128xbf16>
      %cst_309 = arith.constant dense<0.000000e+00> : vector<8x128xf32>
      %634 = tpu.matmul %632, %633, %cst_309 {dimension_numbers = #tpu.dot_dimension_numbers<[1], [0], [0], [1], [0, 0, 1, 1], [], []>} : vector<8x128xbf16>, vector<128x128xbf16>, vector<8x128xf32> -> vector<8x128xf32>
      %c0_310 = arith.constant 0 : index
      %c0_311 = arith.constant 0 : index
      %635 = vector.load %arg4[%c0_310, %c0_311] : memref<1x128xf32, #tpu.memory_space<vmem>>, vector<1x128xf32>
      %636 = vector.broadcast %635 : vector<1x128xf32> to vector<8x128xf32>
      %637 = arith.addf %634, %636 : vector<8x128xf32>
      %c0_312 = arith.constant 0 : index
      %c0_313 = arith.constant 0 : index
      %638 = vector.load %arg10[%c0_312, %c0_313] : memref<8x128xf32, #tpu.memory_space<vmem>>, vector<8x128xf32>
      tpu.vector_store %arg10[%c0_312, %c0_313], %637 {strides = array<i32>} : memref<8x128xf32, #tpu.memory_space<vmem>>, vector<8x128xf32>,
    } else {
    }
    return
  }
  func.func @transform_0(%arg0: i32) -> (i32, i32, i32) {
    %c0_i32 = arith.constant 0 : i32
    %c0_i32_0 = arith.constant 0 : i32
    %c0_i32_1 = arith.constant 0 : i32
    return %arg0, %c0_i32, %c0_i32_0 : i32, i32, i32
  }
  func.func @transform_1(%arg0: i32) -> (i32, i32) {
    %c0_i32 = arith.constant 0 : i32
    %c0_i32_0 = arith.constant 0 : i32
    %c0_i32_1 = arith.constant 0 : i32
    return %c0_i32, %c0_i32_0 : i32, i32
  }
  func.func @transform_2(%arg0: i32) -> (i32, i32) {
    %c0_i32 = arith.constant 0 : i32
    %c0_i32_0 = arith.constant 0 : i32
    %c0_i32_1 = arith.constant 0 : i32
    return %c0_i32, %c0_i32_0 : i32, i32
  }
  func.func @transform_3(%arg0: i32) -> (i32, i32) {
    %c0_i32 = arith.constant 0 : i32
    %c0_i32_0 = arith.constant 0 : i32
    %c0_i32_1 = arith.constant 0 : i32
    return %c0_i32, %c0_i32_0 : i32, i32
  }
  func.func @transform_9(%arg0: i32) -> (i32, i32) {
    %c0_i32 = arith.constant 0 : i32
    %c0_i32_0 = arith.constant 0 : i32
    %c0_i32_1 = arith.constant 0 : i32
    return %c0_i32, %c0_i32_0 : i32, i32
  }
}

</mosaic_0001>

<bundles_post_ra>
// kernel: tpu_custom_call.1
= control target key start
LH: loop header
LB: loop body
LE: loop exit
PB: predicated region body
PF: predicated region fallthrough
CT: control target
= control target key end

     0   :  { %14 = vsyncpa [#allocation15], 0  ;;  %s5219_s0 = inlined_call_operand.hbm [shape: bf16[8,8,128], index: 0, kind: input, shape index: {}]   ;;  %s5220_s1 = inlined_call_operand.hbm [shape: f32[1,512], index: 1, kind: input, shape index: {}]   ;;  %s5221_s2 = inlined_call_operand.hbm [shape: f32[1,512], index: 2, kind: input, shape index: {}]   ;;  %s5222_s3 = inlined_call_operand.hbm [shape: f32[1,128], index: 3, kind: input, shape index: {}]   ;;  %s5223_s4 = inlined_call_operand.hbm [shape: bf16[128,512], index: 4, kind: input, shape index: {}]   ;;  %s5224_s5 = inlined_call_operand.hbm [shape: bf16[128,512], index: 5, kind: input, shape index: {}]   ;;  %s5225_s6 = inlined_call_operand.hbm [shape: bf16[128,512], index: 6, kind: input, shape index: {}]   ;;  %s5226_s7 = inlined_call_operand.hbm [shape: bf16[128,512], index: 7, kind: input, shape index: {}]   ;;  %s5227_s8 = inlined_call_operand.hbm [shape: bf16[128,128], index: 8, kind: input, shape index: {}]   ;;  %s5228_s9 = inlined_call_operand.hbm [shape: f32[8,128], index: 9, kind: output, shape index: {}]  }
   0x1   :  { %15 = vsyncpa [#allocation18], 0 }
   0x2   :  { %16 = vsyncpa [#allocation21], 0 }
   0x3   :  { %17 = vsyncpa [#allocation16], 0  ;;  %s3866_s30 = smov [#allocation17]   ;;  %s3867_s11 = smov [#allocation14]  }
   0x4   :  { %s36_s10 = sshll.u32 %s3866_s30, 4  ;;  %s23_s12 = sshll.u32 %s3867_s11, 4  ;;  %s37_s10 = int_to_ptr.vmem [resolvable:$true] %s36_s10  ;;  %s3946_s12 = int_to_ptr.vmem [resolvable:$true] %s23_s12 }
   0x5   :  { %s3716_s15 = scalar_lea.hbm %s5220_s1, 64 }
   0x6   :  { %p3717_p0 = scmp.ne.s32.totalorder %s5220_s1, %s3716_s15  ;;  %p3720_p1 = scmp.lt.u32.totalorder %s3716_s15, %s5220_s1 }
   0x8   :  { %p3722_p2 = pnand %p3720_p1, %p3717_p0 }
   0xa   :  { %3725 = shalt.err (!%p3722_p2)
}
   0xb   :  { %s3726_s20 = scalar_lea.vmem %s37_s10, 64  ;;  %p3731_p4 = scmp.lt.s32.totalorder %s37_s10, %s37_s10 }
   0xc   :  { %p3727_p3 = scmp.ne.s32.totalorder %s37_s10, %s3726_s20  ;;  %p3732_p5 = scmp.lt.s32.totalorder %s3726_s20, %s3726_s20 }
   0xe   :  { %p3733_p6 = por %p3732_p5, %p3731_p4 }
  0x10   :  { %p3734_p7 = pnand %p3733_p6, %p3727_p3 }
  0x12   :  { %3737 = shalt.err (!%p3734_p7)
}
  0x13   :  { %39 = dma.hbm_to_vmem [thread:$0]  %s5220_s1, 64, %s37_s10, [#allocation18]  }
  0x14   :  { %s3738_s25 = scalar_lea.hbm %s5219_s0, 512 }
  0x15   :  { %p3739_p8 = scmp.ne.s32.totalorder %s5219_s0, %s3738_s25  ;;  %p3742_p9 = scmp.lt.u32.totalorder %s3738_s25, %s5219_s0 }
  0x17   :  { %p3744_p10 = pnand %p3742_p9, %p3739_p8 }
  0x19   :  { %3747 = shalt.err (!%p3744_p10)
}
  0x1a   :  { %s3748_s30 = scalar_lea.vmem %s3946_s12, 512  ;;  %p3753_p12 = scmp.lt.s32.totalorder %s3946_s12, %s3946_s12 }
  0x1b   :  { %p3749_p11 = scmp.ne.s32.totalorder %s3946_s12, %s3748_s30  ;;  %p3754_p13 = scmp.lt.s32.totalorder %s3748_s30, %s3748_s30 }
  0x1d   :  { %p3755_p0 = por %p3754_p13, %p3753_p12 }
  0x1f   :  { %p3756_p1 = pnand %p3755_p0, %p3749_p11 }
  0x21   :  { %3759 = shalt.err (!%p3756_p1)
}
  0x22   :  { %s3868_s1 = smov 64   ;;  %s3869_s10 = smov 4  }
  0x23   :  { %29 = dma.hbm_to_vmem [thread:$0]  %s5219_s0, 512, %s3946_s12, [#allocation15], %s3868_s1, %s3868_s1, %s3869_s10  }
  0x24   :  { %s3870_s14 = smov [#allocation19]   ;;  %s3871_s16 = smov [#allocation20]  }
  0x25   :  { %s46_s15 = sshll.u32 %s3870_s14, 4  ;;  %s56_s17 = sshll.u32 %s3871_s16, 4  ;;  %s47_s15 = int_to_ptr.vmem [resolvable:$true] %s46_s15  ;;  %s57_s17 = int_to_ptr.vmem [resolvable:$true] %s56_s17 }
  0x26   :  { %s3760_s20 = scalar_lea.hbm %s5221_s2, 64 }
  0x27   :  { %p3761_p2 = scmp.ne.s32.totalorder %s5221_s2, %s3760_s20  ;;  %p3764_p3 = scmp.lt.u32.totalorder %s3760_s20, %s5221_s2 }
  0x29   :  { %p3766_p4 = pnand %p3764_p3, %p3761_p2 }
  0x2b   :  { %3769 = shalt.err (!%p3766_p4)
}
  0x2c   :  { %s3770_s0 = scalar_lea.vmem %s47_s15, 64  ;;  %p3775_p6 = scmp.lt.s32.totalorder %s47_s15, %s47_s15 }
  0x2d   :  { %p3771_p5 = scmp.ne.s32.totalorder %s47_s15, %s3770_s0  ;;  %p3776_p7 = scmp.lt.s32.totalorder %s3770_s0, %s3770_s0 }
  0x2f   :  { %p3777_p8 = por %p3776_p7, %p3775_p6 }
  0x31   :  { %p3778_p9 = pnand %p3777_p8, %p3771_p5 }
  0x33   :  { %3781 = shalt.err (!%p3778_p9)
}
  0x34   :  { %49 = dma.hbm_to_vmem [thread:$0]  %s5221_s2, 64, %s47_s15, [#allocation18]  }
  0x35   :  { %s3782_s28 = scalar_lea.hbm %s5222_s3, 16 }
  0x36   :  { %p3783_p10 = scmp.ne.s32.totalorder %s5222_s3, %s3782_s28  ;;  %p3786_p11 = scmp.lt.u32.totalorder %s3782_s28, %s5222_s3 }
  0x38   :  { %p3788_p12 = pnand %p3786_p11, %p3783_p10 }
  0x3a   :  { %3791 = shalt.err (!%p3788_p12)
}
  0x3b   :  { %s3792_s11 = scalar_lea.vmem %s57_s17, 16  ;;  %s3796_s13 = scalar_lea.vmem %s57_s17, 32 }
  0x3c   :  { %p3793_p13 = scmp.ne.s32.totalorder %s57_s17, %s3792_s11  ;;  %p3797_p0 = scmp.lt.s32.totalorder %s57_s17, %s57_s17 }
  0x3d   :  { %p3798_p1 = scmp.lt.s32.totalorder %s3796_s13, %s3792_s11 }
  0x3f   :  { %p3799_p2 = por %p3798_p1, %p3797_p0 }
  0x41   :  { %p3800_p3 = pnand %p3799_p2, %p3793_p13 }
  0x43   :  { %3803 = shalt.err (!%p3800_p3)
}
  0x44   :  { %59 = dma.hbm_to_vmem [thread:$0]  %s5222_s3, 16, %s57_s17, [#allocation21]  }
  0x45   :  { %3848 = dma.done.wait [#allocation15], 512  }
  0x46   :  { %3849 = vsyncadd [#allocation15], 4294966784 }
  0x47   :  { %3850 = dma.done.wait [#allocation18], 128  }
  0x48   :  { %3851 = vsyncadd [#allocation18], 4294967168 }
  0x49   :  { %3852 = dma.done.wait [#allocation21], 16  }
  0x4a   :  { %3853 = vsyncadd [#allocation21], 4294967280 }
  0x4b   :  { %s81_s15 = sld [smem:[#allocation0]]   ;;  %s3872_s16 = smov [#allocation2]  }
  0x4c   :  { %s89_s18 = sshll.u32 %s3872_s16, 4  ;;  %s3873_s19 = smov 512   ;;  %s90_s18 = int_to_ptr.vmem [resolvable:$true] %s89_s18 }
  0x4d   :  { %93 = sst [smem:[#allocation24]] %s3873_s19  ;;  %s3874_s20 = smov 4  }
  0x4e   :  { %95 = sst [smem:[#allocation24 + $0x1]] %s3873_s19  ;;  %s3875_s21 = smov 64  }
  0x4f   :  { %97 = sst [smem:[#allocation24 + $0x2]] %s3874_s20  ;;  %s3876_s17 = smov 128  }
  0x50   :  { %99 = sst [smem:[#allocation24 + $0x3]] %s3875_s21  ;;  %s3877_s23 = smov 2  }
  0x51   :  { %s3323_s3 = sshll.u32 %s81_s15, 26  ;;  %101 = sst [smem:[#allocation24 + $0x4]] %s3876_s17 }
  0x52   :  { %s4006_s22 = sadd.s32 134217728, %s3323_s3  ;;  %103 = sst [smem:[#allocation24 + $0x5]] %s3877_s23 }
  0x53   :  { %s3878_s24 = smov 256   ;;  %107 = sst [smem:[#allocation24 + $0x7]] %s3875_s21 }
  0x54   :  { %105 = sst [smem:[#allocation24 + $0x6]] %s3878_s24  ;;  %s3879_s0 = smov [#allocation13]  }
  0x55   :  { %109 = sst [smem:[#allocation24 + $0x8]] %s3874_s20  ;;  %s3880_s12 = smov [#allocation23]  }
  0x56   :  { %111 = dma.general %s5223_s4, 4096, %s90_s18, %s3879_s0, %s3880_s12, [#allocation24], %s4006_s22, 0  }
  0x57   :  { %128 = sst [smem:[#allocation26]] %s3873_s19  ;;  %s3881_s27 = smov [#allocation4]  }
  0x58   :  { %130 = sst [smem:[#allocation26 + $0x1]] %s3873_s19  ;;  %s124_s28 = sshll.u32 %s3881_s27, 4  ;;  %s125_s28 = int_to_ptr.vmem [resolvable:$true] %s124_s28 }
  0x59   :  { %132 = sst [smem:[#allocation26 + $0x2]] %s3874_s20  ;;  %s3882_s4 = smov [#allocation13 + $0x1]  }
  0x5a   :  { %134 = sst [smem:[#allocation26 + $0x3]] %s3875_s21  ;;  %s3883_s29 = smov [#allocation25]  }
  0x5b   :  { %136 = sst [smem:[#allocation26 + $0x4]] %s3876_s17  ;;  %s3884_s10 = smov [#allocation3]  }
  0x5c   :  { %138 = sst [smem:[#allocation26 + $0x5]] %s3877_s23  ;;  %s159_s11 = sshll.u32 %s3884_s10, 4  ;;  %s160_s11 = int_to_ptr.vmem [resolvable:$true] %s159_s11 }
  0x5d   :  { %140 = sst [smem:[#allocation26 + $0x6]] %s3878_s24  ;;  %s3886_s13 = smov [#allocation27]  }
  0x5e   :  { %142 = sst [smem:[#allocation26 + $0x7]] %s3875_s21  ;;  %s3887_s15 = smov [#allocation5]  }
  0x5f   :  { %144 = sst [smem:[#allocation26 + $0x8]] %s3874_s20  ;;  %s194_s16 = sshll.u32 %s3887_s15, 4  ;;  %s195_s16 = int_to_ptr.vmem [resolvable:$true] %s194_s16 }
  0x60   :  { %146 = dma.general %s5225_s6, 4096, %s125_s28, %s3882_s4, %s3883_s29, [#allocation26], %s4006_s22, 0  }
  0x61   :  { %163 = sst [smem:[#allocation28]] %s3873_s19  ;;  %s3885_s6 = smov [#allocation13 + $0x2]  }
  0x62   :  { %165 = sst [smem:[#allocation28 + $0x1]] %s3873_s19  ;;  %s3888_s18 = smov [#allocation6]  }
  0x63   :  { %167 = sst [smem:[#allocation28 + $0x2]] %s3874_s20  ;;  %s225_s3 = sshll.u32 %s3888_s18, 4  ;;  %s226_s3 = int_to_ptr.vmem [resolvable:$true] %s225_s3 }
  0x64   :  { %169 = sst [smem:[#allocation28 + $0x3]] %s3875_s21 }
  0x65   :  { %171 = sst [smem:[#allocation28 + $0x4]] %s3876_s17 }
  0x66   :  { %173 = sst [smem:[#allocation28 + $0x5]] %s3877_s23 }
  0x67   :  { %175 = sst [smem:[#allocation28 + $0x6]] %s3878_s24 }
  0x68   :  { %177 = sst [smem:[#allocation28 + $0x7]] %s3875_s21 }
  0x69   :  { %179 = sst [smem:[#allocation28 + $0x8]] %s3874_s20 }
  0x6a   :  { %181 = dma.general %s5224_s5, 4096, %s160_s11, %s3885_s6, %s3886_s13, [#allocation28], %s4006_s22, 0  }
  0x6b   :  { %198 = sst [smem:[#allocation30]] %s3873_s19  ;;  %s3889_s5 = smov [#allocation13 + $0x3]  }
  0x6c   :  { %200 = sst [smem:[#allocation30 + $0x1]] %s3873_s19  ;;  %s3890_s19 = smov [#allocation29]  }
  0x6d   :  { %202 = sst [smem:[#allocation30 + $0x2]] %s3874_s20 }
  0x6e   :  { %204 = sst [smem:[#allocation30 + $0x3]] %s3875_s21 }
  0x6f   :  { %206 = sst [smem:[#allocation30 + $0x4]] %s3876_s17  ;;  %s3804_s17 = scalar_lea.hbm %s5227_s8, 1024 }
  0x70   :  { %208 = sst [smem:[#allocation30 + $0x5]] %s3877_s23  ;;  %p3805_p4 = scmp.ne.s32.totalorder %s5227_s8, %s3804_s17 }
  0x71   :  { %210 = sst [smem:[#allocation30 + $0x6]] %s3878_s24  ;;  %p3808_p5 = scmp.lt.u32.totalorder %s3804_s17, %s5227_s8 }
  0x72   :  { %212 = sst [smem:[#allocation30 + $0x7]] %s3875_s21 }
  0x73   :  { %214 = sst [smem:[#allocation30 + $0x8]] %s3874_s20  ;;  %p3810_p6 = pnand %p3808_p5, %p3805_p4 }
  0x74   :  { %216 = dma.general %s5226_s7, 4096, %s195_s16, %s3889_s5, %s3890_s19, [#allocation30], %s4006_s22, 0  }
  0x75   :  { %3813 = shalt.err (!%p3810_p6)  }
  0x76   :  { %s3814_s20 = scalar_lea.vmem %s226_s3, 1024  ;;  %p3819_p8 = scmp.lt.s32.totalorder %s226_s3, %s226_s3 }
  0x77   :  { %p3815_p7 = scmp.ne.s32.totalorder %s226_s3, %s3814_s20  ;;  %p3820_p9 = scmp.lt.s32.totalorder %s3814_s20, %s3814_s20 }
  0x79   :  { %p3821_p10 = por %p3820_p9, %p3819_p8 }
  0x7b   :  { %p3822_p11 = pnand %p3821_p10, %p3815_p7 }
  0x7d   :  { %3825 = shalt.err (!%p3822_p11)  }
  0x7e   :  { %228 = dma.hbm_to_vmem [thread:$0]  %s5227_s8, 1024, %s226_s3, [#allocation13 + $0x4] }
  0x7f   :  { %3854 = dma.done.wait [#allocation13], 4096 }
  0x80   :  { %3855 = vsyncadd [#allocation13], 4294963200 }
  0x81   :  { %3856 = dma.done.wait [#allocation13 + $0x1], 4096 }
  0x82   :  { %3857 = vsyncadd [#allocation13 + $0x1], 4294963200 }
  0x83   :  { %3858 = dma.done.wait [#allocation13 + $0x2], 4096 }
  0x84   :  { %3859 = vsyncadd [#allocation13 + $0x2], 4294963200 }
  0x85   :  { %3860 = dma.done.wait [#allocation13 + $0x3], 4096 }
  0x86   :  { %3861 = vsyncadd [#allocation13 + $0x3], 4294963200 }
  0x87   :  { %3862 = dma.done.wait [#allocation13 + $0x4], 1024 }
  0x88   :  { %3863 = vsyncadd [#allocation13 + $0x4], 4294966272  ;;  %v3891_v0 = vmov 0   ;;  %v255_v1 = vld [vmem:[#allocation2 + $0x8] sm:$0xff]  ;;  %v257_v2 = vld [vmem:[#allocation2 + $0x18] sm:$0xff]  ;;  %v5233_v11 = vmov 0  }
  0x89   :  { %242 = vst [vmem:[#allocation9] sm:$0xf] %v3891_v0  ;;  %244 = vst [vmem:[#allocation10] sm:$0xf] %v3891_v0  ;;  %v254_v3 = vld [vmem:[#allocation2] sm:$0xff]  ;;  %332 = vmatprep.subr.bf16.mxu0 %v255_v1  ;;  %405 = vmatprep.subr.bf16.mxu1 %v257_v2  ;;  %v256_v4 = vld [vmem:[#allocation2 + $0x10] sm:$0xff] }
  0x8a   :  { %v259_v5 = vld [vmem:[#allocation2 + $0x28] sm:$0xff]  ;;  %v261_v6 = vld [vmem:[#allocation2 + $0x38] sm:$0xff]  ;;  %333 = vmatpush1.bf16.msra.mxu0 %v254_v3  ;;  %406 = vmatpush1.bf16.msra.mxu1 %v256_v4  ;;  %v258_v7 = vld [vmem:[#allocation2 + $0x20] sm:$0xff]  ;;  %vm3894_vm0 = vmmov 0   ;;  %s3895_s8 = smov [#allocation22]  }
  0x8b   :  { %334 = vmatprep.subr.bf16.mxu0 %v259_v5  ;;  %407 = vmatprep.subr.bf16.mxu1 %v261_v6  ;;  %v260_v8 = vld [vmem:[#allocation2 + $0x30] sm:$0xff]  ;;  %v263_v9 = vld [vmem:[#allocation2 + $0x48] sm:$0xff]  ;;  %v265_v10 = vld [vmem:[#allocation2 + $0x58] sm:$0xff]  ;;  %s3278_s22 = sshll.u32 %s3895_s8, 4  ;;  %s3279_s22 = int_to_ptr.vmem [resolvable:$true] %s3278_s22 }
  0x8c   :  { %364 = vmatprep.mubr.bf16.mxu0 %v5233_v11  ;;  %437 = vmatprep.mubr.bf16.mxu1 %v5233_v11  ;;  %v262_v12 = vld [vmem:[#allocation2 + $0x40] sm:$0xff]  ;;  %v264_v13 = vld [vmem:[#allocation2 + $0x50] sm:$0xff]  ;;  %v267_v14 = vld [vmem:[#allocation2 + $0x68] sm:$0xff]  ;;  %s3826_s4 = scalar_lea.vmem %s3279_s22, 128  ;;  %p3831_p13 = scmp.lt.s32.totalorder %s3279_s22, %s3279_s22 }
  0x8d   :  { %v269_v15 = vld [vmem:[#allocation2 + $0x78] sm:$0xff]  ;;  %v266_v16 = vld [vmem:[#allocation2 + $0x60] sm:$0xff]  ;;  %v268_v17 = vld [vmem:[#allocation2 + $0x70] sm:$0xff]  ;;  %p3827_p12 = scmp.ne.s32.totalorder %s3279_s22, %s3826_s4  ;;  %p3832_p0 = scmp.lt.s32.totalorder %s3826_s4, %s3826_s4 }
  0x8e   :  { %335 = vmatpush1.bf16.msra.mxu0 %v258_v7  ;;  %408 = vmatpush1.bf16.msra.mxu1 %v260_v8  ;;  %v271_v18 = vld [vmem:[#allocation2 + $0x88] sm:$0xff]  ;;  %v273_v19 = vld [vmem:[#allocation2 + $0x98] sm:$0xff]  ;;  %v270_v20 = vld [vmem:[#allocation2 + $0x80] sm:$0xff]  ;;  %v288_v7 = vlaneseq }
  0x8f   :  { %336 = vmatprep.subr.bf16.mxu0 %v263_v9  ;;  %409 = vmatprep.subr.bf16.mxu1 %v265_v10  ;;  %v272_v21 = vld [vmem:[#allocation2 + $0x90] sm:$0xff]  ;;  %v275_v22 = vld [vmem:[#allocation2 + $0xa8] sm:$0xff]  ;;  %v277_v23 = vld [vmem:[#allocation2 + $0xb8] sm:$0xff]  ;;  %p3833_p1 = por %p3832_p0, %p3831_p13 }
  0x90   :  { %v274_v24 = vld [vmem:[#allocation2 + $0xa0] sm:$0xff]  ;;  %v276_v25 = vld [vmem:[#allocation2 + $0xb0] sm:$0xff]  ;;  %v279_v26 = vld [vmem:[#allocation2 + $0xc8] sm:$0xff]  ;;  %v4209_v8 = vshrl.u32 %v288_v7, 7 }
  0x91   :  { %v281_v27 = vld [vmem:[#allocation2 + $0xd8] sm:$0xff]  ;;  %v278_v28 = vld [vmem:[#allocation2 + $0xc0] sm:$0xff]  ;;  %v280_v29 = vld [vmem:[#allocation2 + $0xd0] sm:$0xff]  ;;  %p3834_p2 = pnand %p3833_p1, %p3827_p12 }
  0x92   :  { %337 = vmatpush1.bf16.msra.mxu0 %v262_v12  ;;  %410 = vmatpush1.bf16.msra.mxu1 %v264_v13  ;;  %v283_v30 = vld [vmem:[#allocation2 + $0xe8] sm:$0xff]  ;;  %v285_v31 = vld [vmem:[#allocation2 + $0xf8] sm:$0xff]  ;;  %v282_v32 = vld [vmem:[#allocation2 + $0xe0] sm:$0xff]  ;;  %5237 = vst [vmem:[#allocation44_spill] sm:$0xff] %v4209_v8  ;;  %v5231_v9 = vsub.s32 2, %v4209_v8  ;;  %v5229_v10 = vsub.s32 3, %v4209_v8 }
  0x93   :  { %338 = vmatprep.subr.bf16.mxu0 %v267_v14  ;;  %411 = vmatprep.subr.bf16.mxu1 %v269_v15  ;;  %v284_v33 = vld [vmem:[#allocation2 + $0xf0] sm:$0xff]  ;;  %v4069_v34 = vld [vmem:[#allocation4 + $0x8] sm:$0xff]  ;;  %v4071_v35 = vld [vmem:[#allocation4 + $0x18] sm:$0xff]  ;;  %v5232_v12 = vsub.s32 0, %v4209_v8  ;;  %v5230_v14 = vsub.s32 1, %v4209_v8 }
  0x94   :  { %v3452_v36 = vld [vmem:[#allocation14] sm:$0xff]   ;;  %v4075_v37 = vld [vmem:[#allocation4] sm:$0xff]  ;;  %v4077_v38 = vld [vmem:[#allocation4 + $0x10] sm:$0xff] }
  0x95   :  { %v4079_v39 = vld [vmem:[#allocation4 + $0x28] sm:$0xff]  ;;  %v4081_v40 = vld [vmem:[#allocation4 + $0x38] sm:$0xff]  ;;  %v4087_v41 = vld [vmem:[#allocation4 + $0x20] sm:$0xff] }
  0x96   :  { %339 = vmatpush1.bf16.msra.mxu0 %v266_v16  ;;  %412 = vmatpush1.bf16.msra.mxu1 %v268_v17  ;;  %v4089_v42 = vld [vmem:[#allocation4 + $0x30] sm:$0xff]  ;;  %v4093_v43 = vld [vmem:[#allocation4 + $0x48] sm:$0xff]  ;;  %v4095_v44 = vld [vmem:[#allocation4 + $0x58] sm:$0xff] }
  0x97   :  { %340 = vmatprep.subr.bf16.mxu0 %v271_v18  ;;  %413 = vmatprep.subr.bf16.mxu1 %v273_v19  ;;  %v3453_v45 = vld [vmem:[#allocation14 + $0x8] sm:$0xff]   ;;  %v4101_v46 = vld [vmem:[#allocation4 + $0x40] sm:$0xff]  ;;  %v4105_v48 = vld [vmem:[#allocation4 + $0x68] sm:$0xff] }
  0x98   :  { %v4103_v47 = vld [vmem:[#allocation4 + $0x50] sm:$0xff]  ;;  %v4107_v49 = vld [vmem:[#allocation4 + $0x78] sm:$0xff]  ;;  %v4113_v50 = vld [vmem:[#allocation4 + $0x60] sm:$0xff] }
  0x99   :  { %v4115_v51 = vld [vmem:[#allocation4 + $0x70] sm:$0xff]  ;;  %v4119_v52 = vld [vmem:[#allocation4 + $0x88] sm:$0xff]  ;;  %v4121_v53 = vld [vmem:[#allocation4 + $0x98] sm:$0xff] }
  0x9a   :  { %341 = vmatpush1.bf16.msra.mxu0 %v270_v20  ;;  %414 = vmatpush1.bf16.msra.mxu1 %v272_v21  ;;  %v3454_v54 = vld [vmem:[#allocation14 + $0x10] sm:$0xff]   ;;  %v4127_v55 = vld [vmem:[#allocation4 + $0x80] sm:$0xff]  ;;  %v4129_v56 = vld [vmem:[#allocation4 + $0x90] sm:$0xff] }
  0x9b   :  { %342 = vmatprep.subr.bf16.mxu0 %v275_v22  ;;  %415 = vmatprep.subr.bf16.mxu1 %v277_v23  ;;  %v4131_v57 = vld [vmem:[#allocation4 + $0xa8] sm:$0xff]  ;;  %v4133_v58 = vld [vmem:[#allocation4 + $0xb8] sm:$0xff]  ;;  %v4139_v59 = vld [vmem:[#allocation4 + $0xa0] sm:$0xff] }
  0x9c   :  { %v4141_v60 = vld [vmem:[#allocation4 + $0xb0] sm:$0xff]  ;;  %v4145_v61 = vld [vmem:[#allocation4 + $0xc8] sm:$0xff]  ;;  %v4147_v62 = vld [vmem:[#allocation4 + $0xd8] sm:$0xff] }
  0x9d   :  { %v3455_v63 = vld [vmem:[#allocation14 + $0x18] sm:$0xff]   ;;  %v4155_v1 = vld [vmem:[#allocation4 + $0xd0] sm:$0xff]  ;;  %v4157_v2 = vld [vmem:[#allocation4 + $0xe8] sm:$0xff] }
  0x9e   :  { %343 = vmatpush1.bf16.msra.mxu0 %v274_v24  ;;  %416 = vmatpush1.bf16.msra.mxu1 %v276_v25  ;;  %v4153_v0 = vld [vmem:[#allocation4 + $0xc0] sm:$0xff]  ;;  %v4159_v3 = vld [vmem:[#allocation4 + $0xf8] sm:$0xff]  ;;  %v4167_v5 = vld [vmem:[#allocation4 + $0xf0] sm:$0xff] }
  0x9f   :  { %344 = vmatprep.subr.bf16.mxu0 %v279_v26  ;;  %417 = vmatprep.subr.bf16.mxu1 %v281_v27  ;;  %v4165_v4 = vld [vmem:[#allocation4 + $0xe0] sm:$0xff]  ;;  %v286_v13 = vld [vmem:[#allocation17] sm:$0xf] }
  0xa0   :  { %v510_v6 = vld [vmem:[#allocation9] sm:$0xf]  ;;  %v4217_v15 = vrot.slane %v286_v13, %v5231_v9  ;;  %v4225_v18 = vrot.slane %v286_v13, %v5229_v10  ;;  %v291_v19 = vrot.slane %v286_v13, %v5232_v12  ;;  %v295_v22 = vrot.slane %v286_v13, %v5230_v14 }
  0xa2   :  { %345 = vmatpush1.bf16.msra.mxu0 %v278_v28  ;;  %418 = vmatpush1.bf16.msra.mxu1 %v280_v29 }
  0xa3   :  { %346 = vmatprep.subr.bf16.mxu0 %v283_v30  ;;  %419 = vmatprep.subr.bf16.mxu1 %v285_v31 }
  0xa6   :  { %347 = vmatpush1.bf16.msra.mxu0 %v282_v32  ;;  %420 = vmatpush1.bf16.msra.mxu1 %v284_v33 }
  0xa7   :  { %548 = vmatprep.subr.bf16.mxu0 %v4069_v34  ;;  %589 = vmatprep.subr.bf16.mxu1 %v4071_v35 }
  0xa9   :  { %365 = vmatmul.mubr.bf16.vlgmr.msra.gmra.mrb[0].mxu0 %v3452_v36  ;;  %438 = vmatmul.mubr.bf16.vlgmr.msra.gmra.mrb[0].mxu1 %v3452_v36 }
  0xaa   :  { %549 = vmatpush1.bf16.msra.mxu0 %v4075_v37  ;;  %590 = vmatpush1.bf16.msra.mxu1 %v4077_v38 }
  0xab   :  { %550 = vmatprep.subr.bf16.mxu0 %v4079_v39  ;;  %591 = vmatprep.subr.bf16.mxu1 %v4081_v40 }
  0xac   :  { %374 = vmatprep.mubr.bf16.mxu0 %v5233_v11  ;;  %447 = vmatprep.mubr.bf16.mxu1 %v5233_v11 }
  0xae   :  { %551 = vmatpush1.bf16.msra.mxu0 %v4087_v41  ;;  %592 = vmatpush1.bf16.msra.mxu1 %v4089_v42 }
  0xaf   :  { %552 = vmatprep.subr.bf16.mxu0 %v4093_v43  ;;  %593 = vmatprep.subr.bf16.mxu1 %v4095_v44 }
  0xb1   :  { %375 = vmatmul.mubr.bf16.gmra.mrb[4].mxu0 %v3453_v45  ;;  %448 = vmatmul.mubr.bf16.gmra.mrb[4].mxu1 %v3453_v45 }
  0xb2   :  { %553 = vmatpush1.bf16.msra.mxu0 %v4101_v46  ;;  %594 = vmatpush1.bf16.msra.mxu1 %v4103_v47 }
  0xb3   :  { %554 = vmatprep.subr.bf16.mxu0 %v4105_v48  ;;  %595 = vmatprep.subr.bf16.mxu1 %v4107_v49 }
  0xb4   :  { %384 = vmatprep.mubr.bf16.mxu0 %v5233_v11  ;;  %457 = vmatprep.mubr.bf16.mxu1 %v5233_v11 }
  0xb6   :  { %555 = vmatpush1.bf16.msra.mxu0 %v4113_v50  ;;  %596 = vmatpush1.bf16.msra.mxu1 %v4115_v51 }
  0xb7   :  { %556 = vmatprep.subr.bf16.mxu0 %v4119_v52  ;;  %597 = vmatprep.subr.bf16.mxu1 %v4121_v53 }
  0xb9   :  { %385 = vmatmul.mubr.bf16.gmra.mrb[8].mxu0 %v3454_v54  ;;  %458 = vmatmul.mubr.bf16.gmra.mrb[8].mxu1 %v3454_v54 }
  0xba   :  { %557 = vmatpush1.bf16.msra.mxu0 %v4127_v55  ;;  %598 = vmatpush1.bf16.msra.mxu1 %v4129_v56 }
  0xbb   :  { %558 = vmatprep.subr.bf16.mxu0 %v4131_v57  ;;  %599 = vmatprep.subr.bf16.mxu1 %v4133_v58 }
  0xbc   :  { %394 = vmatprep.mubr.bf16.mxu0 %v5233_v11  ;;  %467 = vmatprep.mubr.bf16.mxu1 %v5233_v11 }
  0xbe   :  { %559 = vmatpush1.bf16.msra.mxu0 %v4139_v59  ;;  %600 = vmatpush1.bf16.msra.mxu1 %v4141_v60 }
  0xbf   :  { %560 = vmatprep.subr.bf16.mxu0 %v4145_v61  ;;  %601 = vmatprep.subr.bf16.mxu1 %v4147_v62 }
  0xc1   :  { %395 = vmatmul.mubr.bf16.gmra.mrb[12].mxu0 %v3455_v63  ;;  %468 = vmatmul.mubr.bf16.gmra.mrb[12].mxu1 %v3455_v63 }
  0xc2   :  { %561 = vmatpush1.bf16.msra.mxu0 %v4153_v0  ;;  %602 = vmatpush1.bf16.msra.mxu1 %v4155_v1 }
  0xc3   :  { %562 = vmatprep.subr.bf16.mxu0 %v4157_v2  ;;  %603 = vmatprep.subr.bf16.mxu1 %v4159_v3 }
  0xc4   :  { %580 = vmatprep.mubr.bf16.mxu0 %v5233_v11  ;;  %621 = vmatprep.mubr.bf16.mxu1 %v5233_v11 }
  0xc6   :  { %563 = vmatpush1.bf16.msra.mxu0 %v4165_v4  ;;  %604 = vmatpush1.bf16.msra.mxu1 %v4167_v5 }
  0xc7   :  { %701 = vmatprep.subr.bf16.mxu0 %v4069_v34  ;;  %742 = vmatprep.subr.bf16.mxu1 %v4071_v35 }
  0xc9   :  { %581 = vmatmul.mubr.bf16.vlgmr.msra.gmra.mrb[16].mxu0 %v510_v6  ;;  %622 = vmatmul.mubr.bf16.vlgmr.msra.gmra.mrb[16].mxu1 %v510_v6 }
  0xca   :  { %702 = vmatpush1.bf16.msra.mxu0 %v4075_v37  ;;  %743 = vmatpush1.bf16.msra.mxu1 %v4077_v38 }
  0xcb   :  { %703 = vmatprep.subr.bf16.mxu0 %v4079_v39  ;;  %744 = vmatprep.subr.bf16.mxu1 %v4081_v40 }
  0xcc   :  { %733 = vmatprep.mubr.bf16.mxu0 %v5233_v11  ;;  %774 = vmatprep.mubr.bf16.mxu1 %v5233_v11 }
  0xce   :  { %704 = vmatpush1.bf16.msra.mxu0 %v4087_v41  ;;  %745 = vmatpush1.bf16.msra.mxu1 %v4089_v42 }
  0xcf   :  { %705 = vmatprep.subr.bf16.mxu0 %v4093_v43  ;;  %746 = vmatprep.subr.bf16.mxu1 %v4095_v44 }
  0xd2   :  { %706 = vmatpush1.bf16.msra.mxu0 %v4101_v46  ;;  %747 = vmatpush1.bf16.msra.mxu1 %v4103_v47 }
  0xd3   :  { %707 = vmatprep.subr.bf16.mxu0 %v4105_v48  ;;  %748 = vmatprep.subr.bf16.mxu1 %v4107_v49 }
  0xd6   :  { %708 = vmatpush1.bf16.msra.mxu0 %v4113_v50  ;;  %749 = vmatpush1.bf16.msra.mxu1 %v4115_v51 }
  0xd7   :  { %709 = vmatprep.subr.bf16.mxu0 %v4119_v52  ;;  %750 = vmatprep.subr.bf16.mxu1 %v4121_v53 }
  0xda   :  { %710 = vmatpush1.bf16.msra.mxu0 %v4127_v55  ;;  %751 = vmatpush1.bf16.msra.mxu1 %v4129_v56 }
  0xdb   :  { %711 = vmatprep.subr.bf16.mxu0 %v4131_v57  ;;  %752 = vmatprep.subr.bf16.mxu1 %v4133_v58 }
  0xde   :  { %712 = vmatpush1.bf16.msra.mxu0 %v4139_v59  ;;  %753 = vmatpush1.bf16.msra.mxu1 %v4141_v60 }
  0xdf   :  { %713 = vmatprep.subr.bf16.mxu0 %v4145_v61  ;;  %754 = vmatprep.subr.bf16.mxu1 %v4147_v62 }
  0xe2   :  { %714 = vmatpush1.bf16.msra.mxu0 %v4153_v0  ;;  %755 = vmatpush1.bf16.msra.mxu1 %v4155_v1 }
  0xe3   :  { %715 = vmatprep.subr.bf16.mxu0 %v4157_v2  ;;  %756 = vmatprep.subr.bf16.mxu1 %v4159_v3 }
  0xe6   :  { %716 = vmatpush1.bf16.msra.mxu0 %v4165_v4  ;;  %757 = vmatpush1.bf16.msra.mxu1 %v4167_v5 }
  0xe7   :  { %855 = vmatprep.subr.bf16.mxu0 %v4069_v34  ;;  %896 = vmatprep.subr.bf16.mxu1 %v4071_v35 }
 0x17c   :  { %v4219_v16 = vpop.f32.mrb[0].mxu0  ;;  %v4221_v17 = vpop.f32.mrb[0].mxu1 }
 0x17d   :  { %v368_v20 = vpop.f32.mrb[1].mxu0  ;;  %v441_v21 = vpop.f32.mrb[1].mxu1 }
 0x17e   :  { %v370_v23 = vpop.f32.mrb[2].mxu0  ;;  %v443_v24 = vpop.f32.mrb[2].mxu1 }
 0x17f   :  { %v4231_v25 = vadd.f32 %v370_v23, %v291_v19  ;;  %v372_v26 = vpop.f32.mrb[3].mxu0  ;;  %v4234_v27 = vadd.f32 %v443_v24, %v4217_v15  ;;  %v445_v28 = vpop.f32.mrb[3].mxu1 }
 0x180   :  { %v4236_v29 = vadd.f32 %v372_v26, %v295_v22  ;;  %v4239_v30 = vadd.f32 %v445_v28, %v4225_v18 }
 0x184   :  { %v376_v31 = vpop.f32.mrb[4].mxu0  ;;  %v449_v32 = vpop.f32.mrb[4].mxu1 }
 0x185   :  { %v4241_v33 = vadd.f32 %v376_v31, %v291_v19  ;;  %v378_v36 = vpop.f32.mrb[5].mxu0  ;;  %v4244_v45 = vadd.f32 %v449_v32, %v4217_v15  ;;  %v451_v54 = vpop.f32.mrb[5].mxu1 }
 0x186   :  { %v4246_v63 = vadd.f32 %v378_v36, %v295_v22  ;;  %v380_v6 = vpop.f32.mrb[6].mxu0  ;;  %v4249_v7 = vadd.f32 %v451_v54, %v4225_v18  ;;  %v453_v13 = vpop.f32.mrb[6].mxu1 }
 0x187   :  { %v4251_v23 = vadd.f32 %v380_v6, %v291_v19  ;;  %v382_v24 = vpop.f32.mrb[7].mxu0  ;;  %v4254_v26 = vadd.f32 %v453_v13, %v4217_v15  ;;  %v455_v28 = vpop.f32.mrb[7].mxu1 }
 0x188   :  { %5238 = vst [vmem:[#allocation45_spill] sm:$0xff] %v4249_v7  ;;  %v4256_v31 = vadd.f32 %v382_v24, %v295_v22  ;;  %v4259_v32 = vadd.f32 %v455_v28, %v4225_v18 }
 0x189   :  { %5239 = vst [vmem:[#allocation46_spill] sm:$0xff] %v4251_v23  ;;  %5240 = vst [vmem:[#allocation47_spill] sm:$0xff] %v4254_v26 }
 0x18a   :  { %5241 = vst [vmem:[#allocation48_spill] sm:$0xff] %v4256_v31  ;;  %5242 = vst [vmem:[#allocation49_spill] sm:$0xff] %v4259_v32 }
 0x18c   :  { %v386_v10 = vpop.f32.mrb[8].mxu0  ;;  %v459_v36 = vpop.f32.mrb[8].mxu1 }
 0x18d   :  { %v4261_v14 = vadd.f32 %v386_v10, %v291_v19  ;;  %v388_v9 = vpop.f32.mrb[9].mxu0  ;;  %v4264_v54 = vadd.f32 %v459_v36, %v4217_v15  ;;  %v461_v6 = vpop.f32.mrb[9].mxu1 }
 0x18e   :  { %v4266_v12 = vadd.f32 %v388_v9, %v295_v22  ;;  %v390_v11 = vpop.f32.mrb[10].mxu0  ;;  %v4269_v13 = vadd.f32 %v461_v6, %v4225_v18  ;;  %v463_v24 = vpop.f32.mrb[10].mxu1 }
 0x18f   :  { %5243 = vst [vmem:[#allocation50_spill] sm:$0xff] %v4261_v14  ;;  %5244 = vst [vmem:[#allocation51_spill] sm:$0xff] %v4264_v54  ;;  %v4271_v8 = vadd.f32 %v390_v11, %v291_v19  ;;  %v392_v28 = vpop.f32.mrb[11].mxu0  ;;  %v4274_v32 = vadd.f32 %v463_v24, %v4217_v15  ;;  %v465_v10 = vpop.f32.mrb[11].mxu1 }
 0x190   :  { %5245 = vst [vmem:[#allocation52_spill] sm:$0xff] %v4266_v12  ;;  %5246 = vst [vmem:[#allocation53_spill] sm:$0xff] %v4269_v13  ;;  %v4276_v14 = vadd.f32 %v392_v28, %v295_v22  ;;  %v4279_v36 = vadd.f32 %v465_v10, %v4225_v18 }
 0x191   :  { %5247 = vst [vmem:[#allocation54_spill] sm:$0xff] %v4271_v8  ;;  %5248 = vst [vmem:[#allocation55_spill] sm:$0xff] %v4274_v32 }
 0x192   :  { %5249 = vst [vmem:[#allocation56_spill] sm:$0xff] %v4276_v14  ;;  %5250 = vst [vmem:[#allocation57_spill] sm:$0xff] %v4279_v36 }
 0x194   :  { %v396_v54 = vpop.f32.mrb[12].mxu0  ;;  %v469_v9 = vpop.f32.mrb[12].mxu1 }
 0x195   :  { %v4281_v12 = vadd.f32 %v396_v54, %v291_v19  ;;  %v398_v31 = vpop.f32.mrb[13].mxu0  ;;  %v4284_v6 = vadd.f32 %v469_v9, %v4217_v15  ;;  %v471_v11 = vpop.f32.mrb[13].mxu1 }
 0x196   :  { %v4286_v8 = vadd.f32 %v398_v31, %v295_v22  ;;  %v400_v13 = vpop.f32.mrb[14].mxu0  ;;  %v4289_v24 = vadd.f32 %v471_v11, %v4225_v18  ;;  %v473_v28 = vpop.f32.mrb[14].mxu1  ;;  %v367_v31 = vadd.f32 %v4219_v16, %v291_v19  ;;  %v369_v11 = vadd.f32 %v368_v20, %v295_v22 }
 0x197   :  { %5251 = vst [vmem:[#allocation58_spill] sm:$0xff] %v4281_v12  ;;  %5252 = vst [vmem:[#allocation59_spill] sm:$0xff] %v4284_v6  ;;  %v4291_v14 = vadd.f32 %v400_v13, %v291_v19  ;;  %v402_v10 = vpop.f32.mrb[15].mxu0  ;;  %v4294_v36 = vadd.f32 %v473_v28, %v4217_v15  ;;  %v475_v54 = vpop.f32.mrb[15].mxu1 }
 0x198   :  { %5253 = vst [vmem:[#allocation60_spill] sm:$0xff] %v4286_v8  ;;  %5254 = vst [vmem:[#allocation61_spill] sm:$0xff] %v4289_v24  ;;  %v4296_v12 = vadd.f32 %v402_v10, %v295_v22  ;;  %v4299_v9 = vadd.f32 %v475_v54, %v4225_v18  ;;  %v440_v8 = vadd.f32 %v4221_v17, %v4217_v15 }
 0x199   :  { %5255 = vst [vmem:[#allocation62_spill] sm:$0xff] %v4291_v14  ;;  %5256 = vst [vmem:[#allocation63_spill] sm:$0xff] %v4294_v36  ;;  %v442_v24 = vadd.f32 %v441_v21, %v4225_v18 }
 0x19a   :  { %5257 = vst [vmem:[#allocation64_spill] sm:$0xff] %v4296_v12  ;;  %5258 = vst [vmem:[#allocation65_spill] sm:$0xff] %v4299_v9 }
 0x19c   :  { %v582_v13 = vpop.f32.mrb[16].mxu0  ;;  %v623_v14 = vpop.f32.mrb[16].mxu1 }
 0x19d   :  { %v630_v6 = vadd.f32 %v582_v13, %v367_v31  ;;  %v632_v32 = vadd.f32 %v623_v14, %v440_v8  ;;  %v584_v28 = vpop.f32.mrb[17].mxu0  ;;  %v625_v36 = vpop.f32.mrb[17].mxu1  ;;  %v5259_v31 = vmov 0  }
 0x19e   :  { %v631_v26 = vadd.f32 %v584_v28, %v369_v11  ;;  %v633_v10 = vadd.f32 %v625_v36, %v442_v24  ;;  %v586_v12 = vpop.f32.mrb[18].mxu0  ;;  %v627_v23 = vpop.f32.mrb[18].mxu1 }
 0x19f   :  { %v3335_v54 = vmul.f32 -1.442695, %v630_v6  ;;  %v587_v9 = vpop.f32.mrb[19].mxu0  ;;  %v628_v7 = vpop.f32.mrb[19].mxu1 }
 0x1a0   :  { %v3336_v16 = vmul.f32 -1.442695, %v631_v26  ;;  %v3337_v15 = vmul.f32 -1.442695, %v633_v10 }
 0x1a1   :  { %3460 = vpow2.f32 %v3335_v54 }
 0x1a2   :  { %3462 = vpow2.f32 %v3336_v16 }
 0x1a3   :  { %3464 = vpow2.f32 %v3337_v15 }
 0x1a4   :  { %3466 = vtanh.f32 %v632_v32 }
 0x1ab   :  { %v3461_v17 = vpop.eup %3460 }
 0x1ac   :  { %v3463_v19 = vpop.eup %3462  ;;  %v637_v18 = vadd.f32 1.0, %v3461_v17 }
 0x1ad   :  { %v643_v20 = vadd.f32 1.0, %v3463_v19  ;;  %v3465_v8 = vpop.eup %3464 }
 0x1ae   :  { %3468 = vrcp.f32 %v637_v18  ;;  %v3467_v14 = vpop.eup %3466  ;;  %v650_v23 = vadd.f32 1.0, %v3465_v8 }
 0x1af   :  { %3470 = vrcp.f32 %v643_v20 }
 0x1b0   :  { %3472 = vrcp.f32 %v650_v23 }
 0x1b8   :  { %v3469_v21 = vpop.eup %3468 }
 0x1b9   :  { %v3471_v12 = vpop.eup %3470  ;;  %v654_v22 = vmul.f32 %v3469_v21, %v3467_v14 }
 0x1ba   :  { %v653_v36 = vmul.f32 0.0, %v3471_v12  ;;  %v3473_v26 = vpop.eup %3472 }
 0x1bc   :  { %v4305_v7 = vadd.f32 %v654_v22, %v653_v36 }
 0x1be   :  { %3474 = vtanh.f32 %v4305_v7 }
 0x1c8   :  { %v3475_v6 = vpop.eup %3474 }
 0x1c9   :  { %v657_v24 = vmul.f32 %v3475_v6, %v3473_v26 }
 0x1cb   :  { %v658_v9 = vpack.c.bf16 %v657_v24, %v657_v24 }
 0x1cd   :  { %660 = vst [vmem:[#allocation9] sm:$0xf] %v658_v9  ;;  %661 = vst [vmem:[#allocation8] sm:$0xf] %v658_v9 }
 0x1d4   :  { %v662_v32 = vld [vmem:[#allocation9] sm:$0xf] }
 0x1d5   :  { %734 = vmatmul.mubr.bf16.vlgmr.msra.gmra.mrb[20].mxu0 %v662_v32  ;;  %775 = vmatmul.mubr.bf16.vlgmr.msra.gmra.mrb[20].mxu1 %v662_v32 }
 0x1d6   :  { %856 = vmatpush1.bf16.msra.mxu0 %v4075_v37  ;;  %897 = vmatpush1.bf16.msra.mxu1 %v4077_v38 }
 0x1d7   :  { %857 = vmatprep.subr.bf16.mxu0 %v4079_v39  ;;  %898 = vmatprep.subr.bf16.mxu1 %v4081_v40 }
 0x1d8   :  { %887 = vmatprep.mubr.bf16.mxu0 %v5259_v31  ;;  %928 = vmatprep.mubr.bf16.mxu1 %v5259_v31 }
 0x1da   :  { %858 = vmatpush1.bf16.msra.mxu0 %v4087_v41  ;;  %899 = vmatpush1.bf16.msra.mxu1 %v4089_v42 }
 0x1db   :  { %859 = vmatprep.subr.bf16.mxu0 %v4093_v43  ;;  %900 = vmatprep.subr.bf16.mxu1 %v4095_v44 }
 0x1de   :  { %860 = vmatpush1.bf16.msra.mxu0 %v4101_v46  ;;  %901 = vmatpush1.bf16.msra.mxu1 %v4103_v47 }
 0x1df   :  { %861 = vmatprep.subr.bf16.mxu0 %v4105_v48  ;;  %902 = vmatprep.subr.bf16.mxu1 %v4107_v49 }
 0x1e2   :  { %862 = vmatpush1.bf16.msra.mxu0 %v4113_v50  ;;  %903 = vmatpush1.bf16.msra.mxu1 %v4115_v51 }
 0x1e3   :  { %863 = vmatprep.subr.bf16.mxu0 %v4119_v52  ;;  %904 = vmatprep.subr.bf16.mxu1 %v4121_v53 }
 0x1e6   :  { %864 = vmatpush1.bf16.msra.mxu0 %v4127_v55  ;;  %905 = vmatpush1.bf16.msra.mxu1 %v4129_v56 }
 0x1e7   :  { %865 = vmatprep.subr.bf16.mxu0 %v4131_v57  ;;  %906 = vmatprep.subr.bf16.mxu1 %v4133_v58 }
 0x1ea   :  { %866 = vmatpush1.bf16.msra.mxu0 %v4139_v59  ;;  %907 = vmatpush1.bf16.msra.mxu1 %v4141_v60 }
 0x1eb   :  { %867 = vmatprep.subr.bf16.mxu0 %v4145_v61  ;;  %908 = vmatprep.subr.bf16.mxu1 %v4147_v62 }
 0x1ee   :  { %868 = vmatpush1.bf16.msra.mxu0 %v4153_v0  ;;  %909 = vmatpush1.bf16.msra.mxu1 %v4155_v1 }
 0x1ef   :  { %869 = vmatprep.subr.bf16.mxu0 %v4157_v2  ;;  %910 = vmatprep.subr.bf16.mxu1 %v4159_v3 }
 0x1f2   :  { %870 = vmatpush1.bf16.msra.mxu0 %v4165_v4  ;;  %911 = vmatpush1.bf16.msra.mxu1 %v4167_v5 }
 0x1f3   :  { %1009 = vmatprep.subr.bf16.mxu0 %v4069_v34  ;;  %1050 = vmatprep.subr.bf16.mxu1 %v4071_v35 }
 0x2a8   :  { %v735_v11 = vpop.f32.mrb[20].mxu0  ;;  %v776_v13 = vpop.f32.mrb[20].mxu1 }
 0x2a9   :  { %v783_v28 = vadd.f32 %v735_v11, %v4231_v25  ;;  %v785_v10 = vadd.f32 %v776_v13, %v4234_v27  ;;  %v737_v54 = vpop.f32.mrb[21].mxu0  ;;  %v778_v16 = vpop.f32.mrb[21].mxu1 }
 0x2aa   :  { %v784_v15 = vadd.f32 %v737_v54, %v4236_v29  ;;  %v786_v17 = vadd.f32 %v778_v16, %v4239_v30  ;;  %v739_v19 = vpop.f32.mrb[22].mxu0  ;;  %v780_v18 = vpop.f32.mrb[22].mxu1 }
 0x2ab   :  { %v3338_v20 = vmul.f32 -1.442695, %v783_v28  ;;  %v740_v8 = vpop.f32.mrb[23].mxu0  ;;  %v781_v14 = vpop.f32.mrb[23].mxu1 }
 0x2ac   :  { %v3339_v21 = vmul.f32 -1.442695, %v784_v15  ;;  %v3340_v12 = vmul.f32 -1.442695, %v786_v17  ;;  %v5260_v8 = vld [vmem:[#allocation45_spill] sm:$0xff] }
 0x2ad   :  { %3476 = vpow2.f32 %v3338_v20 }
 0x2ae   :  { %3478 = vpow2.f32 %v3339_v21 }
 0x2af   :  { %3480 = vpow2.f32 %v3340_v12 }
 0x2b0   :  { %3482 = vtanh.f32 %v785_v10 }
 0x2b7   :  { %v3477_v22 = vpop.eup %3476 }
 0x2b8   :  { %v3479_v23 = vpop.eup %3478  ;;  %v790_v25 = vadd.f32 1.0, %v3477_v22 }
 0x2b9   :  { %v796_v27 = vadd.f32 1.0, %v3479_v23  ;;  %v3481_v29 = vpop.eup %3480 }
 0x2ba   :  { %3484 = vrcp.f32 %v790_v25  ;;  %v3483_v36 = vpop.eup %3482  ;;  %v803_v24 = vadd.f32 1.0, %v3481_v29 }
 0x2bb   :  { %3486 = vrcp.f32 %v796_v27 }
 0x2bc   :  { %3488 = vrcp.f32 %v803_v24 }
 0x2c4   :  { %v3485_v30 = vpop.eup %3484 }
 0x2c5   :  { %v3487_v26 = vpop.eup %3486  ;;  %v807_v6 = vmul.f32 %v3485_v30, %v3483_v36 }
 0x2c6   :  { %v806_v9 = vmul.f32 %v3487_v26, %v4305_v7  ;;  %v3489_v11 = vpop.eup %3488 }
 0x2c8   :  { %v4347_v32 = vadd.f32 %v807_v6, %v806_v9 }
 0x2ca   :  { %3490 = vtanh.f32 %v4347_v32 }
 0x2d4   :  { %v3491_v13 = vpop.eup %3490 }
 0x2d5   :  { %v810_v28 = vmul.f32 %v3491_v13, %v3489_v11 }
 0x2d7   :  { %v811_v10 = vpack.c.bf16 %v810_v28, %v810_v28 }
 0x2d9   :  { %813 = vst [vmem:[#allocation9] sm:$0xf] %v811_v10  ;;  %815 = vst [vmem:[#allocation8 + $0x4] sm:$0xf] %v811_v10 }
 0x2e0   :  { %v816_v54 = vld [vmem:[#allocation9] sm:$0xf] }
 0x2e1   :  { %888 = vmatmul.mubr.bf16.vlgmr.msra.gmra.mrb[24].mxu0 %v816_v54  ;;  %929 = vmatmul.mubr.bf16.vlgmr.msra.gmra.mrb[24].mxu1 %v816_v54 }
 0x2e2   :  { %1010 = vmatpush1.bf16.msra.mxu0 %v4075_v37  ;;  %1051 = vmatpush1.bf16.msra.mxu1 %v4077_v38 }
 0x2e3   :  { %1011 = vmatprep.subr.bf16.mxu0 %v4079_v39  ;;  %1052 = vmatprep.subr.bf16.mxu1 %v4081_v40 }
 0x2e4   :  { %1041 = vmatprep.mubr.bf16.mxu0 %v5259_v31  ;;  %1082 = vmatprep.mubr.bf16.mxu1 %v5259_v31 }
 0x2e6   :  { %1012 = vmatpush1.bf16.msra.mxu0 %v4087_v41  ;;  %1053 = vmatpush1.bf16.msra.mxu1 %v4089_v42 }
 0x2e7   :  { %1013 = vmatprep.subr.bf16.mxu0 %v4093_v43  ;;  %1054 = vmatprep.subr.bf16.mxu1 %v4095_v44 }
 0x2ea   :  { %1014 = vmatpush1.bf16.msra.mxu0 %v4101_v46  ;;  %1055 = vmatpush1.bf16.msra.mxu1 %v4103_v47 }
 0x2eb   :  { %1015 = vmatprep.subr.bf16.mxu0 %v4105_v48  ;;  %1056 = vmatprep.subr.bf16.mxu1 %v4107_v49 }
 0x2ee   :  { %1016 = vmatpush1.bf16.msra.mxu0 %v4113_v50  ;;  %1057 = vmatpush1.bf16.msra.mxu1 %v4115_v51 }
 0x2ef   :  { %1017 = vmatprep.subr.bf16.mxu0 %v4119_v52  ;;  %1058 = vmatprep.subr.bf16.mxu1 %v4121_v53 }
 0x2f2   :  { %1018 = vmatpush1.bf16.msra.mxu0 %v4127_v55  ;;  %1059 = vmatpush1.bf16.msra.mxu1 %v4129_v56 }
 0x2f3   :  { %1019 = vmatprep.subr.bf16.mxu0 %v4131_v57  ;;  %1060 = vmatprep.subr.bf16.mxu1 %v4133_v58 }
 0x2f6   :  { %1020 = vmatpush1.bf16.msra.mxu0 %v4139_v59  ;;  %1061 = vmatpush1.bf16.msra.mxu1 %v4141_v60 }
 0x2f7   :  { %1021 = vmatprep.subr.bf16.mxu0 %v4145_v61  ;;  %1062 = vmatprep.subr.bf16.mxu1 %v4147_v62 }
 0x2fa   :  { %1022 = vmatpush1.bf16.msra.mxu0 %v4153_v0  ;;  %1063 = vmatpush1.bf16.msra.mxu1 %v4155_v1 }
 0x2fb   :  { %1023 = vmatprep.subr.bf16.mxu0 %v4157_v2  ;;  %1064 = vmatprep.subr.bf16.mxu1 %v4159_v3 }
 0x2fe   :  { %1024 = vmatpush1.bf16.msra.mxu0 %v4165_v4  ;;  %1065 = vmatpush1.bf16.msra.mxu1 %v4167_v5 }
 0x2ff   :  { %1163 = vmatprep.subr.bf16.mxu0 %v4069_v34  ;;  %1204 = vmatprep.subr.bf16.mxu1 %v4071_v35 }
 0x3b4   :  { %v889_v7 = vpop.f32.mrb[24].mxu0  ;;  %v930_v16 = vpop.f32.mrb[24].mxu1 }
 0x3b5   :  { %v937_v15 = vadd.f32 %v889_v7, %v4241_v33  ;;  %v939_v17 = vadd.f32 %v930_v16, %v4244_v45  ;;  %v891_v19 = vpop.f32.mrb[25].mxu0  ;;  %v932_v18 = vpop.f32.mrb[25].mxu1 }
 0x3b6   :  { %v938_v20 = vadd.f32 %v891_v19, %v4246_v63  ;;  %v940_v14 = vadd.f32 %v932_v18, %v5260_v8  ;;  %v893_v21 = vpop.f32.mrb[26].mxu0  ;;  %v934_v12 = vpop.f32.mrb[26].mxu1  ;;  %v4436_v8 = vld [vmem:[#allocation4 + $0x18] sm:$0xff] }
 0x3b7   :  { %v3341_v22 = vmul.f32 -1.442695, %v937_v15  ;;  %v894_v23 = vpop.f32.mrb[27].mxu0  ;;  %v935_v25 = vpop.f32.mrb[27].mxu1  ;;  %v4442_v21 = vld [vmem:[#allocation4 + $0x10] sm:$0xff]  ;;  %v4446_v12 = vld [vmem:[#allocation4 + $0x28] sm:$0xff] }
 0x3b8   :  { %v3342_v34 = vmul.f32 -1.442695, %v938_v20  ;;  %v3343_v35 = vmul.f32 -1.442695, %v940_v14  ;;  %v4434_v20 = vld [vmem:[#allocation4 + $0x8] sm:$0xff]  ;;  %v4440_v14 = vld [vmem:[#allocation4] sm:$0xff] }
 0x3b9   :  { %3492 = vpow2.f32 %v3341_v22  ;;  %v4448_v22 = vld [vmem:[#allocation4 + $0x38] sm:$0xff]  ;;  %v4452_v23 = vld [vmem:[#allocation4 + $0x20] sm:$0xff]  ;;  %v4454_v25 = vld [vmem:[#allocation4 + $0x30] sm:$0xff] }
 0x3ba   :  { %3494 = vpow2.f32 %v3342_v34  ;;  %v4458_v34 = vld [vmem:[#allocation4 + $0x48] sm:$0xff] }
 0x3bb   :  { %3496 = vpow2.f32 %v3343_v35  ;;  %v4460_v35 = vld [vmem:[#allocation4 + $0x58] sm:$0xff] }
 0x3bc   :  { %3498 = vtanh.f32 %v939_v17 }
 0x3c3   :  { %v3493_v27 = vpop.eup %3492 }
 0x3c4   :  { %v3495_v29 = vpop.eup %3494  ;;  %v944_v33 = vadd.f32 1.0, %v3493_v27  ;;  %v4464_v27 = vld [vmem:[#allocation4 + $0x40] sm:$0xff] }
 0x3c5   :  { %v950_v45 = vadd.f32 1.0, %v3495_v29  ;;  %v3497_v63 = vpop.eup %3496  ;;  %v4466_v29 = vld [vmem:[#allocation4 + $0x50] sm:$0xff] }
 0x3c6   :  { %3500 = vrcp.f32 %v944_v33  ;;  %v3499_v36 = vpop.eup %3498  ;;  %v957_v24 = vadd.f32 1.0, %v3497_v63  ;;  %v4470_v33 = vld [vmem:[#allocation4 + $0x68] sm:$0xff]  ;;  %v4476_v63 = vld [vmem:[#allocation4 + $0x60] sm:$0xff] }
 0x3c7   :  { %3502 = vrcp.f32 %v950_v45  ;;  %v4472_v45 = vld [vmem:[#allocation4 + $0x78] sm:$0xff] }
 0x3c8   :  { %3504 = vrcp.f32 %v957_v24  ;;  %v4490_v24 = vld [vmem:[#allocation4 + $0x90] sm:$0xff] }
 0x3d0   :  { %v3501_v30 = vpop.eup %3500 }
 0x3d1   :  { %v3503_v26 = vpop.eup %3502  ;;  %v961_v6 = vmul.f32 %v3501_v30, %v3499_v36  ;;  %v4478_v36 = vld [vmem:[#allocation4 + $0x70] sm:$0xff]  ;;  %v4482_v30 = vld [vmem:[#allocation4 + $0x88] sm:$0xff] }
 0x3d2   :  { %v960_v9 = vmul.f32 %v3503_v26, %v4347_v32  ;;  %v3505_v13 = vpop.eup %3504  ;;  %v4484_v26 = vld [vmem:[#allocation4 + $0x98] sm:$0xff] }
 0x3d4   :  { %v4389_v11 = vadd.f32 %v961_v6, %v960_v9  ;;  %v4488_v6 = vld [vmem:[#allocation4 + $0x80] sm:$0xff]  ;;  %v4494_v9 = vld [vmem:[#allocation4 + $0xa8] sm:$0xff] }
 0x3d6   :  { %3506 = vtanh.f32 %v4389_v11 }
 0x3e0   :  { %v3507_v28 = vpop.eup %3506 }
 0x3e1   :  { %v964_v10 = vmul.f32 %v3507_v28, %v3505_v13  ;;  %v4500_v13 = vld [vmem:[#allocation4 + $0xa0] sm:$0xff]  ;;  %v4502_v28 = vld [vmem:[#allocation4 + $0xb0] sm:$0xff] }
 0x3e3   :  { %v965_v54 = vpack.c.bf16 %v964_v10, %v964_v10  ;;  %v4506_v10 = vld [vmem:[#allocation4 + $0xc8] sm:$0xff] }
 0x3e5   :  { %967 = vst [vmem:[#allocation9] sm:$0xf] %v965_v54  ;;  %969 = vst [vmem:[#allocation8 + $0x8] sm:$0xf] %v965_v54  ;;  %v4508_v54 = vld [vmem:[#allocation4 + $0xd8] sm:$0xff] }
 0x3ec   :  { %v970_v7 = vld [vmem:[#allocation9] sm:$0xf] }
 0x3ed   :  { %1042 = vmatmul.mubr.bf16.vlgmr.msra.gmra.mrb[28].mxu0 %v970_v7  ;;  %1083 = vmatmul.mubr.bf16.vlgmr.msra.gmra.mrb[28].mxu1 %v970_v7  ;;  %v4510_v7 = vld [vmem:[#allocation4 + $0xc0] sm:$0xff] }
 0x3ee   :  { %1164 = vmatpush1.bf16.msra.mxu0 %v4075_v37  ;;  %1205 = vmatpush1.bf16.msra.mxu1 %v4077_v38 }
 0x3ef   :  { %1165 = vmatprep.subr.bf16.mxu0 %v4079_v39  ;;  %1206 = vmatprep.subr.bf16.mxu1 %v4081_v40  ;;  %v5261_v39 = vld [vmem:[#allocation46_spill] sm:$0xff] }
 0x3f0   :  { %1195 = vmatprep.mubr.bf16.mxu0 %v5259_v31  ;;  %1236 = vmatprep.mubr.bf16.mxu1 %v5259_v31 }
 0x3f2   :  { %1166 = vmatpush1.bf16.msra.mxu0 %v4087_v41  ;;  %1207 = vmatpush1.bf16.msra.mxu1 %v4089_v42  ;;  %v5262_v41 = vld [vmem:[#allocation47_spill] sm:$0xff] }
 0x3f3   :  { %1167 = vmatprep.subr.bf16.mxu0 %v4093_v43  ;;  %1208 = vmatprep.subr.bf16.mxu1 %v4095_v44 }
 0x3f6   :  { %1168 = vmatpush1.bf16.msra.mxu0 %v4101_v46  ;;  %1209 = vmatpush1.bf16.msra.mxu1 %v4103_v47  ;;  %v5263_v46 = vld [vmem:[#allocation48_spill] sm:$0xff] }
 0x3f7   :  { %1169 = vmatprep.subr.bf16.mxu0 %v4105_v48  ;;  %1210 = vmatprep.subr.bf16.mxu1 %v4107_v49  ;;  %v5264_v48 = vld [vmem:[#allocation49_spill] sm:$0xff] }
 0x3fa   :  { %1170 = vmatpush1.bf16.msra.mxu0 %v4113_v50  ;;  %1211 = vmatpush1.bf16.msra.mxu1 %v4115_v51 }
 0x3fb   :  { %1171 = vmatprep.subr.bf16.mxu0 %v4119_v52  ;;  %1212 = vmatprep.subr.bf16.mxu1 %v4121_v53 }
 0x3fe   :  { %1172 = vmatpush1.bf16.msra.mxu0 %v4127_v55  ;;  %1213 = vmatpush1.bf16.msra.mxu1 %v4129_v56 }
 0x3ff   :  { %1173 = vmatprep.subr.bf16.mxu0 %v4131_v57  ;;  %1214 = vmatprep.subr.bf16.mxu1 %v4133_v58 }
 0x402   :  { %1174 = vmatpush1.bf16.msra.mxu0 %v4139_v59  ;;  %1215 = vmatpush1.bf16.msra.mxu1 %v4141_v60 }
 0x403   :  { %1175 = vmatprep.subr.bf16.mxu0 %v4145_v61  ;;  %1216 = vmatprep.subr.bf16.mxu1 %v4147_v62 }
 0x406   :  { %1176 = vmatpush1.bf16.msra.mxu0 %v4153_v0  ;;  %1217 = vmatpush1.bf16.msra.mxu1 %v4155_v1 }
 0x407   :  { %1177 = vmatprep.subr.bf16.mxu0 %v4157_v2  ;;  %1218 = vmatprep.subr.bf16.mxu1 %v4159_v3 }
 0x40a   :  { %1178 = vmatpush1.bf16.msra.mxu0 %v4165_v4  ;;  %1219 = vmatpush1.bf16.msra.mxu1 %v4167_v5 }
 0x40b   :  { %1317 = vmatprep.subr.bf16.mxu0 %v4434_v20  ;;  %1358 = vmatprep.subr.bf16.mxu1 %v4436_v8 }
 0x4c0   :  { %v1043_v37 = vpop.f32.mrb[28].mxu0  ;;  %v1084_v38 = vpop.f32.mrb[28].mxu1 }
 0x4c1   :  { %v1091_v40 = vadd.f32 %v1043_v37, %v5261_v39  ;;  %v1093_v42 = vadd.f32 %v1084_v38, %v5262_v41  ;;  %v1045_v43 = vpop.f32.mrb[29].mxu0  ;;  %v1086_v44 = vpop.f32.mrb[29].mxu1  ;;  %v4514_v37 = vld [vmem:[#allocation4 + $0xd0] sm:$0xff]  ;;  %v4516_v38 = vld [vmem:[#allocation4 + $0xe8] sm:$0xff]  ;;  %v4518_v39 = vld [vmem:[#allocation4 + $0xf8] sm:$0xff] }
 0x4c2   :  { %v1092_v47 = vadd.f32 %v1045_v43, %v5263_v46  ;;  %v1094_v49 = vadd.f32 %v1086_v44, %v5264_v48  ;;  %v1047_v50 = vpop.f32.mrb[30].mxu0  ;;  %v1088_v51 = vpop.f32.mrb[30].mxu1  ;;  %v4526_v41 = vld [vmem:[#allocation4 + $0xf0] sm:$0xff] }
 0x4c3   :  { %v3344_v52 = vmul.f32 -1.442695, %v1091_v40  ;;  %v1048_v53 = vpop.f32.mrb[31].mxu0  ;;  %v1089_v55 = vpop.f32.mrb[31].mxu1  ;;  %v4524_v40 = vld [vmem:[#allocation4 + $0xe0] sm:$0xff]  ;;  %v5265_v44 = vld [vmem:[#allocation50_spill] sm:$0xff] }
 0x4c4   :  { %v3345_v56 = vmul.f32 -1.442695, %v1092_v47  ;;  %v3346_v57 = vmul.f32 -1.442695, %v1094_v49  ;;  %v5266_v47 = vld [vmem:[#allocation51_spill] sm:$0xff]  ;;  %v5267_v51 = vld [vmem:[#allocation52_spill] sm:$0xff] }
 0x4c5   :  { %3508 = vpow2.f32 %v3344_v52  ;;  %v5268_v53 = vld [vmem:[#allocation53_spill] sm:$0xff] }
 0x4c6   :  { %3510 = vpow2.f32 %v3345_v56 }
 0x4c7   :  { %3512 = vpow2.f32 %v3346_v57 }
 0x4c8   :  { %3514 = vtanh.f32 %v1093_v42 }
 0x4cf   :  { %v3509_v58 = vpop.eup %3508 }
 0x4d0   :  { %v3511_v59 = vpop.eup %3510  ;;  %v1098_v60 = vadd.f32 1.0, %v3509_v58 }
 0x4d1   :  { %v1104_v61 = vadd.f32 1.0, %v3511_v59  ;;  %v3513_v62 = vpop.eup %3512 }
 0x4d2   :  { %3516 = vrcp.f32 %v1098_v60  ;;  %v3515_v0 = vpop.eup %3514  ;;  %v1111_v4 = vadd.f32 1.0, %v3513_v62 }
 0x4d3   :  { %3518 = vrcp.f32 %v1104_v61 }
 0x4d4   :  { %3520 = vrcp.f32 %v1111_v4 }
 0x4dc   :  { %v3517_v1 = vpop.eup %3516 }
 0x4dd   :  { %v3519_v2 = vpop.eup %3518  ;;  %v1115_v3 = vmul.f32 %v3517_v1, %v3515_v0 }
 0x4de   :  { %v1114_v5 = vmul.f32 %v3519_v2, %v4389_v11  ;;  %v3521_v16 = vpop.eup %3520  ;;  %v4496_v11 = vld [vmem:[#allocation4 + $0xb8] sm:$0xff] }
 0x4e0   :  { %v4429_v32 = vadd.f32 %v1115_v3, %v1114_v5 }
 0x4e2   :  { %3522 = vtanh.f32 %v4429_v32 }
 0x4ec   :  { %v3523_v15 = vpop.eup %3522 }
 0x4ed   :  { %v1118_v17 = vmul.f32 %v3523_v15, %v3521_v16 }
 0x4ef   :  { %v1119_v19 = vpack.c.bf16 %v1118_v17, %v1118_v17 }
 0x4f1   :  { %1121 = vst [vmem:[#allocation9] sm:$0xf] %v1119_v19  ;;  %1123 = vst [vmem:[#allocation8 + $0xc] sm:$0xf] %v1119_v19 }
 0x4f8   :  { %v1124_v18 = vld [vmem:[#allocation9] sm:$0xf] }
 0x4f9   :  { %1196 = vmatmul.mubr.bf16.vlgmr.msra.gmra.mrb[32].mxu0 %v1124_v18  ;;  %1237 = vmatmul.mubr.bf16.vlgmr.msra.gmra.mrb[32].mxu1 %v1124_v18 }
 0x4fa   :  { %1349 = vmatprep.mubr.bf16.mxu0 %v5259_v31  ;;  %1390 = vmatprep.mubr.bf16.mxu1 %v5259_v31 }
 0x4fb   :  { %1318 = vmatpush1.bf16.msra.mxu0 %v4440_v14  ;;  %1359 = vmatpush1.bf16.msra.mxu1 %v4442_v21 }
 0x4fc   :  { %1319 = vmatprep.subr.bf16.mxu0 %v4446_v12  ;;  %1360 = vmatprep.subr.bf16.mxu1 %v4448_v22 }
 0x4ff   :  { %1320 = vmatpush1.bf16.msra.mxu0 %v4452_v23  ;;  %1361 = vmatpush1.bf16.msra.mxu1 %v4454_v25 }
 0x500   :  { %1321 = vmatprep.subr.bf16.mxu0 %v4458_v34  ;;  %1362 = vmatprep.subr.bf16.mxu1 %v4460_v35 }
 0x503   :  { %1322 = vmatpush1.bf16.msra.mxu0 %v4464_v27  ;;  %1363 = vmatpush1.bf16.msra.mxu1 %v4466_v29 }
 0x504   :  { %1323 = vmatprep.subr.bf16.mxu0 %v4470_v33  ;;  %1364 = vmatprep.subr.bf16.mxu1 %v4472_v45 }
 0x507   :  { %1324 = vmatpush1.bf16.msra.mxu0 %v4476_v63  ;;  %1365 = vmatpush1.bf16.msra.mxu1 %v4478_v36 }
 0x508   :  { %1325 = vmatprep.subr.bf16.mxu0 %v4482_v30  ;;  %1366 = vmatprep.subr.bf16.mxu1 %v4484_v26 }
 0x50b   :  { %1326 = vmatpush1.bf16.msra.mxu0 %v4488_v6  ;;  %1367 = vmatpush1.bf16.msra.mxu1 %v4490_v24 }
 0x50c   :  { %1327 = vmatprep.subr.bf16.mxu0 %v4494_v9  ;;  %1368 = vmatprep.subr.bf16.mxu1 %v4496_v11 }
 0x50f   :  { %1328 = vmatpush1.bf16.msra.mxu0 %v4500_v13  ;;  %1369 = vmatpush1.bf16.msra.mxu1 %v4502_v28 }
 0x510   :  { %1329 = vmatprep.subr.bf16.mxu0 %v4506_v10  ;;  %1370 = vmatprep.subr.bf16.mxu1 %v4508_v54 }
 0x513   :  { %1330 = vmatpush1.bf16.msra.mxu0 %v4510_v7  ;;  %1371 = vmatpush1.bf16.msra.mxu1 %v4514_v37 }
 0x514   :  { %1331 = vmatprep.subr.bf16.mxu0 %v4516_v38  ;;  %1372 = vmatprep.subr.bf16.mxu1 %v4518_v39 }
 0x517   :  { %1332 = vmatpush1.bf16.msra.mxu0 %v4524_v40  ;;  %1373 = vmatpush1.bf16.msra.mxu1 %v4526_v41 }
 0x518   :  { %1471 = vmatprep.subr.bf16.mxu0 %v4434_v20  ;;  %1512 = vmatprep.subr.bf16.mxu1 %v4436_v8 }
 0x5cc   :  { %v1197_v42 = vpop.f32.mrb[32].mxu0  ;;  %v1238_v43 = vpop.f32.mrb[32].mxu1 }
 0x5cd   :  { %v1245_v46 = vadd.f32 %v1197_v42, %v5265_v44  ;;  %v1247_v48 = vadd.f32 %v1238_v43, %v5266_v47  ;;  %v1199_v49 = vpop.f32.mrb[33].mxu0  ;;  %v1240_v50 = vpop.f32.mrb[33].mxu1 }
 0x5ce   :  { %v1246_v52 = vadd.f32 %v1199_v49, %v5267_v51  ;;  %v1248_v55 = vadd.f32 %v1240_v50, %v5268_v53  ;;  %v1201_v56 = vpop.f32.mrb[34].mxu0  ;;  %v1242_v57 = vpop.f32.mrb[34].mxu1  ;;  %v5269_v50 = vld [vmem:[#allocation54_spill] sm:$0xff] }
 0x5cf   :  { %v3347_v58 = vmul.f32 -1.442695, %v1245_v46  ;;  %v1202_v59 = vpop.f32.mrb[35].mxu0  ;;  %v1243_v60 = vpop.f32.mrb[35].mxu1  ;;  %v5271_v57 = vld [vmem:[#allocation56_spill] sm:$0xff] }
 0x5d0   :  { %v3348_v61 = vmul.f32 -1.442695, %v1246_v52  ;;  %v3349_v62 = vmul.f32 -1.442695, %v1248_v55  ;;  %v5270_v52 = vld [vmem:[#allocation55_spill] sm:$0xff]  ;;  %v5272_v59 = vld [vmem:[#allocation57_spill] sm:$0xff] }
 0x5d1   :  { %3524 = vpow2.f32 %v3347_v58 }
 0x5d2   :  { %3526 = vpow2.f32 %v3348_v61 }
 0x5d3   :  { %3528 = vpow2.f32 %v3349_v62 }
 0x5d4   :  { %3530 = vtanh.f32 %v1247_v48 }
 0x5db   :  { %v3525_v0 = vpop.eup %3524 }
 0x5dc   :  { %v3527_v1 = vpop.eup %3526  ;;  %v1252_v2 = vadd.f32 1.0, %v3525_v0 }
 0x5dd   :  { %v1258_v3 = vadd.f32 1.0, %v3527_v1  ;;  %v3529_v4 = vpop.eup %3528 }
 0x5de   :  { %3532 = vrcp.f32 %v1252_v2  ;;  %v3531_v5 = vpop.eup %3530  ;;  %v1265_v19 = vadd.f32 1.0, %v3529_v4 }
 0x5df   :  { %3534 = vrcp.f32 %v1258_v3 }
 0x5e0   :  { %3536 = vrcp.f32 %v1265_v19 }
 0x5e8   :  { %v3533_v16 = vpop.eup %3532 }
 0x5e9   :  { %v3535_v15 = vpop.eup %3534  ;;  %v1269_v17 = vmul.f32 %v3533_v16, %v3531_v5 }
 0x5ea   :  { %v1268_v18 = vmul.f32 %v3535_v15, %v4429_v32  ;;  %v3537_v43 = vpop.eup %3536 }
 0x5ec   :  { %v4537_v42 = vadd.f32 %v1269_v17, %v1268_v18 }
 0x5ee   :  { %3538 = vtanh.f32 %v4537_v42 }
 0x5f8   :  { %v3539_v44 = vpop.eup %3538 }
 0x5f9   :  { %v1272_v46 = vmul.f32 %v3539_v44, %v3537_v43 }
 0x5fb   :  { %v1273_v47 = vpack.c.bf16 %v1272_v46, %v1272_v46 }
 0x5fd   :  { %1277 = vst [vmem:[#allocation8 + $0x10] sm:$0xf] %v1273_v47  ;;  %1275 = vst [vmem:[#allocation9] sm:$0xf] %v1273_v47 }
 0x604   :  { %v1278_v48 = vld [vmem:[#allocation9] sm:$0xf] }
 0x605   :  { %1350 = vmatmul.mubr.bf16.vlgmr.msra.gmra.mrb[36].mxu0 %v1278_v48  ;;  %1391 = vmatmul.mubr.bf16.vlgmr.msra.gmra.mrb[36].mxu1 %v1278_v48 }
 0x606   :  { %1472 = vmatpush1.bf16.msra.mxu0 %v4440_v14  ;;  %1513 = vmatpush1.bf16.msra.mxu1 %v4442_v21 }
 0x607   :  { %1473 = vmatprep.subr.bf16.mxu0 %v4446_v12  ;;  %1514 = vmatprep.subr.bf16.mxu1 %v4448_v22 }
 0x608   :  { %1503 = vmatprep.mubr.bf16.mxu0 %v5259_v31  ;;  %1544 = vmatprep.mubr.bf16.mxu1 %v5259_v31 }
 0x60a   :  { %1474 = vmatpush1.bf16.msra.mxu0 %v4452_v23  ;;  %1515 = vmatpush1.bf16.msra.mxu1 %v4454_v25 }
 0x60b   :  { %1475 = vmatprep.subr.bf16.mxu0 %v4458_v34  ;;  %1516 = vmatprep.subr.bf16.mxu1 %v4460_v35 }
 0x60e   :  { %1476 = vmatpush1.bf16.msra.mxu0 %v4464_v27  ;;  %1517 = vmatpush1.bf16.msra.mxu1 %v4466_v29 }
 0x60f   :  { %1477 = vmatprep.subr.bf16.mxu0 %v4470_v33  ;;  %1518 = vmatprep.subr.bf16.mxu1 %v4472_v45 }
 0x612   :  { %1478 = vmatpush1.bf16.msra.mxu0 %v4476_v63  ;;  %1519 = vmatpush1.bf16.msra.mxu1 %v4478_v36 }
 0x613   :  { %1479 = vmatprep.subr.bf16.mxu0 %v4482_v30  ;;  %1520 = vmatprep.subr.bf16.mxu1 %v4484_v26 }
 0x616   :  { %1480 = vmatpush1.bf16.msra.mxu0 %v4488_v6  ;;  %1521 = vmatpush1.bf16.msra.mxu1 %v4490_v24 }
 0x617   :  { %1481 = vmatprep.subr.bf16.mxu0 %v4494_v9  ;;  %1522 = vmatprep.subr.bf16.mxu1 %v4496_v11 }
 0x61a   :  { %1482 = vmatpush1.bf16.msra.mxu0 %v4500_v13  ;;  %1523 = vmatpush1.bf16.msra.mxu1 %v4502_v28 }
 0x61b   :  { %1483 = vmatprep.subr.bf16.mxu0 %v4506_v10  ;;  %1524 = vmatprep.subr.bf16.mxu1 %v4508_v54 }
 0x61e   :  { %1484 = vmatpush1.bf16.msra.mxu0 %v4510_v7  ;;  %1525 = vmatpush1.bf16.msra.mxu1 %v4514_v37 }
 0x61f   :  { %1485 = vmatprep.subr.bf16.mxu0 %v4516_v38  ;;  %1526 = vmatprep.subr.bf16.mxu1 %v4518_v39 }
 0x622   :  { %1486 = vmatpush1.bf16.msra.mxu0 %v4524_v40  ;;  %1527 = vmatpush1.bf16.msra.mxu1 %v4526_v41 }
 0x623   :  { %1625 = vmatprep.subr.bf16.mxu0 %v4434_v20  ;;  %1666 = vmatprep.subr.bf16.mxu1 %v4436_v8 }
 0x6d8   :  { %v1351_v32 = vpop.f32.mrb[36].mxu0  ;;  %v1392_v49 = vpop.f32.mrb[36].mxu1 }
 0x6d9   :  { %v1399_v51 = vadd.f32 %v1351_v32, %v5269_v50  ;;  %v1401_v53 = vadd.f32 %v1392_v49, %v5270_v52  ;;  %v1353_v55 = vpop.f32.mrb[37].mxu0  ;;  %v1394_v56 = vpop.f32.mrb[37].mxu1 }
 0x6da   :  { %v1400_v58 = vadd.f32 %v1353_v55, %v5271_v57  ;;  %v1402_v60 = vadd.f32 %v1394_v56, %v5272_v59  ;;  %v1355_v61 = vpop.f32.mrb[38].mxu0  ;;  %v1396_v62 = vpop.f32.mrb[38].mxu1  ;;  %v1748_v59 = vld [vmem:[#allocation3] sm:$0xff] }
 0x6db   :  { %v3350_v0 = vmul.f32 -1.442695, %v1399_v51  ;;  %v1356_v1 = vpop.f32.mrb[39].mxu0  ;;  %v1397_v2 = vpop.f32.mrb[39].mxu1  ;;  %v1753_v61 = vld [vmem:[#allocation3 + $0x28] sm:$0xff] }
 0x6dc   :  { %v3351_v20 = vmul.f32 -1.442695, %v1400_v58  ;;  %v3352_v8 = vmul.f32 -1.442695, %v1402_v60  ;;  %v1750_v60 = vld [vmem:[#allocation3 + $0x10] sm:$0xff]  ;;  %v1752_v1 = vld [vmem:[#allocation3 + $0x20] sm:$0xff] }
 0x6dd   :  { %3540 = vpow2.f32 %v3350_v0  ;;  %v1755_v0 = vld [vmem:[#allocation3 + $0x38] sm:$0xff]  ;;  %v1754_v2 = vld [vmem:[#allocation3 + $0x30] sm:$0xff] }
 0x6de   :  { %3542 = vpow2.f32 %v3351_v20  ;;  %v1757_v20 = vld [vmem:[#allocation3 + $0x48] sm:$0xff] }
 0x6df   :  { %3544 = vpow2.f32 %v3352_v8  ;;  %v1759_v8 = vld [vmem:[#allocation3 + $0x58] sm:$0xff] }
 0x6e0   :  { %3546 = vtanh.f32 %v1401_v53 }
 0x6e7   :  { %v3541_v3 = vpop.eup %3540 }
 0x6e8   :  { %v3543_v4 = vpop.eup %3542  ;;  %v1406_v5 = vadd.f32 1.0, %v3541_v3  ;;  %v1756_v3 = vld [vmem:[#allocation3 + $0x40] sm:$0xff] }
 0x6e9   :  { %v1412_v16 = vadd.f32 1.0, %v3543_v4  ;;  %v3545_v15 = vpop.eup %3544  ;;  %v1758_v4 = vld [vmem:[#allocation3 + $0x50] sm:$0xff] }
 0x6ea   :  { %3548 = vrcp.f32 %v1406_v5  ;;  %v3547_v17 = vpop.eup %3546  ;;  %v1419_v44 = vadd.f32 1.0, %v3545_v15  ;;  %v1761_v5 = vld [vmem:[#allocation3 + $0x68] sm:$0xff]  ;;  %v1760_v15 = vld [vmem:[#allocation3 + $0x60] sm:$0xff] }
 0x6eb   :  { %3550 = vrcp.f32 %v1412_v16  ;;  %v1763_v16 = vld [vmem:[#allocation3 + $0x78] sm:$0xff] }
 0x6ec   :  { %3552 = vrcp.f32 %v1419_v44  ;;  %v1766_v44 = vld [vmem:[#allocation3 + $0x90] sm:$0xff] }
 0x6f4   :  { %v3549_v19 = vpop.eup %3548 }
 0x6f5   :  { %v3551_v18 = vpop.eup %3550  ;;  %v1423_v43 = vmul.f32 %v3549_v19, %v3547_v17  ;;  %v1762_v17 = vld [vmem:[#allocation3 + $0x70] sm:$0xff]  ;;  %v1765_v19 = vld [vmem:[#allocation3 + $0x88] sm:$0xff] }
 0x6f6   :  { %v1422_v46 = vmul.f32 %v3551_v18, %v4537_v42  ;;  %v3553_v48 = vpop.eup %3552  ;;  %v1767_v18 = vld [vmem:[#allocation3 + $0x98] sm:$0xff] }
 0x6f8   :  { %v4579_v47 = vadd.f32 %v1423_v43, %v1422_v46  ;;  %v1764_v43 = vld [vmem:[#allocation3 + $0x80] sm:$0xff]  ;;  %v1769_v46 = vld [vmem:[#allocation3 + $0xa8] sm:$0xff] }
 0x6fa   :  { %3554 = vtanh.f32 %v4579_v47 }
 0x704   :  { %v3555_v32 = vpop.eup %3554 }
 0x705   :  { %v1426_v49 = vmul.f32 %v3555_v32, %v3553_v48  ;;  %v1768_v48 = vld [vmem:[#allocation3 + $0xa0] sm:$0xff]  ;;  %v1770_v32 = vld [vmem:[#allocation3 + $0xb0] sm:$0xff] }
 0x707   :  { %v1427_v50 = vpack.c.bf16 %v1426_v49, %v1426_v49  ;;  %v1773_v49 = vld [vmem:[#allocation3 + $0xc8] sm:$0xff] }
 0x709   :  { %1431 = vst [vmem:[#allocation8 + $0x14] sm:$0xf] %v1427_v50  ;;  %1429 = vst [vmem:[#allocation9] sm:$0xf] %v1427_v50  ;;  %v1775_v50 = vld [vmem:[#allocation3 + $0xd8] sm:$0xff] }
 0x710   :  { %v1432_v51 = vld [vmem:[#allocation9] sm:$0xf] }
 0x711   :  { %1504 = vmatmul.mubr.bf16.vlgmr.msra.gmra.mrb[40].mxu0 %v1432_v51  ;;  %1545 = vmatmul.mubr.bf16.vlgmr.msra.gmra.mrb[40].mxu1 %v1432_v51  ;;  %v1772_v51 = vld [vmem:[#allocation3 + $0xc0] sm:$0xff] }
 0x712   :  { %1626 = vmatpush1.bf16.msra.mxu0 %v4440_v14  ;;  %1667 = vmatpush1.bf16.msra.mxu1 %v4442_v21  ;;  %v1749_v14 = vld [vmem:[#allocation3 + $0x8] sm:$0xff]  ;;  %v1751_v21 = vld [vmem:[#allocation3 + $0x18] sm:$0xff] }
 0x713   :  { %1627 = vmatprep.subr.bf16.mxu0 %v4446_v12  ;;  %1668 = vmatprep.subr.bf16.mxu1 %v4448_v22 }
 0x714   :  { %1657 = vmatprep.mubr.bf16.mxu0 %v5259_v31  ;;  %1698 = vmatprep.mubr.bf16.mxu1 %v5259_v31 }
 0x716   :  { %1628 = vmatpush1.bf16.msra.mxu0 %v4452_v23  ;;  %1669 = vmatpush1.bf16.msra.mxu1 %v4454_v25  ;;  %v5273_v23 = vld [vmem:[#allocation58_spill] sm:$0xff] }
 0x717   :  { %1629 = vmatprep.subr.bf16.mxu0 %v4458_v34  ;;  %1670 = vmatprep.subr.bf16.mxu1 %v4460_v35  ;;  %v5274_v34 = vld [vmem:[#allocation59_spill] sm:$0xff] }
 0x71a   :  { %1630 = vmatpush1.bf16.msra.mxu0 %v4464_v27  ;;  %1671 = vmatpush1.bf16.msra.mxu1 %v4466_v29 }
 0x71b   :  { %1631 = vmatprep.subr.bf16.mxu0 %v4470_v33  ;;  %1672 = vmatprep.subr.bf16.mxu1 %v4472_v45  ;;  %v5275_v33 = vld [vmem:[#allocation60_spill] sm:$0xff] }
 0x71e   :  { %1632 = vmatpush1.bf16.msra.mxu0 %v4476_v63  ;;  %1673 = vmatpush1.bf16.msra.mxu1 %v4478_v36  ;;  %v5276_v63 = vld [vmem:[#allocation61_spill] sm:$0xff] }
 0x71f   :  { %1633 = vmatprep.subr.bf16.mxu0 %v4482_v30  ;;  %1674 = vmatprep.subr.bf16.mxu1 %v4484_v26 }
 0x722   :  { %1634 = vmatpush1.bf16.msra.mxu0 %v4488_v6  ;;  %1675 = vmatpush1.bf16.msra.mxu1 %v4490_v24 }
 0x723   :  { %1635 = vmatprep.subr.bf16.mxu0 %v4494_v9  ;;  %1676 = vmatprep.subr.bf16.mxu1 %v4496_v11 }
 0x726   :  { %1636 = vmatpush1.bf16.msra.mxu0 %v4500_v13  ;;  %1677 = vmatpush1.bf16.msra.mxu1 %v4502_v28 }
 0x727   :  { %1637 = vmatprep.subr.bf16.mxu0 %v4506_v10  ;;  %1678 = vmatprep.subr.bf16.mxu1 %v4508_v54 }
 0x72a   :  { %1638 = vmatpush1.bf16.msra.mxu0 %v4510_v7  ;;  %1679 = vmatpush1.bf16.msra.mxu1 %v4514_v37 }
 0x72b   :  { %1639 = vmatprep.subr.bf16.mxu0 %v4516_v38  ;;  %1680 = vmatprep.subr.bf16.mxu1 %v4518_v39 }
 0x72e   :  { %1640 = vmatpush1.bf16.msra.mxu0 %v4524_v40  ;;  %1681 = vmatpush1.bf16.msra.mxu1 %v4526_v41 }
 0x72f   :  { %1826 = vmatprep.subr.bf16.mxu0 %v1749_v14  ;;  %1899 = vmatprep.subr.bf16.mxu1 %v1751_v21  ;;  %v1774_v14 = vld [vmem:[#allocation3 + $0xd0] sm:$0xff]  ;;  %v1777_v21 = vld [vmem:[#allocation3 + $0xe8] sm:$0xff] }
 0x7e4   :  { %v1505_v12 = vpop.f32.mrb[40].mxu0  ;;  %v1546_v22 = vpop.f32.mrb[40].mxu1 }
 0x7e5   :  { %v1553_v25 = vadd.f32 %v1505_v12, %v5273_v23  ;;  %v1555_v35 = vadd.f32 %v1546_v22, %v5274_v34  ;;  %v1507_v27 = vpop.f32.mrb[41].mxu0  ;;  %v1548_v29 = vpop.f32.mrb[41].mxu1  ;;  %v1779_v12 = vld [vmem:[#allocation3 + $0xf8] sm:$0xff]  ;;  %v1776_v22 = vld [vmem:[#allocation3 + $0xe0] sm:$0xff]  ;;  %v1778_v23 = vld [vmem:[#allocation3 + $0xf0] sm:$0xff] }
 0x7e6   :  { %v1554_v45 = vadd.f32 %v1507_v27, %v5275_v33  ;;  %v1556_v36 = vadd.f32 %v1548_v29, %v5276_v63  ;;  %v1509_v30 = vpop.f32.mrb[42].mxu0  ;;  %v1550_v26 = vpop.f32.mrb[42].mxu1  ;;  %v3457_v34 = vld [vmem:[#allocation8 + $0x8] sm:$0xff]   ;;  %v4632_v29 = vld [vmem:[#allocation5 + $0x18] sm:$0xff]  ;;  %v4636_v33 = vld [vmem:[#allocation5] sm:$0xff] }
 0x7e7   :  { %v3353_v6 = vmul.f32 -1.442695, %v1553_v25  ;;  %v1510_v24 = vpop.f32.mrb[43].mxu0  ;;  %v1551_v9 = vpop.f32.mrb[43].mxu1  ;;  %v3456_v25 = vld [vmem:[#allocation8] sm:$0xff]   ;;  %v4630_v27 = vld [vmem:[#allocation5 + $0x8] sm:$0xff] }
 0x7e8   :  { %v3354_v11 = vmul.f32 -1.442695, %v1554_v45  ;;  %v3355_v13 = vmul.f32 -1.442695, %v1556_v36  ;;  %v4638_v45 = vld [vmem:[#allocation5 + $0x10] sm:$0xff]  ;;  %v4642_v63 = vld [vmem:[#allocation5 + $0x28] sm:$0xff] }
 0x7e9   :  { %3556 = vpow2.f32 %v3353_v6  ;;  %v4644_v36 = vld [vmem:[#allocation5 + $0x38] sm:$0xff]  ;;  %v4648_v30 = vld [vmem:[#allocation5 + $0x20] sm:$0xff]  ;;  %v4650_v26 = vld [vmem:[#allocation5 + $0x30] sm:$0xff] }
 0x7ea   :  { %3558 = vpow2.f32 %v3354_v11  ;;  %v4654_v6 = vld [vmem:[#allocation5 + $0x48] sm:$0xff]  ;;  %v4656_v24 = vld [vmem:[#allocation5 + $0x58] sm:$0xff]  ;;  %v4660_v9 = vld [vmem:[#allocation5 + $0x40] sm:$0xff] }
 0x7eb   :  { %3560 = vpow2.f32 %v3355_v13  ;;  %v4662_v11 = vld [vmem:[#allocation5 + $0x50] sm:$0xff]  ;;  %v4666_v13 = vld [vmem:[#allocation5 + $0x68] sm:$0xff] }
 0x7ec   :  { %3562 = vtanh.f32 %v1555_v35  ;;  %v3458_v35 = vld [vmem:[#allocation8 + $0x10] sm:$0xff]  }
 0x7f3   :  { %v3557_v28 = vpop.eup %3556 }
 0x7f4   :  { %v3559_v10 = vpop.eup %3558  ;;  %v1560_v54 = vadd.f32 1.0, %v3557_v28  ;;  %v4668_v28 = vld [vmem:[#allocation5 + $0x78] sm:$0xff] }
 0x7f5   :  { %v1566_v7 = vadd.f32 1.0, %v3559_v10  ;;  %v3561_v37 = vpop.eup %3560  ;;  %v4672_v10 = vld [vmem:[#allocation5 + $0x60] sm:$0xff] }
 0x7f6   :  { %3564 = vrcp.f32 %v1560_v54  ;;  %v3563_v38 = vpop.eup %3562  ;;  %v1573_v42 = vadd.f32 1.0, %v3561_v37  ;;  %v4674_v54 = vld [vmem:[#allocation5 + $0x70] sm:$0xff]  ;;  %v4680_v37 = vld [vmem:[#allocation5 + $0x98] sm:$0xff] }
 0x7f7   :  { %3566 = vrcp.f32 %v1566_v7  ;;  %v4678_v7 = vld [vmem:[#allocation5 + $0x88] sm:$0xff] }
 0x7f8   :  { %3568 = vrcp.f32 %v1573_v42  ;;  %v4696_v42 = vld [vmem:[#allocation5 + $0xa0] sm:$0xff] }
 0x800   :  { %v3565_v39 = vpop.eup %3564 }
 0x801   :  { %v3567_v40 = vpop.eup %3566  ;;  %v1577_v41 = vmul.f32 %v3565_v39, %v3563_v38  ;;  %v4684_v38 = vld [vmem:[#allocation5 + $0x80] sm:$0xff]  ;;  %v4686_v39 = vld [vmem:[#allocation5 + $0x90] sm:$0xff] }
 0x802   :  { %v1576_v52 = vmul.f32 %v3567_v40, %v4579_v47  ;;  %v3569_v55 = vpop.eup %3568  ;;  %v1771_v47 = vld [vmem:[#allocation3 + $0xb8] sm:$0xff]  ;;  %v4690_v40 = vld [vmem:[#allocation5 + $0xa8] sm:$0xff] }
 0x804   :  { %v4619_v53 = vadd.f32 %v1577_v41, %v1576_v52  ;;  %v4692_v41 = vld [vmem:[#allocation5 + $0xb8] sm:$0xff]  ;;  %v4698_v52 = vld [vmem:[#allocation5 + $0xb0] sm:$0xff] }
 0x806   :  { %3570 = vtanh.f32 %v4619_v53 }
 0x810   :  { %v3571_v56 = vpop.eup %3570 }
 0x811   :  { %v1580_v57 = vmul.f32 %v3571_v56, %v3569_v55  ;;  %v4702_v55 = vld [vmem:[#allocation5 + $0xc8] sm:$0xff]  ;;  %v4704_v56 = vld [vmem:[#allocation5 + $0xd8] sm:$0xff] }
 0x813   :  { %v1581_v58 = vpack.c.bf16 %v1580_v57, %v1580_v57  ;;  %v4706_v57 = vld [vmem:[#allocation5 + $0xc0] sm:$0xff] }
 0x815   :  { %1585 = vst [vmem:[#allocation8 + $0x18] sm:$0xf] %v1581_v58  ;;  %1583 = vst [vmem:[#allocation9] sm:$0xf] %v1581_v58  ;;  %v4710_v58 = vld [vmem:[#allocation5 + $0xd0] sm:$0xff] }
 0x81c   :  { %v1586_v62 = vld [vmem:[#allocation9] sm:$0xf] }
 0x81d   :  { %1658 = vmatmul.mubr.bf16.vlgmr.msra.gmra.mrb[44].mxu0 %v1586_v62  ;;  %1699 = vmatmul.mubr.bf16.vlgmr.msra.gmra.mrb[44].mxu1 %v1586_v62  ;;  %v4722_v62 = vld [vmem:[#allocation5 + $0xf0] sm:$0xff] }
 0x81e   :  { %1827 = vmatpush1.bf16.msra.mxu0 %v1748_v59  ;;  %1900 = vmatpush1.bf16.msra.mxu1 %v1750_v60  ;;  %v4712_v59 = vld [vmem:[#allocation5 + $0xe8] sm:$0xff]  ;;  %v4714_v60 = vld [vmem:[#allocation5 + $0xf8] sm:$0xff] }
 0x81f   :  { %1828 = vmatprep.subr.bf16.mxu0 %v1753_v61  ;;  %1901 = vmatprep.subr.bf16.mxu1 %v1755_v0  ;;  %v4720_v61 = vld [vmem:[#allocation5 + $0xe0] sm:$0xff] }
 0x820   :  { %1858 = vmatprep.mubr.bf16.mxu0 %v5259_v31  ;;  %1931 = vmatprep.mubr.bf16.mxu1 %v5259_v31 }
 0x822   :  { %1829 = vmatpush1.bf16.msra.mxu0 %v1752_v1  ;;  %1902 = vmatpush1.bf16.msra.mxu1 %v1754_v2  ;;  %v5277_v2 = vld [vmem:[#allocation62_spill] sm:$0xff] }
 0x823   :  { %1830 = vmatprep.subr.bf16.mxu0 %v1757_v20  ;;  %1903 = vmatprep.subr.bf16.mxu1 %v1759_v8  ;;  %v5278_v8 = vld [vmem:[#allocation63_spill] sm:$0xff] }
 0x826   :  { %1831 = vmatpush1.bf16.msra.mxu0 %v1756_v3  ;;  %1904 = vmatpush1.bf16.msra.mxu1 %v1758_v4 }
 0x827   :  { %1832 = vmatprep.subr.bf16.mxu0 %v1761_v5  ;;  %1905 = vmatprep.subr.bf16.mxu1 %v1763_v16  ;;  %v5279_v16 = vld [vmem:[#allocation64_spill] sm:$0xff] }
 0x82a   :  { %1833 = vmatpush1.bf16.msra.mxu0 %v1760_v15  ;;  %1906 = vmatpush1.bf16.msra.mxu1 %v1762_v17  ;;  %v5280_v17 = vld [vmem:[#allocation65_spill] sm:$0xff] }
 0x82b   :  { %1834 = vmatprep.subr.bf16.mxu0 %v1765_v19  ;;  %1907 = vmatprep.subr.bf16.mxu1 %v1767_v18 }
 0x82e   :  { %1835 = vmatpush1.bf16.msra.mxu0 %v1764_v43  ;;  %1908 = vmatpush1.bf16.msra.mxu1 %v1766_v44 }
 0x82f   :  { %1836 = vmatprep.subr.bf16.mxu0 %v1769_v46  ;;  %1909 = vmatprep.subr.bf16.mxu1 %v1771_v47 }
 0x832   :  { %1837 = vmatpush1.bf16.msra.mxu0 %v1768_v48  ;;  %1910 = vmatpush1.bf16.msra.mxu1 %v1770_v32 }
 0x833   :  { %1838 = vmatprep.subr.bf16.mxu0 %v1773_v49  ;;  %1911 = vmatprep.subr.bf16.mxu1 %v1775_v50 }
 0x836   :  { %1839 = vmatpush1.bf16.msra.mxu0 %v1772_v51  ;;  %1912 = vmatpush1.bf16.msra.mxu1 %v1774_v14 }
 0x837   :  { %1840 = vmatprep.subr.bf16.mxu0 %v1777_v21  ;;  %1913 = vmatprep.subr.bf16.mxu1 %v1779_v12 }
 0x83a   :  { %1841 = vmatpush1.bf16.msra.mxu0 %v1776_v22  ;;  %1914 = vmatpush1.bf16.msra.mxu1 %v1778_v23 }
 0x83b   :  { %2042 = vmatprep.subr.bf16.mxu0 %v4630_v27  ;;  %2083 = vmatprep.subr.bf16.mxu1 %v4632_v29 }
 0x83d   :  { %1859 = vmatmul.mubr.bf16.vlgmr.msra.gmra.mrb[48].mxu0 %v3456_v25  ;;  %1932 = vmatmul.mubr.bf16.vlgmr.msra.gmra.mrb[48].mxu1 %v3456_v25 }
 0x83e   :  { %1868 = vmatprep.mubr.bf16.mxu0 %v5259_v31  ;;  %1941 = vmatprep.mubr.bf16.mxu1 %v5259_v31 }
 0x83f   :  { %2043 = vmatpush1.bf16.msra.mxu0 %v4636_v33  ;;  %2084 = vmatpush1.bf16.msra.mxu1 %v4638_v45 }
 0x840   :  { %2044 = vmatprep.subr.bf16.mxu0 %v4642_v63  ;;  %2085 = vmatprep.subr.bf16.mxu1 %v4644_v36 }
 0x843   :  { %2045 = vmatpush1.bf16.msra.mxu0 %v4648_v30  ;;  %2086 = vmatpush1.bf16.msra.mxu1 %v4650_v26 }
 0x844   :  { %2046 = vmatprep.subr.bf16.mxu0 %v4654_v6  ;;  %2087 = vmatprep.subr.bf16.mxu1 %v4656_v24 }
 0x845   :  { %1869 = vmatmul.mubr.bf16.gmra.mrb[52].mxu0 %v3457_v34  ;;  %1942 = vmatmul.mubr.bf16.gmra.mrb[52].mxu1 %v3457_v34 }
 0x846   :  { %1878 = vmatprep.mubr.bf16.mxu0 %v5259_v31  ;;  %1951 = vmatprep.mubr.bf16.mxu1 %v5259_v31 }
 0x847   :  { %2047 = vmatpush1.bf16.msra.mxu0 %v4660_v9  ;;  %2088 = vmatpush1.bf16.msra.mxu1 %v4662_v11 }
 0x848   :  { %2048 = vmatprep.subr.bf16.mxu0 %v4666_v13  ;;  %2089 = vmatprep.subr.bf16.mxu1 %v4668_v28 }
 0x84b   :  { %2049 = vmatpush1.bf16.msra.mxu0 %v4672_v10  ;;  %2090 = vmatpush1.bf16.msra.mxu1 %v4674_v54 }
 0x84c   :  { %2050 = vmatprep.subr.bf16.mxu0 %v4678_v7  ;;  %2091 = vmatprep.subr.bf16.mxu1 %v4680_v37 }
 0x84d   :  { %1879 = vmatmul.mubr.bf16.gmra.mrb[56].mxu0 %v3458_v35  ;;  %1952 = vmatmul.mubr.bf16.gmra.mrb[56].mxu1 %v3458_v35 }
 0x84e   :  { %1888 = vmatprep.mubr.bf16.mxu0 %v5259_v31  ;;  %1961 = vmatprep.mubr.bf16.mxu1 %v5259_v31 }
 0x84f   :  { %2051 = vmatpush1.bf16.msra.mxu0 %v4684_v38  ;;  %2092 = vmatpush1.bf16.msra.mxu1 %v4686_v39 }
 0x850   :  { %2052 = vmatprep.subr.bf16.mxu0 %v4690_v40  ;;  %2093 = vmatprep.subr.bf16.mxu1 %v4692_v41 }
 0x853   :  { %2053 = vmatpush1.bf16.msra.mxu0 %v4696_v42  ;;  %2094 = vmatpush1.bf16.msra.mxu1 %v4698_v52 }
 0x854   :  { %2054 = vmatprep.subr.bf16.mxu0 %v4702_v55  ;;  %2095 = vmatprep.subr.bf16.mxu1 %v4704_v56 }
 0x857   :  { %2055 = vmatpush1.bf16.msra.mxu0 %v4706_v57  ;;  %2096 = vmatpush1.bf16.msra.mxu1 %v4710_v58 }
 0x858   :  { %2056 = vmatprep.subr.bf16.mxu0 %v4712_v59  ;;  %2097 = vmatprep.subr.bf16.mxu1 %v4714_v60 }
 0x85b   :  { %2057 = vmatpush1.bf16.msra.mxu0 %v4720_v61  ;;  %2098 = vmatpush1.bf16.msra.mxu1 %v4722_v62 }
 0x85c   :  { %2193 = vmatprep.subr.bf16.mxu0 %v4630_v27  ;;  %2234 = vmatprep.subr.bf16.mxu1 %v4632_v29 }
 0x8f0   :  { %v1659_v0 = vpop.f32.mrb[44].mxu0  ;;  %v1700_v1 = vpop.f32.mrb[44].mxu1 }
 0x8f1   :  { %v1707_v20 = vadd.f32 %v1659_v0, %v5277_v2  ;;  %v1709_v3 = vadd.f32 %v1700_v1, %v5278_v8  ;;  %v1661_v4 = vpop.f32.mrb[45].mxu0  ;;  %v1702_v5 = vpop.f32.mrb[45].mxu1 }
 0x8f2   :  { %v1708_v15 = vadd.f32 %v1661_v4, %v5279_v16  ;;  %v1710_v19 = vadd.f32 %v1702_v5, %v5280_v17  ;;  %v1663_v18 = vpop.f32.mrb[46].mxu0  ;;  %v1704_v43 = vpop.f32.mrb[46].mxu1 }
 0x8f3   :  { %v3356_v44 = vmul.f32 -1.442695, %v1707_v20  ;;  %v1664_v46 = vpop.f32.mrb[47].mxu0  ;;  %v1705_v47 = vpop.f32.mrb[47].mxu1 }
 0x8f4   :  { %v3357_v48 = vmul.f32 -1.442695, %v1708_v15  ;;  %v3358_v32 = vmul.f32 -1.442695, %v1710_v19 }
 0x8f5   :  { %3572 = vpow2.f32 %v3356_v44 }
 0x8f6   :  { %3574 = vpow2.f32 %v3357_v48 }
 0x8f7   :  { %3576 = vpow2.f32 %v3358_v32 }
 0x8f8   :  { %3578 = vtanh.f32 %v1709_v3 }
 0x8ff   :  { %v3573_v49 = vpop.eup %3572 }
 0x900   :  { %v3575_v50 = vpop.eup %3574  ;;  %v1714_v51 = vadd.f32 1.0, %v3573_v49 }
 0x901   :  { %v1720_v14 = vadd.f32 1.0, %v3575_v50  ;;  %v3577_v21 = vpop.eup %3576 }
 0x902   :  { %3580 = vrcp.f32 %v1714_v51  ;;  %v3579_v12 = vpop.eup %3578  ;;  %v1727_v34 = vadd.f32 1.0, %v3577_v21 }
 0x903   :  { %3582 = vrcp.f32 %v1720_v14 }
 0x904   :  { %3584 = vrcp.f32 %v1727_v34 }
 0x90c   :  { %v3581_v22 = vpop.eup %3580 }
 0x90d   :  { %v3583_v23 = vpop.eup %3582  ;;  %v1731_v25 = vmul.f32 %v3581_v22, %v3579_v12 }
 0x90e   :  { %v1730_v35 = vmul.f32 %v3583_v23, %v4619_v53  ;;  %v3585_v44 = vpop.eup %3584 }
 0x910   :  { %v1732_v0 = vadd.f32 %v1731_v25, %v1730_v35  ;;  %v4733_v1 = vpop.f32.mrb[48].mxu0  ;;  %v4735_v2 = vpop.f32.mrb[48].mxu1  ;;  %v2004_v35 = vld [vmem:[#allocation10] sm:$0xf] }
 0x911   :  { %v4737_v20 = vpop.f32.mrb[49].mxu0  ;;  %v4739_v8 = vpop.f32.mrb[49].mxu1 }
 0x912   :  { %3586 = vtanh.f32 %v1732_v0  ;;  %v4741_v3 = vpop.f32.mrb[50].mxu0  ;;  %v4743_v4 = vpop.f32.mrb[50].mxu1  ;;  %v1780_v0 = vld [vmem:[#allocation19] sm:$0xf] }
 0x913   :  { %v4745_v5 = vpop.f32.mrb[51].mxu0  ;;  %v4747_v16 = vpop.f32.mrb[51].mxu1 }
 0x918   :  { %v4749_v53 = vpop.f32.mrb[52].mxu0  ;;  %v4751_v15 = vpop.f32.mrb[52].mxu1 }
 0x919   :  { %5281 = vst [vmem:[#allocation45_spill] sm:$0xff] %v4751_v15  ;;  %v4753_v17 = vpop.f32.mrb[53].mxu0  ;;  %v4755_v19 = vpop.f32.mrb[53].mxu1 }
 0x91a   :  { %5282 = vst [vmem:[#allocation46_spill] sm:$0xff] %v4753_v17  ;;  %5283 = vst [vmem:[#allocation47_spill] sm:$0xff] %v4755_v19  ;;  %v4757_v18 = vpop.f32.mrb[54].mxu0  ;;  %v4759_v43 = vpop.f32.mrb[54].mxu1 }
 0x91b   :  { %5284 = vst [vmem:[#allocation48_spill] sm:$0xff] %v4757_v18  ;;  %5285 = vst [vmem:[#allocation49_spill] sm:$0xff] %v4759_v43  ;;  %v4761_v46 = vpop.f32.mrb[55].mxu0  ;;  %v4763_v47 = vpop.f32.mrb[55].mxu1 }
 0x91c   :  { %5286 = vst [vmem:[#allocation50_spill] sm:$0xff] %v4761_v46  ;;  %5287 = vst [vmem:[#allocation51_spill] sm:$0xff] %v4763_v47  ;;  %v3587_v48 = vpop.eup %3586 }
 0x91d   :  { %v1734_v32 = vmul.f32 %v3587_v48, %v3585_v44 }
 0x91f   :  { %v1735_v49 = vpack.c.bf16 %v1734_v32, %v1734_v32 }
 0x920   :  { %v4765_v50 = vpop.f32.mrb[56].mxu0  ;;  %v4767_v51 = vpop.f32.mrb[56].mxu1 }
 0x921   :  { %5288 = vst [vmem:[#allocation52_spill] sm:$0xff] %v4765_v50  ;;  %5289 = vst [vmem:[#allocation53_spill] sm:$0xff] %v4767_v51  ;;  %v4769_v14 = vpop.f32.mrb[57].mxu0  ;;  %v4771_v21 = vpop.f32.mrb[57].mxu1 }
 0x922   :  { %1737 = vst [vmem:[#allocation9] sm:$0xf] %v1735_v49  ;;  %1739 = vst [vmem:[#allocation8 + $0x1c] sm:$0xf] %v1735_v49  ;;  %v4773_v12 = vpop.f32.mrb[58].mxu0  ;;  %v4775_v22 = vpop.f32.mrb[58].mxu1 }
 0x923   :  { %5290 = vst [vmem:[#allocation54_spill] sm:$0xff] %v4769_v14  ;;  %5291 = vst [vmem:[#allocation55_spill] sm:$0xff] %v4771_v21  ;;  %v4777_v23 = vpop.f32.mrb[59].mxu0  ;;  %v4779_v25 = vpop.f32.mrb[59].mxu1 }
 0x924   :  { %5292 = vst [vmem:[#allocation56_spill] sm:$0xff] %v4773_v12  ;;  %5293 = vst [vmem:[#allocation57_spill] sm:$0xff] %v4775_v22 }
 0x925   :  { %5294 = vst [vmem:[#allocation58_spill] sm:$0xff] %v4777_v23  ;;  %5295 = vst [vmem:[#allocation59_spill] sm:$0xff] %v4779_v25  ;;  %v5302_v25 = vld [vmem:[#allocation44_spill] sm:$0xff] }
 0x926   :  { %v5303_v23 = vsub.s32 0, %v5302_v25  ;;  %v5304_v12 = vsub.s32 2, %v5302_v25 }
 0x928   :  { %v4831_v22 = vrot.slane %v1780_v0, %v5303_v23  ;;  %v4835_v21 = vrot.slane %v1780_v0, %v5304_v12 }
 0x929   :  { %v3459_v34 = vld [vmem:[#allocation8 + $0x18] sm:$0xff]  }
 0x92a   :  { %1889 = vmatmul.mubr.bf16.gmra.mrb[60].mxu0 %v3459_v34  ;;  %1962 = vmatmul.mubr.bf16.gmra.mrb[60].mxu1 %v3459_v34  ;;  %v1861_v23 = vadd.f32 %v4733_v1, %v4831_v22 }
 0x92b   :  { %2074 = vmatprep.mubr.bf16.mxu0 %v5259_v31  ;;  %2115 = vmatprep.mubr.bf16.mxu1 %v5259_v31 }
 0x932   :  { %2075 = vmatmul.mubr.bf16.vlgmr.msra.gmra.mrb[64].mxu0 %v2004_v35  ;;  %2116 = vmatmul.mubr.bf16.vlgmr.msra.gmra.mrb[64].mxu1 %v2004_v35 }
 0x933   :  { %2194 = vmatpush1.bf16.msra.mxu0 %v4636_v33  ;;  %2235 = vmatpush1.bf16.msra.mxu1 %v4638_v45 }
 0x934   :  { %2195 = vmatprep.subr.bf16.mxu0 %v4642_v63  ;;  %2236 = vmatprep.subr.bf16.mxu1 %v4644_v36 }
 0x935   :  { %2225 = vmatprep.mubr.bf16.mxu0 %v5259_v31  ;;  %2266 = vmatprep.mubr.bf16.mxu1 %v5259_v31 }
 0x937   :  { %2196 = vmatpush1.bf16.msra.mxu0 %v4648_v30  ;;  %2237 = vmatpush1.bf16.msra.mxu1 %v4650_v26 }
 0x938   :  { %2197 = vmatprep.subr.bf16.mxu0 %v4654_v6  ;;  %2238 = vmatprep.subr.bf16.mxu1 %v4656_v24 }
 0x93b   :  { %2198 = vmatpush1.bf16.msra.mxu0 %v4660_v9  ;;  %2239 = vmatpush1.bf16.msra.mxu1 %v4662_v11 }
 0x93c   :  { %2199 = vmatprep.subr.bf16.mxu0 %v4666_v13  ;;  %2240 = vmatprep.subr.bf16.mxu1 %v4668_v28 }
 0x93f   :  { %2200 = vmatpush1.bf16.msra.mxu0 %v4672_v10  ;;  %2241 = vmatpush1.bf16.msra.mxu1 %v4674_v54 }
 0x940   :  { %2201 = vmatprep.subr.bf16.mxu0 %v4678_v7  ;;  %2242 = vmatprep.subr.bf16.mxu1 %v4680_v37 }
 0x943   :  { %2202 = vmatpush1.bf16.msra.mxu0 %v4684_v38  ;;  %2243 = vmatpush1.bf16.msra.mxu1 %v4686_v39 }
 0x944   :  { %2203 = vmatprep.subr.bf16.mxu0 %v4690_v40  ;;  %2244 = vmatprep.subr.bf16.mxu1 %v4692_v41 }
 0x947   :  { %2204 = vmatpush1.bf16.msra.mxu0 %v4696_v42  ;;  %2245 = vmatpush1.bf16.msra.mxu1 %v4698_v52 }
 0x948   :  { %2205 = vmatprep.subr.bf16.mxu0 %v4702_v55  ;;  %2246 = vmatprep.subr.bf16.mxu1 %v4704_v56 }
 0x94b   :  { %2206 = vmatpush1.bf16.msra.mxu0 %v4706_v57  ;;  %2247 = vmatpush1.bf16.msra.mxu1 %v4710_v58 }
 0x94c   :  { %2207 = vmatprep.subr.bf16.mxu0 %v4712_v59  ;;  %2248 = vmatprep.subr.bf16.mxu1 %v4714_v60 }
 0x94f   :  { %2208 = vmatpush1.bf16.msra.mxu0 %v4720_v61  ;;  %2249 = vmatpush1.bf16.msra.mxu1 %v4722_v62 }
 0x950   :  { %2344 = vmatprep.subr.bf16.mxu0 %v4630_v27  ;;  %2385 = vmatprep.subr.bf16.mxu1 %v4632_v29 }
 0x9fd   :  { %v4817_v44 = vpop.f32.mrb[60].mxu0  ;;  %v4819_v48 = vpop.f32.mrb[60].mxu1 }
 0x9fe   :  { %5296 = vst [vmem:[#allocation60_spill] sm:$0xff] %v4817_v44  ;;  %5297 = vst [vmem:[#allocation61_spill] sm:$0xff] %v4819_v48  ;;  %v4821_v32 = vpop.f32.mrb[61].mxu0  ;;  %v4823_v49 = vpop.f32.mrb[61].mxu1 }
 0x9ff   :  { %5298 = vst [vmem:[#allocation62_spill] sm:$0xff] %v4821_v32  ;;  %5299 = vst [vmem:[#allocation63_spill] sm:$0xff] %v4823_v49  ;;  %v4825_v34 = vpop.f32.mrb[62].mxu0  ;;  %v4827_v35 = vpop.f32.mrb[62].mxu1  ;;  %v5307_v32 = vsub.s32 1, %v5302_v25 }
 0xa00   :  { %5300 = vst [vmem:[#allocation64_spill] sm:$0xff] %v4825_v34  ;;  %5301 = vst [vmem:[#allocation65_spill] sm:$0xff] %v4827_v35  ;;  %v4837_v14 = vpop.f32.mrb[63].mxu0  ;;  %v4839_v44 = vpop.f32.mrb[63].mxu1  ;;  %v5308_v34 = vsub.s32 3, %v5302_v25  ;;  %v1934_v35 = vadd.f32 %v4735_v2, %v4835_v21 }
 0xa01   :  { %5305 = vst [vmem:[#allocation44_spill] sm:$0xff] %v4837_v14  ;;  %5306 = vst [vmem:[#allocation66_spill] sm:$0xff] %v4839_v44  ;;  %v4843_v48 = vrot.slane %v1780_v0, %v5307_v32 }
 0xa02   :  { %v4847_v49 = vrot.slane %v1780_v0, %v5308_v34 }
 0xa03   :  { %v1863_v12 = vadd.f32 %v4737_v20, %v4843_v48 }
 0xa04   :  { %v1936_v44 = vadd.f32 %v4739_v8, %v4847_v49 }
 0xa05   :  { %v2076_v14 = vpop.f32.mrb[64].mxu0  ;;  %v2117_v51 = vpop.f32.mrb[64].mxu1 }
 0xa06   :  { %v2124_v32 = vadd.f32 %v2076_v14, %v1861_v23  ;;  %v2126_v50 = vadd.f32 %v2117_v51, %v1934_v35  ;;  %v2078_v47 = vpop.f32.mrb[65].mxu0  ;;  %v2119_v25 = vpop.f32.mrb[65].mxu1 }
 0xa07   :  { %v2125_v0 = vadd.f32 %v2078_v47, %v1863_v12  ;;  %v2127_v34 = vadd.f32 %v2119_v25, %v1936_v44  ;;  %v2080_v46 = vpop.f32.mrb[66].mxu0  ;;  %v2121_v43 = vpop.f32.mrb[66].mxu1  ;;  %v1938_v25 = vadd.f32 %v4743_v4, %v4835_v21 }
 0xa08   :  { %v3363_v1 = vmul.f32 -1.442695, %v2124_v32  ;;  %v2081_v18 = vpop.f32.mrb[67].mxu0  ;;  %v2122_v19 = vpop.f32.mrb[67].mxu1 }
 0xa09   :  { %v3364_v2 = vmul.f32 -1.442695, %v2125_v0  ;;  %v3365_v20 = vmul.f32 -1.442695, %v2127_v34  ;;  %v1867_v0 = vadd.f32 %v4745_v5, %v4843_v48  ;;  %v1940_v34 = vadd.f32 %v4747_v16, %v4847_v49 }
 0xa0a   :  { %3588 = vpow2.f32 %v3363_v1 }
 0xa0b   :  { %3590 = vpow2.f32 %v3364_v2 }
 0xa0c   :  { %3592 = vpow2.f32 %v3365_v20 }
 0xa0d   :  { %3594 = vtanh.f32 %v2126_v50  ;;  %v1865_v50 = vadd.f32 %v4741_v3, %v4831_v22 }
 0xa14   :  { %v3589_v17 = vpop.eup %3588 }
 0xa15   :  { %v3591_v15 = vpop.eup %3590  ;;  %v2131_v8 = vadd.f32 1.0, %v3589_v17 }
 0xa16   :  { %v2137_v14 = vadd.f32 1.0, %v3591_v15  ;;  %v3593_v51 = vpop.eup %3592 }
 0xa17   :  { %3596 = vrcp.f32 %v2131_v8  ;;  %v3595_v47 = vpop.eup %3594  ;;  %v2144_v35 = vadd.f32 1.0, %v3593_v51 }
 0xa18   :  { %3598 = vrcp.f32 %v2137_v14 }
 0xa19   :  { %3600 = vrcp.f32 %v2144_v35 }
 0xa21   :  { %v3597_v44 = vpop.eup %3596 }
 0xa22   :  { %v3599_v46 = vpop.eup %3598  ;;  %v2148_v43 = vmul.f32 %v3597_v44, %v3595_v47 }
 0xa23   :  { %v2147_v18 = vmul.f32 0.0, %v3599_v46  ;;  %v3601_v23 = vpop.eup %3600 }
 0xa25   :  { %v4857_v19 = vadd.f32 %v2148_v43, %v2147_v18 }
 0xa27   :  { %3602 = vtanh.f32 %v4857_v19 }
 0xa31   :  { %v3603_v12 = vpop.eup %3602 }
 0xa32   :  { %v2151_v17 = vmul.f32 %v3603_v12, %v3601_v23 }
 0xa34   :  { %v2152_v32 = vpack.c.bf16 %v2151_v17, %v2151_v17 }
 0xa36   :  { %2154 = vst [vmem:[#allocation10] sm:$0xf] %v2152_v32 }
 0xa3d   :  { %v2155_v15 = vld [vmem:[#allocation10] sm:$0xf] }
 0xa3e   :  { %2226 = vmatmul.mubr.bf16.vlgmr.msra.gmra.mrb[68].mxu0 %v2155_v15  ;;  %2267 = vmatmul.mubr.bf16.vlgmr.msra.gmra.mrb[68].mxu1 %v2155_v15 }
 0xa3f   :  { %2345 = vmatpush1.bf16.msra.mxu0 %v4636_v33  ;;  %2386 = vmatpush1.bf16.msra.mxu1 %v4638_v45 }
 0xa40   :  { %2346 = vmatprep.subr.bf16.mxu0 %v4642_v63  ;;  %2387 = vmatprep.subr.bf16.mxu1 %v4644_v36 }
 0xa41   :  { %2376 = vmatprep.mubr.bf16.mxu0 %v5259_v31  ;;  %2417 = vmatprep.mubr.bf16.mxu1 %v5259_v31 }
 0xa43   :  { %2347 = vmatpush1.bf16.msra.mxu0 %v4648_v30  ;;  %2388 = vmatpush1.bf16.msra.mxu1 %v4650_v26 }
 0xa44   :  { %2348 = vmatprep.subr.bf16.mxu0 %v4654_v6  ;;  %2389 = vmatprep.subr.bf16.mxu1 %v4656_v24 }
 0xa47   :  { %2349 = vmatpush1.bf16.msra.mxu0 %v4660_v9  ;;  %2390 = vmatpush1.bf16.msra.mxu1 %v4662_v11 }
 0xa48   :  { %2350 = vmatprep.subr.bf16.mxu0 %v4666_v13  ;;  %2391 = vmatprep.subr.bf16.mxu1 %v4668_v28 }
 0xa4b   :  { %2351 = vmatpush1.bf16.msra.mxu0 %v4672_v10  ;;  %2392 = vmatpush1.bf16.msra.mxu1 %v4674_v54 }
 0xa4c   :  { %2352 = vmatprep.subr.bf16.mxu0 %v4678_v7  ;;  %2393 = vmatprep.subr.bf16.mxu1 %v4680_v37 }
 0xa4f   :  { %2353 = vmatpush1.bf16.msra.mxu0 %v4684_v38  ;;  %2394 = vmatpush1.bf16.msra.mxu1 %v4686_v39 }
 0xa50   :  { %2354 = vmatprep.subr.bf16.mxu0 %v4690_v40  ;;  %2395 = vmatprep.subr.bf16.mxu1 %v4692_v41 }
 0xa53   :  { %2355 = vmatpush1.bf16.msra.mxu0 %v4696_v42  ;;  %2396 = vmatpush1.bf16.msra.mxu1 %v4698_v52 }
 0xa54   :  { %2356 = vmatprep.subr.bf16.mxu0 %v4702_v55  ;;  %2397 = vmatprep.subr.bf16.mxu1 %v4704_v56 }
 0xa57   :  { %2357 = vmatpush1.bf16.msra.mxu0 %v4706_v57  ;;  %2398 = vmatpush1.bf16.msra.mxu1 %v4710_v58 }
 0xa58   :  { %2358 = vmatprep.subr.bf16.mxu0 %v4712_v59  ;;  %2399 = vmatprep.subr.bf16.mxu1 %v4714_v60 }
 0xa5b   :  { %2359 = vmatpush1.bf16.msra.mxu0 %v4720_v61  ;;  %2400 = vmatpush1.bf16.msra.mxu1 %v4722_v62 }
 0xa5c   :  { %2495 = vmatprep.subr.bf16.mxu0 %v4630_v27  ;;  %2536 = vmatprep.subr.bf16.mxu1 %v4632_v29 }
 0xb11   :  { %v2227_v1 = vpop.f32.mrb[68].mxu0  ;;  %v2268_v2 = vpop.f32.mrb[68].mxu1 }
 0xb12   :  { %v2275_v20 = vadd.f32 %v2227_v1, %v1865_v50  ;;  %v2277_v8 = vadd.f32 %v2268_v2, %v1938_v25  ;;  %v2229_v14 = vpop.f32.mrb[69].mxu0  ;;  %v2270_v51 = vpop.f32.mrb[69].mxu1 }
 0xb13   :  { %v2276_v47 = vadd.f32 %v2229_v14, %v1867_v0  ;;  %v2278_v44 = vadd.f32 %v2270_v51, %v1940_v34  ;;  %v2231_v46 = vpop.f32.mrb[70].mxu0  ;;  %v2272_v43 = vpop.f32.mrb[70].mxu1 }
 0xb14   :  { %v3366_v3 = vmul.f32 -1.442695, %v2275_v20  ;;  %v2232_v35 = vpop.f32.mrb[71].mxu0  ;;  %v2273_v18 = vpop.f32.mrb[71].mxu1  ;;  %v5310_v43 = vld [vmem:[#allocation46_spill] sm:$0xff] }
 0xb15   :  { %v3367_v4 = vmul.f32 -1.442695, %v2276_v47  ;;  %v3368_v5 = vmul.f32 -1.442695, %v2278_v44  ;;  %v5309_v44 = vld [vmem:[#allocation45_spill] sm:$0xff]  ;;  %v5311_v35 = vld [vmem:[#allocation47_spill] sm:$0xff] }
 0xb16   :  { %3604 = vpow2.f32 %v3366_v3  ;;  %v1944_v46 = vadd.f32 %v5309_v44, %v4835_v21  ;;  %v1873_v3 = vadd.f32 %v5310_v43, %v4843_v48  ;;  %v1946_v18 = vadd.f32 %v5311_v35, %v4847_v49 }
 0xb17   :  { %3606 = vpow2.f32 %v3367_v4 }
 0xb18   :  { %3608 = vpow2.f32 %v3368_v5 }
 0xb19   :  { %3610 = vtanh.f32 %v2277_v8 }
 0xb20   :  { %v3605_v23 = vpop.eup %3604 }
 0xb21   :  { %v3607_v12 = vpop.eup %3606  ;;  %v2282_v16 = vadd.f32 1.0, %v3605_v23 }
 0xb22   :  { %v2288_v17 = vadd.f32 1.0, %v3607_v12  ;;  %v3609_v32 = vpop.eup %3608 }
 0xb23   :  { %3612 = vrcp.f32 %v2282_v16  ;;  %v3611_v15 = vpop.eup %3610  ;;  %v2295_v34 = vadd.f32 1.0, %v3609_v32 }
 0xb24   :  { %3614 = vrcp.f32 %v2288_v17 }
 0xb25   :  { %3616 = vrcp.f32 %v2295_v34 }
 0xb2d   :  { %v3613_v50 = vpop.eup %3612 }
 0xb2e   :  { %v3615_v25 = vpop.eup %3614  ;;  %v2299_v0 = vmul.f32 %v3613_v50, %v3611_v15 }
 0xb2f   :  { %v2298_v1 = vmul.f32 %v3615_v25, %v4857_v19  ;;  %v3617_v20 = vpop.eup %3616  ;;  %v1871_v19 = vadd.f32 %v4749_v53, %v4831_v22 }
 0xb31   :  { %v4903_v2 = vadd.f32 %v2299_v0, %v2298_v1 }
 0xb33   :  { %3618 = vtanh.f32 %v4903_v2 }
 0xb3d   :  { %v3619_v14 = vpop.eup %3618 }
 0xb3e   :  { %v2302_v51 = vmul.f32 %v3619_v14, %v3617_v20 }
 0xb40   :  { %v2303_v8 = vpack.c.bf16 %v2302_v51, %v2302_v51 }
 0xb42   :  { %2305 = vst [vmem:[#allocation10] sm:$0xf] %v2303_v8 }
 0xb49   :  { %v2306_v47 = vld [vmem:[#allocation10] sm:$0xf] }
 0xb4a   :  { %2377 = vmatmul.mubr.bf16.vlgmr.msra.gmra.mrb[72].mxu0 %v2306_v47  ;;  %2418 = vmatmul.mubr.bf16.vlgmr.msra.gmra.mrb[72].mxu1 %v2306_v47 }
 0xb4b   :  { %2496 = vmatpush1.bf16.msra.mxu0 %v4636_v33  ;;  %2537 = vmatpush1.bf16.msra.mxu1 %v4638_v45 }
 0xb4c   :  { %2497 = vmatprep.subr.bf16.mxu0 %v4642_v63  ;;  %2538 = vmatprep.subr.bf16.mxu1 %v4644_v36 }
 0xb4d   :  { %2527 = vmatprep.mubr.bf16.mxu0 %v5259_v31  ;;  %2568 = vmatprep.mubr.bf16.mxu1 %v5259_v31 }
 0xb4f   :  { %2498 = vmatpush1.bf16.msra.mxu0 %v4648_v30  ;;  %2539 = vmatpush1.bf16.msra.mxu1 %v4650_v26 }
 0xb50   :  { %2499 = vmatprep.subr.bf16.mxu0 %v4654_v6  ;;  %2540 = vmatprep.subr.bf16.mxu1 %v4656_v24 }
 0xb53   :  { %2500 = vmatpush1.bf16.msra.mxu0 %v4660_v9  ;;  %2541 = vmatpush1.bf16.msra.mxu1 %v4662_v11 }
 0xb54   :  { %2501 = vmatprep.subr.bf16.mxu0 %v4666_v13  ;;  %2542 = vmatprep.subr.bf16.mxu1 %v4668_v28 }
 0xb57   :  { %2502 = vmatpush1.bf16.msra.mxu0 %v4672_v10  ;;  %2543 = vmatpush1.bf16.msra.mxu1 %v4674_v54 }
 0xb58   :  { %2503 = vmatprep.subr.bf16.mxu0 %v4678_v7  ;;  %2544 = vmatprep.subr.bf16.mxu1 %v4680_v37 }
 0xb5b   :  { %2504 = vmatpush1.bf16.msra.mxu0 %v4684_v38  ;;  %2545 = vmatpush1.bf16.msra.mxu1 %v4686_v39 }
 0xb5c   :  { %2505 = vmatprep.subr.bf16.mxu0 %v4690_v40  ;;  %2546 = vmatprep.subr.bf16.mxu1 %v4692_v41 }
 0xb5f   :  { %2506 = vmatpush1.bf16.msra.mxu0 %v4696_v42  ;;  %2547 = vmatpush1.bf16.msra.mxu1 %v4698_v52 }
 0xb60   :  { %2507 = vmatprep.subr.bf16.mxu0 %v4702_v55  ;;  %2548 = vmatprep.subr.bf16.mxu1 %v4704_v56 }
 0xb63   :  { %2508 = vmatpush1.bf16.msra.mxu0 %v4706_v57  ;;  %2549 = vmatpush1.bf16.msra.mxu1 %v4710_v58 }
 0xb64   :  { %2509 = vmatprep.subr.bf16.mxu0 %v4712_v59  ;;  %2550 = vmatprep.subr.bf16.mxu1 %v4714_v60 }
 0xb67   :  { %2510 = vmatpush1.bf16.msra.mxu0 %v4720_v61  ;;  %2551 = vmatpush1.bf16.msra.mxu1 %v4722_v62 }
 0xb68   :  { %2646 = vmatprep.subr.bf16.mxu0 %v4630_v27  ;;  %2687 = vmatprep.subr.bf16.mxu1 %v4632_v29 }
 0xc1d   :  { %v2378_v4 = vpop.f32.mrb[72].mxu0  ;;  %v2419_v5 = vpop.f32.mrb[72].mxu1 }
 0xc1e   :  { %v2426_v23 = vadd.f32 %v2378_v4, %v1871_v19  ;;  %v2428_v12 = vadd.f32 %v2419_v5, %v1944_v46  ;;  %v2380_v16 = vpop.f32.mrb[73].mxu0  ;;  %v2421_v27 = vpop.f32.mrb[73].mxu1 }
 0xc1f   :  { %v2427_v17 = vadd.f32 %v2380_v16, %v1873_v3  ;;  %v2429_v29 = vadd.f32 %v2421_v27, %v1946_v18  ;;  %v2382_v32 = vpop.f32.mrb[74].mxu0  ;;  %v2423_v15 = vpop.f32.mrb[74].mxu1 }
 0xc20   :  { %v3369_v53 = vmul.f32 -1.442695, %v2426_v23  ;;  %v2383_v50 = vpop.f32.mrb[75].mxu0  ;;  %v2424_v25 = vpop.f32.mrb[75].mxu1 }
 0xc21   :  { %v3370_v0 = vmul.f32 -1.442695, %v2427_v17  ;;  %v3371_v34 = vmul.f32 -1.442695, %v2429_v29 }
 0xc22   :  { %3620 = vpow2.f32 %v3369_v53 }
 0xc23   :  { %3622 = vpow2.f32 %v3370_v0  ;;  %v4998_v0 = vld [vmem:[#allocation5 + $0x8] sm:$0xff] }
 0xc24   :  { %3624 = vpow2.f32 %v3371_v34  ;;  %v5000_v34 = vld [vmem:[#allocation5 + $0x18] sm:$0xff] }
 0xc25   :  { %3626 = vtanh.f32 %v2428_v12 }
 0xc2c   :  { %v3621_v1 = vpop.eup %3620 }
 0xc2d   :  { %v3623_v20 = vpop.eup %3622  ;;  %v2433_v14 = vadd.f32 1.0, %v3621_v1  ;;  %v5004_v1 = vld [vmem:[#allocation5] sm:$0xff] }
 0xc2e   :  { %v2439_v51 = vadd.f32 1.0, %v3623_v20  ;;  %v3625_v8 = vpop.eup %3624  ;;  %v5006_v20 = vld [vmem:[#allocation5 + $0x10] sm:$0xff] }
 0xc2f   :  { %3628 = vrcp.f32 %v2433_v14  ;;  %v3627_v47 = vpop.eup %3626  ;;  %v2446_v43 = vadd.f32 1.0, %v3625_v8  ;;  %v5010_v14 = vld [vmem:[#allocation5 + $0x28] sm:$0xff]  ;;  %v5016_v8 = vld [vmem:[#allocation5 + $0x20] sm:$0xff] }
 0xc30   :  { %3630 = vrcp.f32 %v2439_v51  ;;  %v5012_v51 = vld [vmem:[#allocation5 + $0x38] sm:$0xff] }
 0xc31   :  { %3632 = vrcp.f32 %v2446_v43  ;;  %v5030_v43 = vld [vmem:[#allocation5 + $0x50] sm:$0xff] }
 0xc39   :  { %v3629_v19 = vpop.eup %3628 }
 0xc3a   :  { %v3631_v44 = vpop.eup %3630  ;;  %v2450_v46 = vmul.f32 %v3629_v19, %v3627_v47  ;;  %v5018_v47 = vld [vmem:[#allocation5 + $0x30] sm:$0xff]  ;;  %v5022_v19 = vld [vmem:[#allocation5 + $0x48] sm:$0xff] }
 0xc3b   :  { %v2449_v3 = vmul.f32 %v3631_v44, %v4903_v2  ;;  %v3633_v18 = vpop.eup %3632  ;;  %v5024_v44 = vld [vmem:[#allocation5 + $0x58] sm:$0xff] }
 0xc3d   :  { %v4949_v35 = vadd.f32 %v2450_v46, %v2449_v3  ;;  %v5028_v46 = vld [vmem:[#allocation5 + $0x40] sm:$0xff]  ;;  %v5034_v3 = vld [vmem:[#allocation5 + $0x68] sm:$0xff] }
 0xc3f   :  { %3634 = vtanh.f32 %v4949_v35 }
 0xc49   :  { %v3635_v4 = vpop.eup %3634 }
 0xc4a   :  { %v2453_v5 = vmul.f32 %v3635_v4, %v3633_v18  ;;  %v5040_v18 = vld [vmem:[#allocation5 + $0x60] sm:$0xff]  ;;  %v5042_v4 = vld [vmem:[#allocation5 + $0x70] sm:$0xff] }
 0xc4c   :  { %v2454_v23 = vpack.c.bf16 %v2453_v5, %v2453_v5  ;;  %v5046_v5 = vld [vmem:[#allocation5 + $0x88] sm:$0xff] }
 0xc4e   :  { %2456 = vst [vmem:[#allocation10] sm:$0xf] %v2454_v23  ;;  %v5048_v23 = vld [vmem:[#allocation5 + $0x98] sm:$0xff] }
 0xc55   :  { %v2457_v12 = vld [vmem:[#allocation10] sm:$0xf] }
 0xc56   :  { %2528 = vmatmul.mubr.bf16.vlgmr.msra.gmra.mrb[76].mxu0 %v2457_v12  ;;  %2569 = vmatmul.mubr.bf16.vlgmr.msra.gmra.mrb[76].mxu1 %v2457_v12  ;;  %v5052_v12 = vld [vmem:[#allocation5 + $0x80] sm:$0xff] }
 0xc57   :  { %2647 = vmatpush1.bf16.msra.mxu0 %v4636_v33  ;;  %2688 = vmatpush1.bf16.msra.mxu1 %v4638_v45  ;;  %v5312_v33 = vld [vmem:[#allocation48_spill] sm:$0xff] }
 0xc58   :  { %2648 = vmatprep.subr.bf16.mxu0 %v4642_v63  ;;  %2689 = vmatprep.subr.bf16.mxu1 %v4644_v36  ;;  %v1875_v45 = vadd.f32 %v5312_v33, %v4831_v22  ;;  %v5313_v63 = vld [vmem:[#allocation49_spill] sm:$0xff]  ;;  %v5054_v33 = vld [vmem:[#allocation5 + $0x90] sm:$0xff] }
 0xc59   :  { %2678 = vmatprep.mubr.bf16.mxu0 %v5259_v31  ;;  %2719 = vmatprep.mubr.bf16.mxu1 %v5259_v31  ;;  %v1948_v36 = vadd.f32 %v5313_v63, %v4835_v21  ;;  %v5060_v63 = vld [vmem:[#allocation5 + $0xb8] sm:$0xff] }
 0xc5b   :  { %2649 = vmatpush1.bf16.msra.mxu0 %v4648_v30  ;;  %2690 = vmatpush1.bf16.msra.mxu1 %v4650_v26  ;;  %v5314_v30 = vld [vmem:[#allocation50_spill] sm:$0xff] }
 0xc5c   :  { %2650 = vmatprep.subr.bf16.mxu0 %v4654_v6  ;;  %2691 = vmatprep.subr.bf16.mxu1 %v4656_v24  ;;  %v1877_v26 = vadd.f32 %v5314_v30, %v4843_v48  ;;  %v5315_v6 = vld [vmem:[#allocation51_spill] sm:$0xff] }
 0xc5d   :  { %v1950_v24 = vadd.f32 %v5315_v6, %v4847_v49  ;;  %v5066_v30 = vld [vmem:[#allocation5 + $0xb0] sm:$0xff]  ;;  %v5072_v6 = vld [vmem:[#allocation5 + $0xd8] sm:$0xff] }
 0xc5f   :  { %2651 = vmatpush1.bf16.msra.mxu0 %v4660_v9  ;;  %2692 = vmatpush1.bf16.msra.mxu1 %v4662_v11 }
 0xc60   :  { %2652 = vmatprep.subr.bf16.mxu0 %v4666_v13  ;;  %2693 = vmatprep.subr.bf16.mxu1 %v4668_v28 }
 0xc63   :  { %2653 = vmatpush1.bf16.msra.mxu0 %v4672_v10  ;;  %2694 = vmatpush1.bf16.msra.mxu1 %v4674_v54 }
 0xc64   :  { %2654 = vmatprep.subr.bf16.mxu0 %v4678_v7  ;;  %2695 = vmatprep.subr.bf16.mxu1 %v4680_v37 }
 0xc67   :  { %2655 = vmatpush1.bf16.msra.mxu0 %v4684_v38  ;;  %2696 = vmatpush1.bf16.msra.mxu1 %v4686_v39 }
 0xc68   :  { %2656 = vmatprep.subr.bf16.mxu0 %v4690_v40  ;;  %2697 = vmatprep.subr.bf16.mxu1 %v4692_v41 }
 0xc6b   :  { %2657 = vmatpush1.bf16.msra.mxu0 %v4696_v42  ;;  %2698 = vmatpush1.bf16.msra.mxu1 %v4698_v52 }
 0xc6c   :  { %2658 = vmatprep.subr.bf16.mxu0 %v4702_v55  ;;  %2699 = vmatprep.subr.bf16.mxu1 %v4704_v56 }
 0xc6f   :  { %2659 = vmatpush1.bf16.msra.mxu0 %v4706_v57  ;;  %2700 = vmatpush1.bf16.msra.mxu1 %v4710_v58 }
 0xc70   :  { %2660 = vmatprep.subr.bf16.mxu0 %v4712_v59  ;;  %2701 = vmatprep.subr.bf16.mxu1 %v4714_v60 }
 0xc73   :  { %2661 = vmatpush1.bf16.msra.mxu0 %v4720_v61  ;;  %2702 = vmatpush1.bf16.msra.mxu1 %v4722_v62 }
 0xc74   :  { %2797 = vmatprep.subr.bf16.mxu0 %v4998_v0  ;;  %2838 = vmatprep.subr.bf16.mxu1 %v5000_v34 }
 0xd29   :  { %v2529_v9 = vpop.f32.mrb[76].mxu0  ;;  %v2570_v11 = vpop.f32.mrb[76].mxu1 }
 0xd2a   :  { %v2577_v13 = vadd.f32 %v2529_v9, %v1875_v45  ;;  %v2579_v28 = vadd.f32 %v2570_v11, %v1948_v36  ;;  %v2531_v10 = vpop.f32.mrb[77].mxu0  ;;  %v2572_v54 = vpop.f32.mrb[77].mxu1  ;;  %v5058_v45 = vld [vmem:[#allocation5 + $0xa8] sm:$0xff]  ;;  %v5064_v36 = vld [vmem:[#allocation5 + $0xa0] sm:$0xff]  ;;  %v5078_v9 = vld [vmem:[#allocation5 + $0xd0] sm:$0xff] }
 0xd2b   :  { %v2578_v7 = vadd.f32 %v2531_v10, %v1877_v26  ;;  %v2580_v37 = vadd.f32 %v2572_v54, %v1950_v24  ;;  %v2533_v38 = vpop.f32.mrb[78].mxu0  ;;  %v2574_v39 = vpop.f32.mrb[78].mxu1  ;;  %v5070_v26 = vld [vmem:[#allocation5 + $0xc8] sm:$0xff]  ;;  %v5074_v24 = vld [vmem:[#allocation5 + $0xc0] sm:$0xff]  ;;  %v5090_v10 = vld [vmem:[#allocation5 + $0xf0] sm:$0xff] }
 0xd2c   :  { %v3372_v40 = vmul.f32 -1.442695, %v2577_v13  ;;  %v2534_v41 = vpop.f32.mrb[79].mxu0  ;;  %v2575_v42 = vpop.f32.mrb[79].mxu1  ;;  %v5080_v11 = vld [vmem:[#allocation5 + $0xe8] sm:$0xff]  ;;  %v5082_v13 = vld [vmem:[#allocation5 + $0xf8] sm:$0xff] }
 0xd2d   :  { %v3373_v52 = vmul.f32 -1.442695, %v2578_v7  ;;  %v3374_v55 = vmul.f32 -1.442695, %v2580_v37  ;;  %v5316_v54 = vld [vmem:[#allocation52_spill] sm:$0xff]  ;;  %v5317_v37 = vld [vmem:[#allocation53_spill] sm:$0xff] }
 0xd2e   :  { %3636 = vpow2.f32 %v3372_v40  ;;  %v1881_v7 = vadd.f32 %v5316_v54, %v4831_v22  ;;  %v1954_v38 = vadd.f32 %v5317_v37, %v4835_v21  ;;  %v5318_v39 = vld [vmem:[#allocation54_spill] sm:$0xff]  ;;  %v5319_v41 = vld [vmem:[#allocation55_spill] sm:$0xff] }
 0xd2f   :  { %3638 = vpow2.f32 %v3373_v52  ;;  %v1883_v40 = vadd.f32 %v5318_v39, %v4843_v48  ;;  %v1956_v42 = vadd.f32 %v5319_v41, %v4847_v49 }
 0xd30   :  { %3640 = vpow2.f32 %v3374_v55 }
 0xd31   :  { %3642 = vtanh.f32 %v2579_v28  ;;  %v5088_v28 = vld [vmem:[#allocation5 + $0xe0] sm:$0xff] }
 0xd38   :  { %v3637_v56 = vpop.eup %3636 }
 0xd39   :  { %v3639_v57 = vpop.eup %3638  ;;  %v2584_v58 = vadd.f32 1.0, %v3637_v56 }
 0xd3a   :  { %v2590_v59 = vadd.f32 1.0, %v3639_v57  ;;  %v3641_v60 = vpop.eup %3640 }
 0xd3b   :  { %3644 = vrcp.f32 %v2584_v58  ;;  %v3643_v61 = vpop.eup %3642  ;;  %v2597_v27 = vadd.f32 1.0, %v3641_v60 }
 0xd3c   :  { %3646 = vrcp.f32 %v2590_v59 }
 0xd3d   :  { %3648 = vrcp.f32 %v2597_v27 }
 0xd45   :  { %v3645_v62 = vpop.eup %3644 }
 0xd46   :  { %v3647_v2 = vpop.eup %3646  ;;  %v2601_v16 = vmul.f32 %v3645_v62, %v3643_v61 }
 0xd47   :  { %v2600_v17 = vmul.f32 %v3647_v2, %v4949_v35  ;;  %v3649_v32 = vpop.eup %3648  ;;  %v5036_v35 = vld [vmem:[#allocation5 + $0x78] sm:$0xff] }
 0xd49   :  { %v4993_v29 = vadd.f32 %v2601_v16, %v2600_v17 }
 0xd4b   :  { %3650 = vtanh.f32 %v4993_v29 }
 0xd55   :  { %v3651_v15 = vpop.eup %3650 }
 0xd56   :  { %v2604_v53 = vmul.f32 %v3651_v15, %v3649_v32 }
 0xd58   :  { %v2605_v50 = vpack.c.bf16 %v2604_v53, %v2604_v53 }
 0xd5a   :  { %2607 = vst [vmem:[#allocation10] sm:$0xf] %v2605_v50 }
 0xd61   :  { %v2608_v25 = vld [vmem:[#allocation10] sm:$0xf] }
 0xd62   :  { %2679 = vmatmul.mubr.bf16.vlgmr.msra.gmra.mrb[80].mxu0 %v2608_v25  ;;  %2720 = vmatmul.mubr.bf16.vlgmr.msra.gmra.mrb[80].mxu1 %v2608_v25 }
 0xd63   :  { %2829 = vmatprep.mubr.bf16.mxu0 %v5259_v31  ;;  %2870 = vmatprep.mubr.bf16.mxu1 %v5259_v31 }
 0xd64   :  { %2798 = vmatpush1.bf16.msra.mxu0 %v5004_v1  ;;  %2839 = vmatpush1.bf16.msra.mxu1 %v5006_v20 }
 0xd65   :  { %2799 = vmatprep.subr.bf16.mxu0 %v5010_v14  ;;  %2840 = vmatprep.subr.bf16.mxu1 %v5012_v51 }
 0xd68   :  { %2800 = vmatpush1.bf16.msra.mxu0 %v5016_v8  ;;  %2841 = vmatpush1.bf16.msra.mxu1 %v5018_v47 }
 0xd69   :  { %2801 = vmatprep.subr.bf16.mxu0 %v5022_v19  ;;  %2842 = vmatprep.subr.bf16.mxu1 %v5024_v44 }
 0xd6c   :  { %2802 = vmatpush1.bf16.msra.mxu0 %v5028_v46  ;;  %2843 = vmatpush1.bf16.msra.mxu1 %v5030_v43 }
 0xd6d   :  { %2803 = vmatprep.subr.bf16.mxu0 %v5034_v3  ;;  %2844 = vmatprep.subr.bf16.mxu1 %v5036_v35 }
 0xd70   :  { %2804 = vmatpush1.bf16.msra.mxu0 %v5040_v18  ;;  %2845 = vmatpush1.bf16.msra.mxu1 %v5042_v4 }
 0xd71   :  { %2805 = vmatprep.subr.bf16.mxu0 %v5046_v5  ;;  %2846 = vmatprep.subr.bf16.mxu1 %v5048_v23 }
 0xd74   :  { %2806 = vmatpush1.bf16.msra.mxu0 %v5052_v12  ;;  %2847 = vmatpush1.bf16.msra.mxu1 %v5054_v33 }
 0xd75   :  { %2807 = vmatprep.subr.bf16.mxu0 %v5058_v45  ;;  %2848 = vmatprep.subr.bf16.mxu1 %v5060_v63 }
 0xd78   :  { %2808 = vmatpush1.bf16.msra.mxu0 %v5064_v36  ;;  %2849 = vmatpush1.bf16.msra.mxu1 %v5066_v30 }
 0xd79   :  { %2809 = vmatprep.subr.bf16.mxu0 %v5070_v26  ;;  %2850 = vmatprep.subr.bf16.mxu1 %v5072_v6 }
 0xd7c   :  { %2810 = vmatpush1.bf16.msra.mxu0 %v5074_v24  ;;  %2851 = vmatpush1.bf16.msra.mxu1 %v5078_v9 }
 0xd7d   :  { %2811 = vmatprep.subr.bf16.mxu0 %v5080_v11  ;;  %2852 = vmatprep.subr.bf16.mxu1 %v5082_v13 }
 0xd80   :  { %2812 = vmatpush1.bf16.msra.mxu0 %v5088_v28  ;;  %2853 = vmatpush1.bf16.msra.mxu1 %v5090_v10 }
 0xd81   :  { %2948 = vmatprep.subr.bf16.mxu0 %v4998_v0  ;;  %2989 = vmatprep.subr.bf16.mxu1 %v5000_v34 }
 0xe35   :  { %v2680_v52 = vpop.f32.mrb[80].mxu0  ;;  %v2721_v55 = vpop.f32.mrb[80].mxu1 }
 0xe36   :  { %v2728_v56 = vadd.f32 %v2680_v52, %v1881_v7  ;;  %v2730_v57 = vadd.f32 %v2721_v55, %v1954_v38  ;;  %v2682_v58 = vpop.f32.mrb[81].mxu0  ;;  %v2723_v59 = vpop.f32.mrb[81].mxu1 }
 0xe37   :  { %v2729_v60 = vadd.f32 %v2682_v58, %v1883_v40  ;;  %v2731_v61 = vadd.f32 %v2723_v59, %v1956_v42  ;;  %v2684_v62 = vpop.f32.mrb[82].mxu0  ;;  %v2725_v2 = vpop.f32.mrb[82].mxu1 }
 0xe38   :  { %v3375_v16 = vmul.f32 -1.442695, %v2728_v56  ;;  %v2685_v27 = vpop.f32.mrb[83].mxu0  ;;  %v2726_v17 = vpop.f32.mrb[83].mxu1  ;;  %v5322_v2 = vld [vmem:[#allocation58_spill] sm:$0xff] }
 0xe39   :  { %v3376_v32 = vmul.f32 -1.442695, %v2729_v60  ;;  %v3377_v15 = vmul.f32 -1.442695, %v2731_v61  ;;  %v5321_v61 = vld [vmem:[#allocation57_spill] sm:$0xff]  ;;  %v5323_v27 = vld [vmem:[#allocation59_spill] sm:$0xff] }
 0xe3a   :  { %3652 = vpow2.f32 %v3375_v16  ;;  %v1958_v62 = vadd.f32 %v5321_v61, %v4835_v21  ;;  %v1887_v16 = vadd.f32 %v5322_v2, %v4843_v48  ;;  %v1960_v17 = vadd.f32 %v5323_v27, %v4847_v49 }
 0xe3b   :  { %3654 = vpow2.f32 %v3376_v32 }
 0xe3c   :  { %3656 = vpow2.f32 %v3377_v15 }
 0xe3d   :  { %3658 = vtanh.f32 %v2730_v57 }
 0xe44   :  { %v3653_v53 = vpop.eup %3652 }
 0xe45   :  { %v3655_v50 = vpop.eup %3654  ;;  %v2735_v25 = vadd.f32 1.0, %v3653_v53 }
 0xe46   :  { %v2741_v54 = vadd.f32 1.0, %v3655_v50  ;;  %v3657_v7 = vpop.eup %3656 }
 0xe47   :  { %3660 = vrcp.f32 %v2735_v25  ;;  %v3659_v37 = vpop.eup %3658  ;;  %v2748_v41 = vadd.f32 1.0, %v3657_v7 }
 0xe48   :  { %3662 = vrcp.f32 %v2741_v54 }
 0xe49   :  { %3664 = vrcp.f32 %v2748_v41 }
 0xe51   :  { %v3661_v38 = vpop.eup %3660 }
 0xe52   :  { %v3663_v39 = vpop.eup %3662  ;;  %v2752_v40 = vmul.f32 %v3661_v38, %v3659_v37 }
 0xe53   :  { %v2751_v42 = vmul.f32 %v3663_v39, %v4993_v29  ;;  %v3665_v55 = vpop.eup %3664  ;;  %v5320_v29 = vld [vmem:[#allocation56_spill] sm:$0xff] }
 0xe54   :  { %v1885_v60 = vadd.f32 %v5320_v29, %v4831_v22 }
 0xe55   :  { %v5105_v52 = vadd.f32 %v2752_v40, %v2751_v42 }
 0xe57   :  { %3666 = vtanh.f32 %v5105_v52 }
 0xe61   :  { %v3667_v56 = vpop.eup %3666 }
 0xe62   :  { %v2755_v58 = vmul.f32 %v3667_v56, %v3665_v55 }
 0xe64   :  { %v2756_v57 = vpack.c.bf16 %v2755_v58, %v2755_v58 }
 0xe66   :  { %2758 = vst [vmem:[#allocation10] sm:$0xf] %v2756_v57 }
 0xe6d   :  { %v2759_v59 = vld [vmem:[#allocation10] sm:$0xf] }
 0xe6e   :  { %2830 = vmatmul.mubr.bf16.vlgmr.msra.gmra.mrb[84].mxu0 %v2759_v59  ;;  %2871 = vmatmul.mubr.bf16.vlgmr.msra.gmra.mrb[84].mxu1 %v2759_v59 }
 0xe6f   :  { %2949 = vmatpush1.bf16.msra.mxu0 %v5004_v1  ;;  %2990 = vmatpush1.bf16.msra.mxu1 %v5006_v20 }
 0xe70   :  { %2950 = vmatprep.subr.bf16.mxu0 %v5010_v14  ;;  %2991 = vmatprep.subr.bf16.mxu1 %v5012_v51 }
 0xe71   :  { %2980 = vmatprep.mubr.bf16.mxu0 %v5259_v31  ;;  %3021 = vmatprep.mubr.bf16.mxu1 %v5259_v31 }
 0xe73   :  { %2951 = vmatpush1.bf16.msra.mxu0 %v5016_v8  ;;  %2992 = vmatpush1.bf16.msra.mxu1 %v5018_v47 }
 0xe74   :  { %2952 = vmatprep.subr.bf16.mxu0 %v5022_v19  ;;  %2993 = vmatprep.subr.bf16.mxu1 %v5024_v44 }
 0xe77   :  { %2953 = vmatpush1.bf16.msra.mxu0 %v5028_v46  ;;  %2994 = vmatpush1.bf16.msra.mxu1 %v5030_v43 }
 0xe78   :  { %2954 = vmatprep.subr.bf16.mxu0 %v5034_v3  ;;  %2995 = vmatprep.subr.bf16.mxu1 %v5036_v35 }
 0xe7b   :  { %2955 = vmatpush1.bf16.msra.mxu0 %v5040_v18  ;;  %2996 = vmatpush1.bf16.msra.mxu1 %v5042_v4 }
 0xe7c   :  { %2956 = vmatprep.subr.bf16.mxu0 %v5046_v5  ;;  %2997 = vmatprep.subr.bf16.mxu1 %v5048_v23 }
 0xe7f   :  { %2957 = vmatpush1.bf16.msra.mxu0 %v5052_v12  ;;  %2998 = vmatpush1.bf16.msra.mxu1 %v5054_v33 }
 0xe80   :  { %2958 = vmatprep.subr.bf16.mxu0 %v5058_v45  ;;  %2999 = vmatprep.subr.bf16.mxu1 %v5060_v63 }
 0xe83   :  { %2959 = vmatpush1.bf16.msra.mxu0 %v5064_v36  ;;  %3000 = vmatpush1.bf16.msra.mxu1 %v5066_v30 }
 0xe84   :  { %2960 = vmatprep.subr.bf16.mxu0 %v5070_v26  ;;  %3001 = vmatprep.subr.bf16.mxu1 %v5072_v6 }
 0xe87   :  { %2961 = vmatpush1.bf16.msra.mxu0 %v5074_v24  ;;  %3002 = vmatpush1.bf16.msra.mxu1 %v5078_v9 }
 0xe88   :  { %2962 = vmatprep.subr.bf16.mxu0 %v5080_v11  ;;  %3003 = vmatprep.subr.bf16.mxu1 %v5082_v13 }
 0xe8b   :  { %2963 = vmatpush1.bf16.msra.mxu0 %v5088_v28  ;;  %3004 = vmatpush1.bf16.msra.mxu1 %v5090_v10 }
 0xe8c   :  { %3099 = vmatprep.subr.bf16.mxu0 %v4998_v0  ;;  %3140 = vmatprep.subr.bf16.mxu1 %v5000_v34 }
 0xf41   :  { %v2831_v32 = vpop.f32.mrb[84].mxu0  ;;  %v2872_v15 = vpop.f32.mrb[84].mxu1 }
 0xf42   :  { %v2879_v53 = vadd.f32 %v2831_v32, %v1885_v60  ;;  %v2881_v50 = vadd.f32 %v2872_v15, %v1958_v62  ;;  %v2833_v25 = vpop.f32.mrb[85].mxu0  ;;  %v2874_v0 = vpop.f32.mrb[85].mxu1 }
 0xf43   :  { %v2880_v54 = vadd.f32 %v2833_v25, %v1887_v16  ;;  %v2882_v34 = vadd.f32 %v2874_v0, %v1960_v17  ;;  %v2835_v7 = vpop.f32.mrb[86].mxu0  ;;  %v2876_v37 = vpop.f32.mrb[86].mxu1 }
 0xf44   :  { %v3378_v38 = vmul.f32 -1.442695, %v2879_v53  ;;  %v2836_v39 = vpop.f32.mrb[87].mxu0  ;;  %v2877_v40 = vpop.f32.mrb[87].mxu1 }
 0xf45   :  { %v3379_v41 = vmul.f32 -1.442695, %v2880_v54  ;;  %v3380_v42 = vmul.f32 -1.442695, %v2882_v34  ;;  %v3893_v40 = vmov 0.0  }
 0xf46   :  { %3668 = vpow2.f32 %v3378_v38 }
 0xf47   :  { %3670 = vpow2.f32 %v3379_v41  ;;  %v3216_v41 = vld [vmem:[#allocation6] sm:$0xff] }
 0xf48   :  { %3672 = vpow2.f32 %v3380_v42  ;;  %v3217_v42 = vld [vmem:[#allocation6 + $0x8] sm:$0xff] }
 0xf49   :  { %3674 = vtanh.f32 %v2881_v50 }
 0xf50   :  { %v3669_v55 = vpop.eup %3668 }
 0xf51   :  { %v3671_v56 = vpop.eup %3670  ;;  %v2886_v58 = vadd.f32 1.0, %v3669_v55  ;;  %v3218_v55 = vld [vmem:[#allocation6 + $0x10] sm:$0xff] }
 0xf52   :  { %v2892_v57 = vadd.f32 1.0, %v3671_v56  ;;  %v3673_v59 = vpop.eup %3672  ;;  %v3219_v56 = vld [vmem:[#allocation6 + $0x18] sm:$0xff] }
 0xf53   :  { %3676 = vrcp.f32 %v2886_v58  ;;  %v3675_v29 = vpop.eup %3674  ;;  %v2899_v2 = vadd.f32 1.0, %v3673_v59  ;;  %v3220_v58 = vld [vmem:[#allocation6 + $0x20] sm:$0xff]  ;;  %v3222_v59 = vld [vmem:[#allocation6 + $0x30] sm:$0xff] }
 0xf54   :  { %3678 = vrcp.f32 %v2892_v57  ;;  %v3221_v57 = vld [vmem:[#allocation6 + $0x28] sm:$0xff] }
 0xf55   :  { %3680 = vrcp.f32 %v2899_v2 }
 0xf5d   :  { %v3677_v60 = vpop.eup %3676 }
 0xf5e   :  { %v3679_v61 = vpop.eup %3678  ;;  %v2903_v62 = vmul.f32 %v3677_v60, %v3675_v29  ;;  %v3223_v29 = vld [vmem:[#allocation6 + $0x38] sm:$0xff] }
 0xf5f   :  { %v2902_v16 = vmul.f32 %v3679_v61, %v5105_v52  ;;  %v3681_v17 = vpop.eup %3680  ;;  %v5328_v60 = vld [vmem:[#allocation64_spill] sm:$0xff] }
 0xf60   :  { %v1895_v61 = vadd.f32 %v5328_v60, %v4831_v22 }
 0xf61   :  { %v5151_v27 = vadd.f32 %v2903_v62, %v2902_v16  ;;  %v5329_v62 = vld [vmem:[#allocation65_spill] sm:$0xff]  ;;  %v5330_v16 = vld [vmem:[#allocation44_spill] sm:$0xff] }
 0xf62   :  { %v1968_v2 = vadd.f32 %v5329_v62, %v4835_v21 }
 0xf63   :  { %3682 = vtanh.f32 %v5151_v27 }
 0xf6d   :  { %v3683_v32 = vpop.eup %3682 }
 0xf6e   :  { %v2906_v15 = vmul.f32 %v3683_v32, %v3681_v17  ;;  %v5331_v17 = vld [vmem:[#allocation66_spill] sm:$0xff] }
 0xf6f   :  { %v1970_v32 = vadd.f32 %v5331_v17, %v4847_v49 }
 0xf70   :  { %v2907_v53 = vpack.c.bf16 %v2906_v15, %v2906_v15 }
 0xf72   :  { %2909 = vst [vmem:[#allocation10] sm:$0xf] %v2907_v53 }
 0xf79   :  { %v2910_v50 = vld [vmem:[#allocation10] sm:$0xf] }
 0xf7a   :  { %2981 = vmatmul.mubr.bf16.vlgmr.msra.gmra.mrb[88].mxu0 %v2910_v50  ;;  %3022 = vmatmul.mubr.bf16.vlgmr.msra.gmra.mrb[88].mxu1 %v2910_v50 }
 0xf7b   :  { %3100 = vmatpush1.bf16.msra.mxu0 %v5004_v1  ;;  %3141 = vmatpush1.bf16.msra.mxu1 %v5006_v20  ;;  %v5325_v20 = vld [vmem:[#allocation61_spill] sm:$0xff] }
 0xf7c   :  { %3101 = vmatprep.subr.bf16.mxu0 %v5010_v14  ;;  %3142 = vmatprep.subr.bf16.mxu1 %v5012_v51  ;;  %v1964_v14 = vadd.f32 %v5325_v20, %v4835_v21  ;;  %v5326_v51 = vld [vmem:[#allocation62_spill] sm:$0xff] }
 0xf7d   :  { %3131 = vmatprep.mubr.bf16.mxu0 %v5259_v31  ;;  %3172 = vmatprep.mubr.bf16.mxu1 %v5259_v31  ;;  %v5324_v31 = vld [vmem:[#allocation60_spill] sm:$0xff] }
 0xf7e   :  { %v1891_v1 = vadd.f32 %v5324_v31, %v4831_v22 }
 0xf7f   :  { %3102 = vmatpush1.bf16.msra.mxu0 %v5016_v8  ;;  %3143 = vmatpush1.bf16.msra.mxu1 %v5018_v47  ;;  %v1893_v8 = vadd.f32 %v5326_v51, %v4843_v48  ;;  %v5327_v47 = vld [vmem:[#allocation63_spill] sm:$0xff] }
 0xf80   :  { %3103 = vmatprep.subr.bf16.mxu0 %v5022_v19  ;;  %3144 = vmatprep.subr.bf16.mxu1 %v5024_v44  ;;  %v1966_v19 = vadd.f32 %v5327_v47, %v4847_v49 }
 0xf83   :  { %3104 = vmatpush1.bf16.msra.mxu0 %v5028_v46  ;;  %3145 = vmatpush1.bf16.msra.mxu1 %v5030_v43 }
 0xf84   :  { %3105 = vmatprep.subr.bf16.mxu0 %v5034_v3  ;;  %3146 = vmatprep.subr.bf16.mxu1 %v5036_v35 }
 0xf87   :  { %3106 = vmatpush1.bf16.msra.mxu0 %v5040_v18  ;;  %3147 = vmatpush1.bf16.msra.mxu1 %v5042_v4 }
 0xf88   :  { %3107 = vmatprep.subr.bf16.mxu0 %v5046_v5  ;;  %3148 = vmatprep.subr.bf16.mxu1 %v5048_v23 }
 0xf8b   :  { %3108 = vmatpush1.bf16.msra.mxu0 %v5052_v12  ;;  %3149 = vmatpush1.bf16.msra.mxu1 %v5054_v33 }
 0xf8c   :  { %3109 = vmatprep.subr.bf16.mxu0 %v5058_v45  ;;  %3150 = vmatprep.subr.bf16.mxu1 %v5060_v63 }
 0xf8f   :  { %3110 = vmatpush1.bf16.msra.mxu0 %v5064_v36  ;;  %3151 = vmatpush1.bf16.msra.mxu1 %v5066_v30 }
 0xf90   :  { %3111 = vmatprep.subr.bf16.mxu0 %v5070_v26  ;;  %3152 = vmatprep.subr.bf16.mxu1 %v5072_v6 }
 0xf93   :  { %3112 = vmatpush1.bf16.msra.mxu0 %v5074_v24  ;;  %3153 = vmatpush1.bf16.msra.mxu1 %v5078_v9 }
 0xf94   :  { %3113 = vmatprep.subr.bf16.mxu0 %v5080_v11  ;;  %3154 = vmatprep.subr.bf16.mxu1 %v5082_v13 }
 0xf97   :  { %3114 = vmatpush1.bf16.msra.mxu0 %v5088_v28  ;;  %3155 = vmatpush1.bf16.msra.mxu1 %v5090_v10 }
 0xf98   :  { %3402 = vmatprep.subr.bf16.mxu0 %v3893_v40 }
0x104d   :  { %v2982_v44 = vpop.f32.mrb[88].mxu0  ;;  %v3023_v46 = vpop.f32.mrb[88].mxu1 }
0x104e   :  { %v3030_v43 = vadd.f32 %v2982_v44, %v1891_v1  ;;  %v3032_v3 = vadd.f32 %v3023_v46, %v1964_v14  ;;  %v2984_v35 = vpop.f32.mrb[89].mxu0  ;;  %v3025_v18 = vpop.f32.mrb[89].mxu1 }
0x104f   :  { %v3031_v4 = vadd.f32 %v2984_v35, %v1893_v8  ;;  %v3033_v5 = vadd.f32 %v3025_v18, %v1966_v19  ;;  %v2986_v23 = vpop.f32.mrb[90].mxu0  ;;  %v3027_v12 = vpop.f32.mrb[90].mxu1 }
0x1050   :  { %v3381_v33 = vmul.f32 -1.442695, %v3030_v43  ;;  %v2987_v45 = vpop.f32.mrb[91].mxu0  ;;  %v3028_v63 = vpop.f32.mrb[91].mxu1 }
0x1051   :  { %v3382_v36 = vmul.f32 -1.442695, %v3031_v4  ;;  %v3383_v30 = vmul.f32 -1.442695, %v3033_v5 }
0x1052   :  { %3684 = vpow2.f32 %v3381_v33 }
0x1053   :  { %3686 = vpow2.f32 %v3382_v36 }
0x1054   :  { %3688 = vpow2.f32 %v3383_v30 }
0x1055   :  { %3690 = vtanh.f32 %v3032_v3 }
0x105c   :  { %v3685_v26 = vpop.eup %3684 }
0x105d   :  { %v3687_v6 = vpop.eup %3686  ;;  %v3037_v24 = vadd.f32 1.0, %v3685_v26 }
0x105e   :  { %v3043_v9 = vadd.f32 1.0, %v3687_v6  ;;  %v3689_v11 = vpop.eup %3688 }
0x105f   :  { %3692 = vrcp.f32 %v3037_v24  ;;  %v3691_v13 = vpop.eup %3690  ;;  %v3050_v25 = vadd.f32 1.0, %v3689_v11  ;;  %v3387_v24 = vld [vmem:[#allocation20] ss:$0 sm:$0xff] }
0x1060   :  { %3694 = vrcp.f32 %v3043_v9 }
0x1061   :  { %3696 = vrcp.f32 %v3050_v25 }
0x1069   :  { %v3693_v28 = vpop.eup %3692 }
0x106a   :  { %v3695_v10 = vpop.eup %3694  ;;  %v3054_v52 = vmul.f32 %v3693_v28, %v3691_v13 }
0x106b   :  { %v3053_v0 = vmul.f32 %v3695_v10, %v5151_v27  ;;  %v3697_v34 = vpop.eup %3696  ;;  %v1897_v27 = vadd.f32 %v5330_v16, %v4843_v48 }
0x106d   :  { %v5195_v54 = vadd.f32 %v3054_v52, %v3053_v0 }
0x106f   :  { %3698 = vtanh.f32 %v5195_v54 }
0x1079   :  { %v3699_v7 = vpop.eup %3698 }
0x107a   :  { %v3057_v37 = vmul.f32 %v3699_v7, %v3697_v34 }
0x107c   :  { %v3058_v38 = vpack.c.bf16 %v3057_v37, %v3057_v37 }
0x107e   :  { %3060 = vst [vmem:[#allocation10] sm:$0xf] %v3058_v38 }
0x1085   :  { %v3061_v39 = vld [vmem:[#allocation10] sm:$0xf] }
0x1086   :  { %3132 = vmatmul.mubr.bf16.vlgmr.msra.gmra.mrb[92].mxu0 %v3061_v39  ;;  %3173 = vmatmul.mubr.bf16.vlgmr.msra.gmra.mrb[92].mxu1 %v3061_v39 }
0x1087   :  { %3403 = vmatpush3.bf16.msra.mxu0 %v3216_v41  ;;  %3418 = vmatprep.mubr.msk.bf16.mxu0 %vm3894_vm0, %v3893_v40 }
0x1088   :  { %3404 = vmatprep.subr.bf16.mxu0 %v3893_v40 }
0x108b   :  { %3405 = vmatpush3.bf16.msra.mxu0 %v3217_v42 }
0x108c   :  { %3406 = vmatprep.subr.bf16.mxu0 %v3893_v40 }
0x108f   :  { %3407 = vmatpush3.bf16.msra.mxu0 %v3218_v55 }
0x1090   :  { %3408 = vmatprep.subr.bf16.mxu0 %v3893_v40 }
0x1093   :  { %3409 = vmatpush3.bf16.msra.mxu0 %v3219_v56 }
0x1094   :  { %3410 = vmatprep.subr.bf16.mxu0 %v3893_v40 }
0x1097   :  { %3411 = vmatpush3.bf16.msra.mxu0 %v3220_v58 }
0x1098   :  { %3412 = vmatprep.subr.bf16.mxu0 %v3893_v40 }
0x109b   :  { %3413 = vmatpush3.bf16.msra.mxu0 %v3221_v57 }
0x109c   :  { %3414 = vmatprep.subr.bf16.mxu0 %v3893_v40 }
0x109f   :  { %3415 = vmatpush3.bf16.msra.mxu0 %v3222_v59 }
0x10a0   :  { %3416 = vmatprep.subr.bf16.mxu0 %v3893_v40 }
0x10a3   :  { %3417 = vmatpush3.bf16.msra.mxu0 %v3223_v29 }
0x1159   :  { %v3133_v15 = vpop.f32.mrb[92].mxu0  ;;  %v3174_v53 = vpop.f32.mrb[92].mxu1 }
0x115a   :  { %v3181_v50 = vadd.f32 %v3133_v15, %v1895_v61  ;;  %v3183_v31 = vadd.f32 %v3174_v53, %v1968_v2  ;;  %v3135_v1 = vpop.f32.mrb[93].mxu0  ;;  %v3176_v20 = vpop.f32.mrb[93].mxu1 }
0x115b   :  { %v3182_v14 = vadd.f32 %v3135_v1, %v1897_v27  ;;  %v3184_v51 = vadd.f32 %v3176_v20, %v1970_v32  ;;  %v3137_v8 = vpop.f32.mrb[94].mxu0  ;;  %v3178_v47 = vpop.f32.mrb[94].mxu1 }
0x115c   :  { %v3384_v22 = vmul.f32 -1.442695, %v3181_v50  ;;  %v3138_v19 = vpop.f32.mrb[95].mxu0  ;;  %v3179_v44 = vpop.f32.mrb[95].mxu1 }
0x115d   :  { %v3385_v21 = vmul.f32 -1.442695, %v3182_v14  ;;  %v3386_v48 = vmul.f32 -1.442695, %v3184_v51 }
0x115e   :  { %3700 = vpow2.f32 %v3384_v22 }
0x115f   :  { %3702 = vpow2.f32 %v3385_v21 }
0x1160   :  { %3704 = vpow2.f32 %v3386_v48 }
0x1161   :  { %3706 = vtanh.f32 %v3183_v31 }
0x1168   :  { %v3701_v46 = vpop.eup %3700 }
0x1169   :  { %v3703_v43 = vpop.eup %3702  ;;  %v3188_v49 = vadd.f32 1.0, %v3701_v46 }
0x116a   :  { %v3194_v3 = vadd.f32 1.0, %v3703_v43  ;;  %v3705_v35 = vpop.eup %3704 }
0x116b   :  { %3708 = vrcp.f32 %v3188_v49  ;;  %v3707_v18 = vpop.eup %3706  ;;  %v3201_v12 = vadd.f32 1.0, %v3705_v35 }
0x116c   :  { %3710 = vrcp.f32 %v3194_v3 }
0x116d   :  { %3712 = vrcp.f32 %v3201_v12 }
0x1175   :  { %v3709_v4 = vpop.eup %3708 }
0x1176   :  { %v3711_v5 = vpop.eup %3710  ;;  %v3205_v23 = vmul.f32 %v3709_v4, %v3707_v18 }
0x1177   :  { %v3204_v33 = vmul.f32 %v3711_v5, %v5195_v54  ;;  %v3713_v63 = vpop.eup %3712 }
0x1179   :  { %v3206_v45 = vadd.f32 %v3205_v23, %v3204_v33 }
0x117b   :  { %3714 = vtanh.f32 %v3206_v45 }
0x1185   :  { %v3715_v36 = vpop.eup %3714 }
0x1186   :  { %v3208_v30 = vmul.f32 %v3715_v36, %v3713_v63 }
0x1188   :  { %v3209_v26 = vpack.c.bf16 %v3208_v30, %v3208_v30 }
0x118a   :  { %3211 = vst [vmem:[#allocation10] sm:$0xf] %v3209_v26 }
0x1191   :  { %v3215_v6 = vld [vmem:[#allocation10] sm:$0xf] }
0x1192   :  { %3419 = vmatmul.mubr.bf16.vlgmr.msra.gmra.mrb[96].mxu0 %v3215_v6 }
0x1265   :  { %v3265_v9 = vpop.f32.mrb[96].mxu0 }
0x1266   :  { %v3266_v11 = vadd.f32 %v3387_v24, %v3265_v9  ;;  %v3420_v13 = vpop.f32.mrb[97].mxu0 }
0x1267   :  { %v3268_v28 = vpop.f32.mrb[98].mxu0 }
0x1268   :  { %3271 = vst [vmem:[#allocation22] sm:$0xff] %v3266_v11  ;;  %v3421_v10 = vpop.f32.mrb[99].mxu0 }
0x1269   :  { %3837 = shalt.err (!%p3834_p2)
}
0x126a   :  { %s3838_s1 = scalar_lea.hbm %s5228_s9, 128 }
0x126b   :  { %p3839_p3 = scmp.ne.s32.totalorder %s5228_s9, %s3838_s1  ;;  %p3842_p4 = scmp.lt.u32.totalorder %s3838_s1, %s5228_s9 }
0x126d   :  { %p3844_p5 = pnand %p3842_p4, %p3839_p3 }
0x126f   :  { %3847 = shalt.err (!%p3844_p5)
}
0x1270   :  { %3281 = dma.vmem_to_hbm [thread:$0]  %s3279_s22, 128, %s5228_s9, [#allocation16]  }
0x1271   :  { %3864 = dma.done.wait [#allocation16], 128  }
0x1272   :  { %3865 = vsyncadd [#allocation16], 4294967168 }
0x1273   :  { %3285 = vsyncpa [#allocation15], 1 }
0x1274   :  { %3286 = vsyncpa [#allocation18], 1 }
0x1275   :  { %3287 = vsyncpa [#allocation21], 1 }
0x1276   :  { %3288 = vsyncpa [#allocation16], 1 }
0x1277   :  { %3289 = vsyncmov [#allocation13] }
0x127a   :  { %s3290_s15 = vpop.sfrf %3289 }
0x127b   :  { %p3388_p6 = scmp.ne.s32.totalorder %s3290_s15, 0 }
0x127d   :  { %3294 = shalt.err (%p3388_p6)  }
0x127e   :  { %3296 = vsyncmov [#allocation13 + $0x1] }
0x1281   :  { %s3297_s16 = vpop.sfrf %3296 }
0x1282   :  { %p3389_p7 = scmp.ne.s32.totalorder %s3297_s16, 0 }
0x1284   :  { %3301 = shalt.err (%p3389_p7)  }
0x1285   :  { %3303 = vsyncmov [#allocation13 + $0x2] }
0x1288   :  { %s3304_s18 = vpop.sfrf %3303 }
0x1289   :  { %p3390_p8 = scmp.ne.s32.totalorder %s3304_s18, 0 }
0x128b   :  { %3308 = shalt.err (%p3390_p8)  }
0x128c   :  { %3310 = vsyncmov [#allocation13 + $0x3] }
0x128f   :  { %s3311_s9 = vpop.sfrf %3310 }
0x1290   :  { %p3391_p9 = scmp.ne.s32.totalorder %s3311_s9, 0 }
0x1292   :  { %3315 = shalt.err (%p3391_p9)  }
0x1293   :  { %3317 = vsyncmov [#allocation13 + $0x4] }
0x1296   :  { %s3318_s3 = vpop.sfrf %3317 }
0x1297   :  { %p3392_p10 = scmp.ne.s32.totalorder %s3318_s3, 0 }
0x1299   :  { %3322 = shalt.err (%p3392_p10)  }

</bundles_post_ra>
